<compile_context>
chip_gen: v5e
topology: v5e:2x2
jax: 0.10.0
libtpu: 0.0.40
codegen_flags: <defaults>
</compile_context>

<pallas_src>
import jax
import jax.numpy as jnp
from jax import lax
from jax.experimental import pallas as pl
from jax.experimental.pallas import tpu as pltpu

# ---- module hyper-params (small but TPU-lane-aligned) ----
NUM_HEADS = 2
DIM_HEAD = 128                       # lane-aligned head dim
EMBED_DIM = NUM_HEADS * DIM_HEAD     # 256
V_DIM = 256
L_DIM = 256
B = 2                                # batch
TGT_LEN = 8                          # v sequence length
SRC_LEN = 8                          # l sequence length
SCALE = DIM_HEAD ** (-0.5)
LN_EPS = 1e-5
CLAMP_MIN = -50000.0
CLAMP_MAX = 50000.0
INIT_VALUES = 1e-4                   # gamma_v / gamma_l init


def bi_attention_kernel(v_ref, l_ref,
                        lnv_w_ref, lnv_b_ref, lnl_w_ref, lnl_b_ref,
                        wq_ref, bq_ref, wk_ref, bk_ref,
                        wvv_ref, bvv_ref, wvl_ref, bvl_ref,
                        wov_ref, bov_ref, wol_ref, bol_ref,
                        out_v_ref, out_l_ref):
    Bq = v_ref.shape[0]
    H, Dh = NUM_HEADS, DIM_HEAD

    # Load parameters once (hoisted out of the static batch loop).
    lnv_w = lnv_w_ref[...]
    lnv_b = lnv_b_ref[...]
    lnl_w = lnl_w_ref[...]
    lnl_b = lnl_b_ref[...]
    wq = wq_ref[...]     # (Dv, E), attention scale already folded in
    bq = bq_ref[...]
    wk = wk_ref[...]     # (Dl, E)
    bk = bk_ref[...]
    wvv = wvv_ref[...]   # (Dv, E)
    bvv = bvv_ref[...]
    wvl = wvl_ref[...]   # (Dl, E)
    bvl = bvl_ref[...]
    wov = wov_ref[...]   # (E, Dv), gamma_v folded in
    bov = bov_ref[...]
    wol = wol_ref[...]   # (E, Dl), gamma_l folded in
    bol = bol_ref[...]

    def layer_norm(x, w, b):
        mean = jnp.mean(x, axis=-1, keepdims=True)
        var = jnp.mean(jnp.square(x - mean), axis=-1, keepdims=True)
        return (x - mean) * lax.rsqrt(var + LN_EPS) * w + b

    # ---- projections + raw attention logits (need ALL of them before the
    #      global max used by stable_softmax_2d) ----
    vvs, vls = [], []
    sims, simTs = [], []           # per (b, h): (Tv, Tl) and (Tl, Tv)
    for b in range(Bq):
        vn = layer_norm(v_ref[b], lnv_w, lnv_b)                       # (Tv, Dv)
        ln = layer_norm(l_ref[b], lnl_w, lnl_b)                       # (Tl, Dl)
        q = jnp.dot(vn, wq, preferred_element_type=jnp.float32) + bq  # (Tv, E)
        k = jnp.dot(ln, wk, preferred_element_type=jnp.float32) + bk  # (Tl, E)
        vv = jnp.dot(vn, wvv, preferred_element_type=jnp.float32) + bvv
        vl = jnp.dot(ln, wvl, preferred_element_type=jnp.float32) + bvl
        vvs.append(vv)
        vls.append(vl)
        for h in range(H):
            qh = q[:, h * Dh:(h + 1) * Dh]                            # (Tv, Dh)
            kh = k[:, h * Dh:(h + 1) * Dh]                            # (Tl, Dh)
            sims.append(lax.dot_general(
                qh, kh, (((1,), (1,)), ((), ())),
                preferred_element_type=jnp.float32))                  # (Tv, Tl)
            simTs.append(lax.dot_general(
                kh, qh, (((1,), (1,)), ((), ())),
                preferred_element_type=jnp.float32))                  # (Tl, Tv)

    # stable_softmax_2d: subtract the global max of the whole logits tensor.
    gmax = None
    for s in sims:
        m = jnp.max(jnp.max(s, axis=-1, keepdims=True), axis=0, keepdims=True)
        gmax = m if gmax is None else jnp.maximum(gmax, m)            # (1, 1)

    # ---- softmaxes, weighted sums, merged heads, output projections ----
    for b in range(Bq):
        heads_v, heads_l = [], []
        for h in range(H):
            idx = b * H + h
            aw = jnp.clip(sims[idx] - gmax, CLAMP_MIN, CLAMP_MAX)     # (Tv, Tl)
            awT = jnp.clip(simTs[idx] - gmax, CLAMP_MIN, CLAMP_MAX)   # (Tl, Tv)

            # v-branch softmax over src (Tl)
            pv = jnp.exp(aw - jnp.max(aw, axis=-1, keepdims=True))
            attn_v = pv * pl.reciprocal(jnp.sum(pv, axis=-1, keepdims=True))

            # l-branch: row-max subtract, clamp, softmax over tgt (Tv)
            sl = jnp.clip(awT - jnp.max(awT, axis=-1, keepdims=True),
                          CLAMP_MIN, CLAMP_MAX)
            plw = jnp.exp(sl)
            attn_l = plw * pl.reciprocal(jnp.sum(plw, axis=-1, keepdims=True))

            vl_h = vls[b][:, h * Dh:(h + 1) * Dh]                     # (Tl, Dh)
            vv_h = vvs[b][:, h * Dh:(h + 1) * Dh]                     # (Tv, Dh)
            heads_v.append(jnp.dot(attn_v, vl_h,
                                   preferred_element_type=jnp.float32))  # (Tv, Dh)
            heads_l.append(jnp.dot(attn_l, vv_h,
                                   preferred_element_type=jnp.float32))  # (Tl, Dh)

        # 'b h t d -> b t (h d)'  == concat heads along the lane dim
        ho_v = jnp.concatenate(heads_v, axis=-1)                      # (Tv, E)
        ho_l = jnp.concatenate(heads_l, axis=-1)                      # (Tl, E)

        # output projections (gamma_v / gamma_l already folded into w/b)
        out_v_ref[b] = jnp.dot(ho_v, wov,
                               preferred_element_type=jnp.float32) + bov
        out_l_ref[b] = jnp.dot(ho_l, wol,
                               preferred_element_type=jnp.float32) + bol


def bi_attention_block(v, l, *, ln_v_w, ln_v_b, ln_l_w, ln_l_b,
                       w_v, b_v, w_l, b_l, w_vv, b_vv, w_vl, b_vl,
                       w_ov, b_ov, w_ol, b_ol, gamma_v, gamma_l):
    """v: (B, Tv, v_dim), l: (B, Tl, l_dim); weights in torch (out, in) layout."""
    Bq, tgt_len, v_dim = v.shape
    _, src_len, l_dim = l.shape
    e_dim = w_v.shape[0]

    # --- parameter folding (wrapper glue) ---
    wq_t = (SCALE * w_v).T                      # fold attention scale into q proj
    bq = (SCALE * b_v).reshape(1, e_dim)
    wk_t = w_l.T
    bk = b_l.reshape(1, e_dim)
    wvv_t = w_vv.T
    bvv = b_vv.reshape(1, e_dim)
    wvl_t = w_vl.T
    bvl = b_vl.reshape(1, e_dim)
    wov_t = w_ov.T * gamma_v[None, :]           # fold gamma_v into out_v proj
    bov = (gamma_v * b_ov).reshape(1, v_dim)
    wol_t = w_ol.T * gamma_l[None, :]           # fold gamma_l into out_l proj
    bol = (gamma_l * b_ol).reshape(1, l_dim)

    lnv_w = ln_v_w.reshape(1, v_dim)
    lnv_b = ln_v_b.reshape(1, v_dim)
    lnl_w = ln_l_w.reshape(1, l_dim)
    lnl_b = ln_l_b.reshape(1, l_dim)

    def spec(shape):
        return pl.BlockSpec(shape, lambda i, _z=(0,) * len(shape): _z)

    out_v, out_l = pl.pallas_call(
        bi_attention_kernel,
        out_shape=(jax.ShapeDtypeStruct((Bq, tgt_len, v_dim), jnp.float32),
                   jax.ShapeDtypeStruct((Bq, src_len, l_dim), jnp.float32)),
        grid=(1,),   # single program: problem is overhead/DMA-bound at these shapes
        in_specs=[
            spec((Bq, tgt_len, v_dim)), spec((Bq, src_len, l_dim)),
            spec((1, v_dim)), spec((1, v_dim)), spec((1, l_dim)), spec((1, l_dim)),
            spec((v_dim, e_dim)), spec((1, e_dim)),
            spec((l_dim, e_dim)), spec((1, e_dim)),
            spec((v_dim, e_dim)), spec((1, e_dim)),
            spec((l_dim, e_dim)), spec((1, e_dim)),
            spec((e_dim, v_dim)), spec((1, v_dim)),
            spec((e_dim, l_dim)), spec((1, l_dim)),
        ],
        out_specs=(spec((Bq, tgt_len, v_dim)), spec((Bq, src_len, l_dim))),
        compiler_params=pltpu.CompilerParams(dimension_semantics=("arbitrary",)),
    )(v, l, lnv_w, lnv_b, lnl_w, lnl_b,
      wq_t, bq, wk_t, bk, wvv_t, bvv, wvl_t, bvl,
      wov_t, bov, wol_t, bol)
    return out_v, out_l


def bi_attention_block_ref(v, l, *, ln_v_w, ln_v_b, ln_l_w, ln_l_b,
                           w_v, b_v, w_l, b_l, w_vv, b_vv, w_vl, b_vl,
                           w_ov, b_ov, w_ol, b_ol, gamma_v, gamma_l):
    """Pure-JAX reference mirroring the torch forward exactly (eval mode)."""
    def layer_norm(x, w, b):
        mean = x.mean(-1, keepdims=True)
        var = ((x - mean) ** 2).mean(-1, keepdims=True)
        return (x - mean) / jnp.sqrt(var + LN_EPS) * w + b

    Bq, tgt_len, _ = v.shape
    src_len = l.shape[1]
    vn = layer_norm(v, ln_v_w, ln_v_b)
    ln = layer_norm(l, ln_l_w, ln_l_b)

    q = (vn @ w_v.T + b_v) * SCALE
    k = ln @ w_l.T + b_l
    vv = vn @ w_vv.T + b_vv
    vl = ln @ w_vl.T + b_vl

    def shape_heads(x):
        return x.reshape(Bq, -1, NUM_HEADS, DIM_HEAD).transpose(0, 2, 1, 3)

    qh, kh, vvh, vlh = map(shape_heads, (q, k, vv, vl))
    aw = jnp.einsum('bhtd,bhsd->bhts', qh, kh)
    aw = aw - aw.max()
    aw = jnp.clip(aw, CLAMP_MIN, CLAMP_MAX)
    awT = jnp.swapaxes(aw, -1, -2)
    awl = awT - awT.max(-1, keepdims=True)
    awl = jnp.clip(awl, CLAMP_MIN, CLAMP_MAX)
    attn_l = jax.nn.softmax(awl, axis=-1)
    attn_v = jax.nn.softmax(aw, axis=-1)
    out_v = jnp.einsum('bhts,bhsd->bhtd', attn_v, vlh)
    out_l = jnp.einsum('bhst,bhtd->bhsd', attn_l, vvh)
    out_v = out_v.transpose(0, 2, 1, 3).reshape(Bq, tgt_len, EMBED_DIM)
    out_l = out_l.transpose(0, 2, 1, 3).reshape(Bq, src_len, EMBED_DIM)
    delta_v = out_v @ w_ov.T + b_ov
    delta_l = out_l @ w_ol.T + b_ol
    return gamma_v * delta_v, gamma_l * delta_l


if __name__ == "__main__":
    key = jax.random.PRNGKey(0)
    ks = jax.random.split(key, 8)

    v = jax.random.normal(ks[0], (B, TGT_LEN, V_DIM), dtype=jnp.float32)
    l = jax.random.normal(ks[1], (B, SRC_LEN, L_DIM), dtype=jnp.float32)

    def xavier_uniform(k, shape):
        fan_out, fan_in = shape
        lim = (6.0 / (fan_in + fan_out)) ** 0.5
        return jax.random.uniform(k, shape, jnp.float32, -lim, lim)

    # Parameter init mirrors BiAttentionBlock/_reset_parameters:
    # xavier-uniform weights, zero biases, LayerNorm(1, 0), gamma = 1e-4 * ones.
    params = dict(
        ln_v_w=jnp.ones((V_DIM,), jnp.float32),
        ln_v_b=jnp.zeros((V_DIM,), jnp.float32),
        ln_l_w=jnp.ones((L_DIM,), jnp.float32),
        ln_l_b=jnp.zeros((L_DIM,), jnp.float32),
        w_v=xavier_uniform(ks[2], (EMBED_DIM, V_DIM)),
        b_v=jnp.zeros((EMBED_DIM,), jnp.float32),
        w_l=xavier_uniform(ks[3], (EMBED_DIM, L_DIM)),
        b_l=jnp.zeros((EMBED_DIM,), jnp.float32),
        w_vv=xavier_uniform(ks[4], (EMBED_DIM, V_DIM)),
        b_vv=jnp.zeros((EMBED_DIM,), jnp.float32),
        w_vl=xavier_uniform(ks[5], (EMBED_DIM, L_DIM)),
        b_vl=jnp.zeros((EMBED_DIM,), jnp.float32),
        w_ov=xavier_uniform(ks[6], (V_DIM, EMBED_DIM)),
        b_ov=jnp.zeros((V_DIM,), jnp.float32),
        w_ol=xavier_uniform(ks[7], (L_DIM, EMBED_DIM)),
        b_ol=jnp.zeros((L_DIM,), jnp.float32),
        gamma_v=INIT_VALUES * jnp.ones((V_DIM,), jnp.float32),
        gamma_l=INIT_VALUES * jnp.ones((L_DIM,), jnp.float32),
    )

    v_fused, l_fused = bi_attention_block(v, l, **params)
    v_fused = jax.block_until_ready(v_fused)
    l_fused = jax.block_until_ready(l_fused)

    v_expected, l_expected = bi_attention_block_ref(v, l, **params)

    assert v_fused.shape == (B, TGT_LEN, V_DIM)
    assert l_fused.shape == (B, SRC_LEN, L_DIM)
    assert jnp.allclose(v_fused, v_expected, rtol=1e-4, atol=1e-6), \
        float(jnp.max(jnp.abs(v_fused - v_expected)))
    assert jnp.allclose(l_fused, l_expected, rtol=1e-4, atol=1e-6), \
        float(jnp.max(jnp.abs(l_fused - l_expected)))

    print("KERNEL_OK")
</pallas_src>

<mosaic_0001>
module attributes {stable_mosaic.version = 11 : i64} {
  func.func @bi_attention_kernel(%arg0: i32, %arg1: memref<2x8x256xf32, #tpu.memory_space<vmem>>, %arg2: memref<2x8x256xf32, #tpu.memory_space<vmem>>, %arg3: memref<1x256xf32, #tpu.memory_space<vmem>>, %arg4: memref<1x256xf32, #tpu.memory_space<vmem>>, %arg5: memref<1x256xf32, #tpu.memory_space<vmem>>, %arg6: memref<1x256xf32, #tpu.memory_space<vmem>>, %arg7: memref<256x256xf32, #tpu.memory_space<vmem>>, %arg8: memref<1x256xf32, #tpu.memory_space<vmem>>, %arg9: memref<256x256xf32, #tpu.memory_space<vmem>>, %arg10: memref<1x256xf32, #tpu.memory_space<vmem>>, %arg11: memref<256x256xf32, #tpu.memory_space<vmem>>, %arg12: memref<1x256xf32, #tpu.memory_space<vmem>>, %arg13: memref<256x256xf32, #tpu.memory_space<vmem>>, %arg14: memref<1x256xf32, #tpu.memory_space<vmem>>, %arg15: memref<256x256xf32, #tpu.memory_space<vmem>>, %arg16: memref<1x256xf32, #tpu.memory_space<vmem>>, %arg17: memref<256x256xf32, #tpu.memory_space<vmem>>, %arg18: memref<1x256xf32, #tpu.memory_space<vmem>>, %arg19: memref<2x8x256xf32, #tpu.memory_space<vmem>>, %arg20: memref<2x8x256xf32, #tpu.memory_space<vmem>>) attributes {dimension_semantics = [#tpu.dimension_semantics<arbitrary>], iteration_bounds = array<i64: 1>, scalar_prefetch = 0 : i64, scratch_operands = 0 : i64, tpu.core_type = #tpu.core_type<tc>, window_params = [{pipeline_mode = #tpu.pipeline_mode<synchronous>, transform_indices = @transform_0, window_bounds = array<i64: 2, 8, 256>}, {pipeline_mode = #tpu.pipeline_mode<synchronous>, transform_indices = @transform_1, window_bounds = array<i64: 2, 8, 256>}, {pipeline_mode = #tpu.pipeline_mode<synchronous>, transform_indices = @transform_2, window_bounds = array<i64: 1, 256>}, {pipeline_mode = #tpu.pipeline_mode<synchronous>, transform_indices = @transform_3, window_bounds = array<i64: 1, 256>}, {pipeline_mode = #tpu.pipeline_mode<synchronous>, transform_indices = @transform_4, window_bounds = array<i64: 1, 256>}, {pipeline_mode = #tpu.pipeline_mode<synchronous>, transform_indices = @transform_5, window_bounds = array<i64: 1, 256>}, {pipeline_mode = #tpu.pipeline_mode<synchronous>, transform_indices = @transform_6, window_bounds = array<i64: 256, 256>}, {pipeline_mode = #tpu.pipeline_mode<synchronous>, transform_indices = @transform_7, window_bounds = array<i64: 1, 256>}, {pipeline_mode = #tpu.pipeline_mode<synchronous>, transform_indices = @transform_8, window_bounds = array<i64: 256, 256>}, {pipeline_mode = #tpu.pipeline_mode<synchronous>, transform_indices = @transform_9, window_bounds = array<i64: 1, 256>}, {pipeline_mode = #tpu.pipeline_mode<synchronous>, transform_indices = @transform_10, window_bounds = array<i64: 256, 256>}, {pipeline_mode = #tpu.pipeline_mode<synchronous>, transform_indices = @transform_11, window_bounds = array<i64: 1, 256>}, {pipeline_mode = #tpu.pipeline_mode<synchronous>, transform_indices = @transform_12, window_bounds = array<i64: 256, 256>}, {pipeline_mode = #tpu.pipeline_mode<synchronous>, transform_indices = @transform_13, window_bounds = array<i64: 1, 256>}, {pipeline_mode = #tpu.pipeline_mode<synchronous>, transform_indices = @transform_14, window_bounds = array<i64: 256, 256>}, {pipeline_mode = #tpu.pipeline_mode<synchronous>, transform_indices = @transform_15, window_bounds = array<i64: 1, 256>}, {pipeline_mode = #tpu.pipeline_mode<synchronous>, transform_indices = @transform_16, window_bounds = array<i64: 256, 256>}, {pipeline_mode = #tpu.pipeline_mode<synchronous>, transform_indices = @transform_17, window_bounds = array<i64: 1, 256>}, {pipeline_mode = #tpu.pipeline_mode<synchronous>, transform_indices = @transform_18, window_bounds = array<i64: 2, 8, 256>}, {pipeline_mode = #tpu.pipeline_mode<synchronous>, transform_indices = @transform_19, window_bounds = array<i64: 2, 8, 256>}]} {
    %c0 = arith.constant 0 : index
    %c0_0 = arith.constant 0 : index
    %0 = vector.load %arg3[%c0, %c0_0] : memref<1x256xf32, #tpu.memory_space<vmem>>, vector<1x256xf32>
    %c0_1 = arith.constant 0 : index
    %c0_2 = arith.constant 0 : index
    %1 = vector.load %arg4[%c0_1, %c0_2] : memref<1x256xf32, #tpu.memory_space<vmem>>, vector<1x256xf32>
    %c0_3 = arith.constant 0 : index
    %c0_4 = arith.constant 0 : index
    %2 = vector.load %arg5[%c0_3, %c0_4] : memref<1x256xf32, #tpu.memory_space<vmem>>, vector<1x256xf32>
    %c0_5 = arith.constant 0 : index
    %c0_6 = arith.constant 0 : index
    %3 = vector.load %arg6[%c0_5, %c0_6] : memref<1x256xf32, #tpu.memory_space<vmem>>, vector<1x256xf32>
    %c0_7 = arith.constant 0 : index
    %c0_8 = arith.constant 0 : index
    %4 = vector.load %arg7[%c0_7, %c0_8] : memref<256x256xf32, #tpu.memory_space<vmem>>, vector<256x256xf32>
    %c0_9 = arith.constant 0 : index
    %c0_10 = arith.constant 0 : index
    %5 = vector.load %arg8[%c0_9, %c0_10] : memref<1x256xf32, #tpu.memory_space<vmem>>, vector<1x256xf32>
    %c0_11 = arith.constant 0 : index
    %c0_12 = arith.constant 0 : index
    %6 = vector.load %arg9[%c0_11, %c0_12] : memref<256x256xf32, #tpu.memory_space<vmem>>, vector<256x256xf32>
    %c0_13 = arith.constant 0 : index
    %c0_14 = arith.constant 0 : index
    %7 = vector.load %arg10[%c0_13, %c0_14] : memref<1x256xf32, #tpu.memory_space<vmem>>, vector<1x256xf32>
    %c0_15 = arith.constant 0 : index
    %c0_16 = arith.constant 0 : index
    %8 = vector.load %arg11[%c0_15, %c0_16] : memref<256x256xf32, #tpu.memory_space<vmem>>, vector<256x256xf32>
    %c0_17 = arith.constant 0 : index
    %c0_18 = arith.constant 0 : index
    %9 = vector.load %arg12[%c0_17, %c0_18] : memref<1x256xf32, #tpu.memory_space<vmem>>, vector<1x256xf32>
    %c0_19 = arith.constant 0 : index
    %c0_20 = arith.constant 0 : index
    %10 = vector.load %arg13[%c0_19, %c0_20] : memref<256x256xf32, #tpu.memory_space<vmem>>, vector<256x256xf32>
    %c0_21 = arith.constant 0 : index
    %c0_22 = arith.constant 0 : index
    %11 = vector.load %arg14[%c0_21, %c0_22] : memref<1x256xf32, #tpu.memory_space<vmem>>, vector<1x256xf32>
    %c0_23 = arith.constant 0 : index
    %c0_24 = arith.constant 0 : index
    %12 = vector.load %arg15[%c0_23, %c0_24] : memref<256x256xf32, #tpu.memory_space<vmem>>, vector<256x256xf32>
    %c0_25 = arith.constant 0 : index
    %c0_26 = arith.constant 0 : index
    %13 = vector.load %arg16[%c0_25, %c0_26] : memref<1x256xf32, #tpu.memory_space<vmem>>, vector<1x256xf32>
    %c0_27 = arith.constant 0 : index
    %c0_28 = arith.constant 0 : index
    %14 = vector.load %arg17[%c0_27, %c0_28] : memref<256x256xf32, #tpu.memory_space<vmem>>, vector<256x256xf32>
    %c0_29 = arith.constant 0 : index
    %c0_30 = arith.constant 0 : index
    %15 = vector.load %arg18[%c0_29, %c0_30] : memref<1x256xf32, #tpu.memory_space<vmem>>, vector<1x256xf32>
    %c0_31 = arith.constant 0 : index
    %c0_32 = arith.constant 0 : index
    %c0_33 = arith.constant 0 : index
    %16 = vector.load %arg1[%c0_31, %c0_32, %c0_33] : memref<2x8x256xf32, #tpu.memory_space<vmem>>, vector<1x8x256xf32>
    %17 = vector.shape_cast %16 : vector<1x8x256xf32> to vector<8x256xf32>
    %cst = arith.constant dense<0.000000e+00> : vector<8xf32>
    %18 = vector.multi_reduction <add>, %17, %cst [1] : vector<8x256xf32> to vector<8xf32>
    %19 = vector.shape_cast %18 : vector<8xf32> to vector<8x1xf32>
    %cst_34 = arith.constant 2.560000e+02 : f32
    %20 = vector.broadcast %cst_34 : f32 to vector<8x1xf32>
    %21 = arith.divf %19, %20 : vector<8x1xf32>
    %22 = vector.broadcast %21 : vector<8x1xf32> to vector<8x256xf32>
    %23 = arith.subf %17, %22 : vector<8x256xf32>
    %24 = arith.mulf %23, %23 : vector<8x256xf32>
    %cst_35 = arith.constant dense<0.000000e+00> : vector<8xf32>
    %25 = vector.multi_reduction <add>, %24, %cst_35 [1] : vector<8x256xf32> to vector<8xf32>
    %26 = vector.shape_cast %25 : vector<8xf32> to vector<8x1xf32>
    %cst_36 = arith.constant 2.560000e+02 : f32
    %27 = vector.broadcast %cst_36 : f32 to vector<8x1xf32>
    %28 = arith.divf %26, %27 : vector<8x1xf32>
    %29 = vector.broadcast %21 : vector<8x1xf32> to vector<8x256xf32>
    %30 = arith.subf %17, %29 : vector<8x256xf32>
    %cst_37 = arith.constant 9.99999974E-6 : f32
    %31 = vector.broadcast %cst_37 : f32 to vector<8x1xf32>
    %32 = arith.addf %28, %31 : vector<8x1xf32>
    %33 = math.rsqrt %32 : vector<8x1xf32>
    %34 = vector.broadcast %33 : vector<8x1xf32> to vector<8x256xf32>
    %35 = arith.mulf %30, %34 : vector<8x256xf32>
    %36 = vector.broadcast %0 : vector<1x256xf32> to vector<8x256xf32>
    %37 = arith.mulf %35, %36 : vector<8x256xf32>
    %38 = vector.broadcast %1 : vector<1x256xf32> to vector<8x256xf32>
    %39 = arith.addf %37, %38 : vector<8x256xf32>
    %c0_38 = arith.constant 0 : index
    %c0_39 = arith.constant 0 : index
    %c0_40 = arith.constant 0 : index
    %40 = vector.load %arg2[%c0_38, %c0_39, %c0_40] : memref<2x8x256xf32, #tpu.memory_space<vmem>>, vector<1x8x256xf32>
    %41 = vector.shape_cast %40 : vector<1x8x256xf32> to vector<8x256xf32>
    %cst_41 = arith.constant dense<0.000000e+00> : vector<8xf32>
    %42 = vector.multi_reduction <add>, %41, %cst_41 [1] : vector<8x256xf32> to vector<8xf32>
    %43 = vector.shape_cast %42 : vector<8xf32> to vector<8x1xf32>
    %cst_42 = arith.constant 2.560000e+02 : f32
    %44 = vector.broadcast %cst_42 : f32 to vector<8x1xf32>
    %45 = arith.divf %43, %44 : vector<8x1xf32>
    %46 = vector.broadcast %45 : vector<8x1xf32> to vector<8x256xf32>
    %47 = arith.subf %41, %46 : vector<8x256xf32>
    %48 = arith.mulf %47, %47 : vector<8x256xf32>
    %cst_43 = arith.constant dense<0.000000e+00> : vector<8xf32>
    %49 = vector.multi_reduction <add>, %48, %cst_43 [1] : vector<8x256xf32> to vector<8xf32>
    %50 = vector.shape_cast %49 : vector<8xf32> to vector<8x1xf32>
    %cst_44 = arith.constant 2.560000e+02 : f32
    %51 = vector.broadcast %cst_44 : f32 to vector<8x1xf32>
    %52 = arith.divf %50, %51 : vector<8x1xf32>
    %53 = vector.broadcast %45 : vector<8x1xf32> to vector<8x256xf32>
    %54 = arith.subf %41, %53 : vector<8x256xf32>
    %cst_45 = arith.constant 9.99999974E-6 : f32
    %55 = vector.broadcast %cst_45 : f32 to vector<8x1xf32>
    %56 = arith.addf %52, %55 : vector<8x1xf32>
    %57 = math.rsqrt %56 : vector<8x1xf32>
    %58 = vector.broadcast %57 : vector<8x1xf32> to vector<8x256xf32>
    %59 = arith.mulf %54, %58 : vector<8x256xf32>
    %60 = vector.broadcast %2 : vector<1x256xf32> to vector<8x256xf32>
    %61 = arith.mulf %59, %60 : vector<8x256xf32>
    %62 = vector.broadcast %3 : vector<1x256xf32> to vector<8x256xf32>
    %63 = arith.addf %61, %62 : vector<8x256xf32>
    %cst_46 = arith.constant dense<0.000000e+00> : vector<8x256xf32>
    %64 = tpu.matmul %39, %4, %cst_46 {dimension_numbers = #tpu.dot_dimension_numbers<[1], [0], [0], [1], [0, 0, 1, 1], [], []>} : vector<8x256xf32>, vector<256x256xf32>, vector<8x256xf32> -> vector<8x256xf32>
    %65 = vector.broadcast %5 : vector<1x256xf32> to vector<8x256xf32>
    %66 = arith.addf %64, %65 : vector<8x256xf32>
    %cst_47 = arith.constant dense<0.000000e+00> : vector<8x256xf32>
    %67 = tpu.matmul %63, %6, %cst_47 {dimension_numbers = #tpu.dot_dimension_numbers<[1], [0], [0], [1], [0, 0, 1, 1], [], []>} : vector<8x256xf32>, vector<256x256xf32>, vector<8x256xf32> -> vector<8x256xf32>
    %68 = vector.broadcast %7 : vector<1x256xf32> to vector<8x256xf32>
    %69 = arith.addf %67, %68 : vector<8x256xf32>
    %cst_48 = arith.constant dense<0.000000e+00> : vector<8x256xf32>
    %70 = tpu.matmul %39, %8, %cst_48 {dimension_numbers = #tpu.dot_dimension_numbers<[1], [0], [0], [1], [0, 0, 1, 1], [], []>} : vector<8x256xf32>, vector<256x256xf32>, vector<8x256xf32> -> vector<8x256xf32>
    %71 = vector.broadcast %9 : vector<1x256xf32> to vector<8x256xf32>
    %72 = arith.addf %70, %71 : vector<8x256xf32>
    %cst_49 = arith.constant dense<0.000000e+00> : vector<8x256xf32>
    %73 = tpu.matmul %63, %10, %cst_49 {dimension_numbers = #tpu.dot_dimension_numbers<[1], [0], [0], [1], [0, 0, 1, 1], [], []>} : vector<8x256xf32>, vector<256x256xf32>, vector<8x256xf32> -> vector<8x256xf32>
    %74 = vector.broadcast %11 : vector<1x256xf32> to vector<8x256xf32>
    %75 = arith.addf %73, %74 : vector<8x256xf32>
    %76 = vector.extract_strided_slice %66 {offsets = [0, 0], sizes = [8, 128], strides = [1, 1]} : vector<8x256xf32> to vector<8x128xf32>
    %77 = vector.extract_strided_slice %69 {offsets = [0, 0], sizes = [8, 128], strides = [1, 1]} : vector<8x256xf32> to vector<8x128xf32>
    %cst_50 = arith.constant dense<0.000000e+00> : vector<8x8xf32>
    %78 = tpu.matmul %76, %77, %cst_50 {dimension_numbers = #tpu.dot_dimension_numbers<[1], [1], [0], [0], [0, 0, 1, 0], [], []>} : vector<8x128xf32>, vector<8x128xf32>, vector<8x8xf32> -> vector<8x8xf32>
    %cst_51 = arith.constant dense<0.000000e+00> : vector<8x8xf32>
    %79 = tpu.matmul %77, %76, %cst_51 {dimension_numbers = #tpu.dot_dimension_numbers<[1], [1], [0], [0], [0, 0, 1, 0], [], []>} : vector<8x128xf32>, vector<8x128xf32>, vector<8x8xf32> -> vector<8x8xf32>
    %80 = vector.extract_strided_slice %66 {offsets = [0, 128], sizes = [8, 128], strides = [1, 1]} : vector<8x256xf32> to vector<8x128xf32>
    %81 = vector.extract_strided_slice %69 {offsets = [0, 128], sizes = [8, 128], strides = [1, 1]} : vector<8x256xf32> to vector<8x128xf32>
    %cst_52 = arith.constant dense<0.000000e+00> : vector<8x8xf32>
    %82 = tpu.matmul %80, %81, %cst_52 {dimension_numbers = #tpu.dot_dimension_numbers<[1], [1], [0], [0], [0, 0, 1, 0], [], []>} : vector<8x128xf32>, vector<8x128xf32>, vector<8x8xf32> -> vector<8x8xf32>
    %cst_53 = arith.constant dense<0.000000e+00> : vector<8x8xf32>
    %83 = tpu.matmul %81, %80, %cst_53 {dimension_numbers = #tpu.dot_dimension_numbers<[1], [1], [0], [0], [0, 0, 1, 0], [], []>} : vector<8x128xf32>, vector<8x128xf32>, vector<8x8xf32> -> vector<8x8xf32>
    %c1 = arith.constant 1 : index
    %c0_54 = arith.constant 0 : index
    %c0_55 = arith.constant 0 : index
    %84 = vector.load %arg1[%c1, %c0_54, %c0_55] : memref<2x8x256xf32, #tpu.memory_space<vmem>>, vector<1x8x256xf32>
    %85 = vector.shape_cast %84 : vector<1x8x256xf32> to vector<8x256xf32>
    %cst_56 = arith.constant dense<0.000000e+00> : vector<8xf32>
    %86 = vector.multi_reduction <add>, %85, %cst_56 [1] : vector<8x256xf32> to vector<8xf32>
    %87 = vector.shape_cast %86 : vector<8xf32> to vector<8x1xf32>
    %cst_57 = arith.constant 2.560000e+02 : f32
    %88 = vector.broadcast %cst_57 : f32 to vector<8x1xf32>
    %89 = arith.divf %87, %88 : vector<8x1xf32>
    %90 = vector.broadcast %89 : vector<8x1xf32> to vector<8x256xf32>
    %91 = arith.subf %85, %90 : vector<8x256xf32>
    %92 = arith.mulf %91, %91 : vector<8x256xf32>
    %cst_58 = arith.constant dense<0.000000e+00> : vector<8xf32>
    %93 = vector.multi_reduction <add>, %92, %cst_58 [1] : vector<8x256xf32> to vector<8xf32>
    %94 = vector.shape_cast %93 : vector<8xf32> to vector<8x1xf32>
    %cst_59 = arith.constant 2.560000e+02 : f32
    %95 = vector.broadcast %cst_59 : f32 to vector<8x1xf32>
    %96 = arith.divf %94, %95 : vector<8x1xf32>
    %97 = vector.broadcast %89 : vector<8x1xf32> to vector<8x256xf32>
    %98 = arith.subf %85, %97 : vector<8x256xf32>
    %cst_60 = arith.constant 9.99999974E-6 : f32
    %99 = vector.broadcast %cst_60 : f32 to vector<8x1xf32>
    %100 = arith.addf %96, %99 : vector<8x1xf32>
    %101 = math.rsqrt %100 : vector<8x1xf32>
    %102 = vector.broadcast %101 : vector<8x1xf32> to vector<8x256xf32>
    %103 = arith.mulf %98, %102 : vector<8x256xf32>
    %104 = vector.broadcast %0 : vector<1x256xf32> to vector<8x256xf32>
    %105 = arith.mulf %103, %104 : vector<8x256xf32>
    %106 = vector.broadcast %1 : vector<1x256xf32> to vector<8x256xf32>
    %107 = arith.addf %105, %106 : vector<8x256xf32>
    %c1_61 = arith.constant 1 : index
    %c0_62 = arith.constant 0 : index
    %c0_63 = arith.constant 0 : index
    %108 = vector.load %arg2[%c1_61, %c0_62, %c0_63] : memref<2x8x256xf32, #tpu.memory_space<vmem>>, vector<1x8x256xf32>
    %109 = vector.shape_cast %108 : vector<1x8x256xf32> to vector<8x256xf32>
    %cst_64 = arith.constant dense<0.000000e+00> : vector<8xf32>
    %110 = vector.multi_reduction <add>, %109, %cst_64 [1] : vector<8x256xf32> to vector<8xf32>
    %111 = vector.shape_cast %110 : vector<8xf32> to vector<8x1xf32>
    %cst_65 = arith.constant 2.560000e+02 : f32
    %112 = vector.broadcast %cst_65 : f32 to vector<8x1xf32>
    %113 = arith.divf %111, %112 : vector<8x1xf32>
    %114 = vector.broadcast %113 : vector<8x1xf32> to vector<8x256xf32>
    %115 = arith.subf %109, %114 : vector<8x256xf32>
    %116 = arith.mulf %115, %115 : vector<8x256xf32>
    %cst_66 = arith.constant dense<0.000000e+00> : vector<8xf32>
    %117 = vector.multi_reduction <add>, %116, %cst_66 [1] : vector<8x256xf32> to vector<8xf32>
    %118 = vector.shape_cast %117 : vector<8xf32> to vector<8x1xf32>
    %cst_67 = arith.constant 2.560000e+02 : f32
    %119 = vector.broadcast %cst_67 : f32 to vector<8x1xf32>
    %120 = arith.divf %118, %119 : vector<8x1xf32>
    %121 = vector.broadcast %113 : vector<8x1xf32> to vector<8x256xf32>
    %122 = arith.subf %109, %121 : vector<8x256xf32>
    %cst_68 = arith.constant 9.99999974E-6 : f32
    %123 = vector.broadcast %cst_68 : f32 to vector<8x1xf32>
    %124 = arith.addf %120, %123 : vector<8x1xf32>
    %125 = math.rsqrt %124 : vector<8x1xf32>
    %126 = vector.broadcast %125 : vector<8x1xf32> to vector<8x256xf32>
    %127 = arith.mulf %122, %126 : vector<8x256xf32>
    %128 = vector.broadcast %2 : vector<1x256xf32> to vector<8x256xf32>
    %129 = arith.mulf %127, %128 : vector<8x256xf32>
    %130 = vector.broadcast %3 : vector<1x256xf32> to vector<8x256xf32>
    %131 = arith.addf %129, %130 : vector<8x256xf32>
    %cst_69 = arith.constant dense<0.000000e+00> : vector<8x256xf32>
    %132 = tpu.matmul %107, %4, %cst_69 {dimension_numbers = #tpu.dot_dimension_numbers<[1], [0], [0], [1], [0, 0, 1, 1], [], []>} : vector<8x256xf32>, vector<256x256xf32>, vector<8x256xf32> -> vector<8x256xf32>
    %133 = vector.broadcast %5 : vector<1x256xf32> to vector<8x256xf32>
    %134 = arith.addf %132, %133 : vector<8x256xf32>
    %cst_70 = arith.constant dense<0.000000e+00> : vector<8x256xf32>
    %135 = tpu.matmul %131, %6, %cst_70 {dimension_numbers = #tpu.dot_dimension_numbers<[1], [0], [0], [1], [0, 0, 1, 1], [], []>} : vector<8x256xf32>, vector<256x256xf32>, vector<8x256xf32> -> vector<8x256xf32>
    %136 = vector.broadcast %7 : vector<1x256xf32> to vector<8x256xf32>
    %137 = arith.addf %135, %136 : vector<8x256xf32>
    %cst_71 = arith.constant dense<0.000000e+00> : vector<8x256xf32>
    %138 = tpu.matmul %107, %8, %cst_71 {dimension_numbers = #tpu.dot_dimension_numbers<[1], [0], [0], [1], [0, 0, 1, 1], [], []>} : vector<8x256xf32>, vector<256x256xf32>, vector<8x256xf32> -> vector<8x256xf32>
    %139 = vector.broadcast %9 : vector<1x256xf32> to vector<8x256xf32>
    %140 = arith.addf %138, %139 : vector<8x256xf32>
    %cst_72 = arith.constant dense<0.000000e+00> : vector<8x256xf32>
    %141 = tpu.matmul %131, %10, %cst_72 {dimension_numbers = #tpu.dot_dimension_numbers<[1], [0], [0], [1], [0, 0, 1, 1], [], []>} : vector<8x256xf32>, vector<256x256xf32>, vector<8x256xf32> -> vector<8x256xf32>
    %142 = vector.broadcast %11 : vector<1x256xf32> to vector<8x256xf32>
    %143 = arith.addf %141, %142 : vector<8x256xf32>
    %144 = vector.extract_strided_slice %134 {offsets = [0, 0], sizes = [8, 128], strides = [1, 1]} : vector<8x256xf32> to vector<8x128xf32>
    %145 = vector.extract_strided_slice %137 {offsets = [0, 0], sizes = [8, 128], strides = [1, 1]} : vector<8x256xf32> to vector<8x128xf32>
    %cst_73 = arith.constant dense<0.000000e+00> : vector<8x8xf32>
    %146 = tpu.matmul %144, %145, %cst_73 {dimension_numbers = #tpu.dot_dimension_numbers<[1], [1], [0], [0], [0, 0, 1, 0], [], []>} : vector<8x128xf32>, vector<8x128xf32>, vector<8x8xf32> -> vector<8x8xf32>
    %cst_74 = arith.constant dense<0.000000e+00> : vector<8x8xf32>
    %147 = tpu.matmul %145, %144, %cst_74 {dimension_numbers = #tpu.dot_dimension_numbers<[1], [1], [0], [0], [0, 0, 1, 0], [], []>} : vector<8x128xf32>, vector<8x128xf32>, vector<8x8xf32> -> vector<8x8xf32>
    %148 = vector.extract_strided_slice %134 {offsets = [0, 128], sizes = [8, 128], strides = [1, 1]} : vector<8x256xf32> to vector<8x128xf32>
    %149 = vector.extract_strided_slice %137 {offsets = [0, 128], sizes = [8, 128], strides = [1, 1]} : vector<8x256xf32> to vector<8x128xf32>
    %cst_75 = arith.constant dense<0.000000e+00> : vector<8x8xf32>
    %150 = tpu.matmul %148, %149, %cst_75 {dimension_numbers = #tpu.dot_dimension_numbers<[1], [1], [0], [0], [0, 0, 1, 0], [], []>} : vector<8x128xf32>, vector<8x128xf32>, vector<8x8xf32> -> vector<8x8xf32>
    %cst_76 = arith.constant dense<0.000000e+00> : vector<8x8xf32>
    %151 = tpu.matmul %149, %148, %cst_76 {dimension_numbers = #tpu.dot_dimension_numbers<[1], [1], [0], [0], [0, 0, 1, 0], [], []>} : vector<8x128xf32>, vector<8x128xf32>, vector<8x8xf32> -> vector<8x8xf32>
    %cst_77 = arith.constant dense<0xFF800000> : vector<8xf32>
    %152 = vector.multi_reduction <maximumf>, %78, %cst_77 [1] : vector<8x8xf32> to vector<8xf32>
    %153 = vector.shape_cast %152 : vector<8xf32> to vector<8x1xf32>
    %cst_78 = arith.constant dense<0xFF800000> : vector<1xf32>
    %154 = vector.multi_reduction <maximumf>, %153, %cst_78 [0] : vector<8x1xf32> to vector<1xf32>
    %155 = vector.shape_cast %154 : vector<1xf32> to vector<1x1xf32>
    %cst_79 = arith.constant dense<0xFF800000> : vector<8xf32>
    %156 = vector.multi_reduction <maximumf>, %82, %cst_79 [1] : vector<8x8xf32> to vector<8xf32>
    %157 = vector.shape_cast %156 : vector<8xf32> to vector<8x1xf32>
    %cst_80 = arith.constant dense<0xFF800000> : vector<1xf32>
    %158 = vector.multi_reduction <maximumf>, %157, %cst_80 [0] : vector<8x1xf32> to vector<1xf32>
    %159 = vector.shape_cast %158 : vector<1xf32> to vector<1x1xf32>
    %160 = arith.maximumf %155, %159 : vector<1x1xf32>
    %cst_81 = arith.constant dense<0xFF800000> : vector<8xf32>
    %161 = vector.multi_reduction <maximumf>, %146, %cst_81 [1] : vector<8x8xf32> to vector<8xf32>
    %162 = vector.shape_cast %161 : vector<8xf32> to vector<8x1xf32>
    %cst_82 = arith.constant dense<0xFF800000> : vector<1xf32>
    %163 = vector.multi_reduction <maximumf>, %162, %cst_82 [0] : vector<8x1xf32> to vector<1xf32>
    %164 = vector.shape_cast %163 : vector<1xf32> to vector<1x1xf32>
    %165 = arith.maximumf %160, %164 : vector<1x1xf32>
    %cst_83 = arith.constant dense<0xFF800000> : vector<8xf32>
    %166 = vector.multi_reduction <maximumf>, %150, %cst_83 [1] : vector<8x8xf32> to vector<8xf32>
    %167 = vector.shape_cast %166 : vector<8xf32> to vector<8x1xf32>
    %cst_84 = arith.constant dense<0xFF800000> : vector<1xf32>
    %168 = vector.multi_reduction <maximumf>, %167, %cst_84 [0] : vector<8x1xf32> to vector<1xf32>
    %169 = vector.shape_cast %168 : vector<1xf32> to vector<1x1xf32>
    %170 = arith.maximumf %165, %169 : vector<1x1xf32>
    %171 = vector.broadcast %170 : vector<1x1xf32> to vector<8x8xf32>
    %172 = arith.subf %78, %171 : vector<8x8xf32>
    %cst_85 = arith.constant -5.000000e+04 : f32
    %cst_86 = arith.constant 5.000000e+04 : f32
    %173 = vector.broadcast %cst_85 : f32 to vector<8x8xf32>
    %174 = arith.maximumf %173, %172 : vector<8x8xf32>
    %175 = vector.broadcast %cst_86 : f32 to vector<8x8xf32>
    %176 = arith.minimumf %175, %174 : vector<8x8xf32>
    %177 = vector.broadcast %170 : vector<1x1xf32> to vector<8x8xf32>
    %178 = arith.subf %79, %177 : vector<8x8xf32>
    %cst_87 = arith.constant -5.000000e+04 : f32
    %cst_88 = arith.constant 5.000000e+04 : f32
    %179 = vector.broadcast %cst_87 : f32 to vector<8x8xf32>
    %180 = arith.maximumf %179, %178 : vector<8x8xf32>
    %181 = vector.broadcast %cst_88 : f32 to vector<8x8xf32>
    %182 = arith.minimumf %181, %180 : vector<8x8xf32>
    %cst_89 = arith.constant dense<0xFF800000> : vector<8xf32>
    %183 = vector.multi_reduction <maximumf>, %176, %cst_89 [1] : vector<8x8xf32> to vector<8xf32>
    %184 = vector.shape_cast %183 : vector<8xf32> to vector<8x1xf32>
    %185 = vector.broadcast %184 : vector<8x1xf32> to vector<8x8xf32>
    %186 = arith.subf %176, %185 : vector<8x8xf32>
    %187 = math.exp %186 : vector<8x8xf32>
    %cst_90 = arith.constant dense<0.000000e+00> : vector<8xf32>
    %188 = vector.multi_reduction <add>, %187, %cst_90 [1] : vector<8x8xf32> to vector<8xf32>
    %189 = vector.shape_cast %188 : vector<8xf32> to vector<8x1xf32>
    %190 = tpu.reciprocal %189 : vector<8x1xf32> -> vector<8x1xf32>
    %191 = vector.broadcast %190 : vector<8x1xf32> to vector<8x8xf32>
    %192 = arith.mulf %187, %191 : vector<8x8xf32>
    %cst_91 = arith.constant dense<0xFF800000> : vector<8xf32>
    %193 = vector.multi_reduction <maximumf>, %182, %cst_91 [1] : vector<8x8xf32> to vector<8xf32>
    %194 = vector.shape_cast %193 : vector<8xf32> to vector<8x1xf32>
    %195 = vector.broadcast %194 : vector<8x1xf32> to vector<8x8xf32>
    %196 = arith.subf %182, %195 : vector<8x8xf32>
    %cst_92 = arith.constant -5.000000e+04 : f32
    %cst_93 = arith.constant 5.000000e+04 : f32
    %197 = vector.broadcast %cst_92 : f32 to vector<8x8xf32>
    %198 = arith.maximumf %197, %196 : vector<8x8xf32>
    %199 = vector.broadcast %cst_93 : f32 to vector<8x8xf32>
    %200 = arith.minimumf %199, %198 : vector<8x8xf32>
    %201 = math.exp %200 : vector<8x8xf32>
    %cst_94 = arith.constant dense<0.000000e+00> : vector<8xf32>
    %202 = vector.multi_reduction <add>, %201, %cst_94 [1] : vector<8x8xf32> to vector<8xf32>
    %203 = vector.shape_cast %202 : vector<8xf32> to vector<8x1xf32>
    %204 = tpu.reciprocal %203 : vector<8x1xf32> -> vector<8x1xf32>
    %205 = vector.broadcast %204 : vector<8x1xf32> to vector<8x8xf32>
    %206 = arith.mulf %201, %205 : vector<8x8xf32>
    %207 = vector.extract_strided_slice %75 {offsets = [0, 0], sizes = [8, 128], strides = [1, 1]} : vector<8x256xf32> to vector<8x128xf32>
    %208 = vector.extract_strided_slice %72 {offsets = [0, 0], sizes = [8, 128], strides = [1, 1]} : vector<8x256xf32> to vector<8x128xf32>
    %cst_95 = arith.constant dense<0.000000e+00> : vector<8x128xf32>
    %209 = tpu.matmul %192, %207, %cst_95 {dimension_numbers = #tpu.dot_dimension_numbers<[1], [0], [0], [1], [0, 0, 1, 1], [], []>} : vector<8x8xf32>, vector<8x128xf32>, vector<8x128xf32> -> vector<8x128xf32>
    %cst_96 = arith.constant dense<0.000000e+00> : vector<8x128xf32>
    %210 = tpu.matmul %206, %208, %cst_96 {dimension_numbers = #tpu.dot_dimension_numbers<[1], [0], [0], [1], [0, 0, 1, 1], [], []>} : vector<8x8xf32>, vector<8x128xf32>, vector<8x128xf32> -> vector<8x128xf32>
    %211 = vector.broadcast %170 : vector<1x1xf32> to vector<8x8xf32>
    %212 = arith.subf %82, %211 : vector<8x8xf32>
    %cst_97 = arith.constant -5.000000e+04 : f32
    %cst_98 = arith.constant 5.000000e+04 : f32
    %213 = vector.broadcast %cst_97 : f32 to vector<8x8xf32>
    %214 = arith.maximumf %213, %212 : vector<8x8xf32>
    %215 = vector.broadcast %cst_98 : f32 to vector<8x8xf32>
    %216 = arith.minimumf %215, %214 : vector<8x8xf32>
    %217 = vector.broadcast %170 : vector<1x1xf32> to vector<8x8xf32>
    %218 = arith.subf %83, %217 : vector<8x8xf32>
    %cst_99 = arith.constant -5.000000e+04 : f32
    %cst_100 = arith.constant 5.000000e+04 : f32
    %219 = vector.broadcast %cst_99 : f32 to vector<8x8xf32>
    %220 = arith.maximumf %219, %218 : vector<8x8xf32>
    %221 = vector.broadcast %cst_100 : f32 to vector<8x8xf32>
    %222 = arith.minimumf %221, %220 : vector<8x8xf32>
    %cst_101 = arith.constant dense<0xFF800000> : vector<8xf32>
    %223 = vector.multi_reduction <maximumf>, %216, %cst_101 [1] : vector<8x8xf32> to vector<8xf32>
    %224 = vector.shape_cast %223 : vector<8xf32> to vector<8x1xf32>
    %225 = vector.broadcast %224 : vector<8x1xf32> to vector<8x8xf32>
    %226 = arith.subf %216, %225 : vector<8x8xf32>
    %227 = math.exp %226 : vector<8x8xf32>
    %cst_102 = arith.constant dense<0.000000e+00> : vector<8xf32>
    %228 = vector.multi_reduction <add>, %227, %cst_102 [1] : vector<8x8xf32> to vector<8xf32>
    %229 = vector.shape_cast %228 : vector<8xf32> to vector<8x1xf32>
    %230 = tpu.reciprocal %229 : vector<8x1xf32> -> vector<8x1xf32>
    %231 = vector.broadcast %230 : vector<8x1xf32> to vector<8x8xf32>
    %232 = arith.mulf %227, %231 : vector<8x8xf32>
    %cst_103 = arith.constant dense<0xFF800000> : vector<8xf32>
    %233 = vector.multi_reduction <maximumf>, %222, %cst_103 [1] : vector<8x8xf32> to vector<8xf32>
    %234 = vector.shape_cast %233 : vector<8xf32> to vector<8x1xf32>
    %235 = vector.broadcast %234 : vector<8x1xf32> to vector<8x8xf32>
    %236 = arith.subf %222, %235 : vector<8x8xf32>
    %cst_104 = arith.constant -5.000000e+04 : f32
    %cst_105 = arith.constant 5.000000e+04 : f32
    %237 = vector.broadcast %cst_104 : f32 to vector<8x8xf32>
    %238 = arith.maximumf %237, %236 : vector<8x8xf32>
    %239 = vector.broadcast %cst_105 : f32 to vector<8x8xf32>
    %240 = arith.minimumf %239, %238 : vector<8x8xf32>
    %241 = math.exp %240 : vector<8x8xf32>
    %cst_106 = arith.constant dense<0.000000e+00> : vector<8xf32>
    %242 = vector.multi_reduction <add>, %241, %cst_106 [1] : vector<8x8xf32> to vector<8xf32>
    %243 = vector.shape_cast %242 : vector<8xf32> to vector<8x1xf32>
    %244 = tpu.reciprocal %243 : vector<8x1xf32> -> vector<8x1xf32>
    %245 = vector.broadcast %244 : vector<8x1xf32> to vector<8x8xf32>
    %246 = arith.mulf %241, %245 : vector<8x8xf32>
    %247 = vector.extract_strided_slice %75 {offsets = [0, 128], sizes = [8, 128], strides = [1, 1]} : vector<8x256xf32> to vector<8x128xf32>
    %248 = vector.extract_strided_slice %72 {offsets = [0, 128], sizes = [8, 128], strides = [1, 1]} : vector<8x256xf32> to vector<8x128xf32>
    %cst_107 = arith.constant dense<0.000000e+00> : vector<8x128xf32>
    %249 = tpu.matmul %232, %247, %cst_107 {dimension_numbers = #tpu.dot_dimension_numbers<[1], [0], [0], [1], [0, 0, 1, 1], [], []>} : vector<8x8xf32>, vector<8x128xf32>, vector<8x128xf32> -> vector<8x128xf32>
    %cst_108 = arith.constant dense<0.000000e+00> : vector<8x128xf32>
    %250 = tpu.matmul %246, %248, %cst_108 {dimension_numbers = #tpu.dot_dimension_numbers<[1], [0], [0], [1], [0, 0, 1, 1], [], []>} : vector<8x8xf32>, vector<8x128xf32>, vector<8x128xf32> -> vector<8x128xf32>
    %251 = tpu.concatenate %209, %249 in 1 : vector<8x128xf32>, vector<8x128xf32> -> vector<8x256xf32>
    %252 = tpu.concatenate %210, %250 in 1 : vector<8x128xf32>, vector<8x128xf32> -> vector<8x256xf32>
    %cst_109 = arith.constant dense<0.000000e+00> : vector<8x256xf32>
    %253 = tpu.matmul %251, %12, %cst_109 {dimension_numbers = #tpu.dot_dimension_numbers<[1], [0], [0], [1], [0, 0, 1, 1], [], []>} : vector<8x256xf32>, vector<256x256xf32>, vector<8x256xf32> -> vector<8x256xf32>
    %254 = vector.broadcast %13 : vector<1x256xf32> to vector<8x256xf32>
    %255 = arith.addf %253, %254 : vector<8x256xf32>
    %c0_110 = arith.constant 0 : index
    %c0_111 = arith.constant 0 : index
    %c0_112 = arith.constant 0 : index
    %256 = vector.load %arg19[%c0_110, %c0_111, %c0_112] : memref<2x8x256xf32, #tpu.memory_space<vmem>>, vector<1x8x256xf32>
    %257 = vector.shape_cast %256 : vector<1x8x256xf32> to vector<8x256xf32>
    %258 = vector.shape_cast %255 : vector<8x256xf32> to vector<1x8x256xf32>
    tpu.vector_store %arg19[%c0_110, %c0_111, %c0_112], %258 {strides = array<i32>} : memref<2x8x256xf32, #tpu.memory_space<vmem>>, vector<1x8x256xf32>,
    %cst_113 = arith.constant dense<0.000000e+00> : vector<8x256xf32>
    %259 = tpu.matmul %252, %14, %cst_113 {dimension_numbers = #tpu.dot_dimension_numbers<[1], [0], [0], [1], [0, 0, 1, 1], [], []>} : vector<8x256xf32>, vector<256x256xf32>, vector<8x256xf32> -> vector<8x256xf32>
    %260 = vector.broadcast %15 : vector<1x256xf32> to vector<8x256xf32>
    %261 = arith.addf %259, %260 : vector<8x256xf32>
    %c0_114 = arith.constant 0 : index
    %c0_115 = arith.constant 0 : index
    %c0_116 = arith.constant 0 : index
    %262 = vector.load %arg20[%c0_114, %c0_115, %c0_116] : memref<2x8x256xf32, #tpu.memory_space<vmem>>, vector<1x8x256xf32>
    %263 = vector.shape_cast %262 : vector<1x8x256xf32> to vector<8x256xf32>
    %264 = vector.shape_cast %261 : vector<8x256xf32> to vector<1x8x256xf32>
    tpu.vector_store %arg20[%c0_114, %c0_115, %c0_116], %264 {strides = array<i32>} : memref<2x8x256xf32, #tpu.memory_space<vmem>>, vector<1x8x256xf32>,
    %265 = vector.broadcast %170 : vector<1x1xf32> to vector<8x8xf32>
    %266 = arith.subf %146, %265 : vector<8x8xf32>
    %cst_117 = arith.constant -5.000000e+04 : f32
    %cst_118 = arith.constant 5.000000e+04 : f32
    %267 = vector.broadcast %cst_117 : f32 to vector<8x8xf32>
    %268 = arith.maximumf %267, %266 : vector<8x8xf32>
    %269 = vector.broadcast %cst_118 : f32 to vector<8x8xf32>
    %270 = arith.minimumf %269, %268 : vector<8x8xf32>
    %271 = vector.broadcast %170 : vector<1x1xf32> to vector<8x8xf32>
    %272 = arith.subf %147, %271 : vector<8x8xf32>
    %cst_119 = arith.constant -5.000000e+04 : f32
    %cst_120 = arith.constant 5.000000e+04 : f32
    %273 = vector.broadcast %cst_119 : f32 to vector<8x8xf32>
    %274 = arith.maximumf %273, %272 : vector<8x8xf32>
    %275 = vector.broadcast %cst_120 : f32 to vector<8x8xf32>
    %276 = arith.minimumf %275, %274 : vector<8x8xf32>
    %cst_121 = arith.constant dense<0xFF800000> : vector<8xf32>
    %277 = vector.multi_reduction <maximumf>, %270, %cst_121 [1] : vector<8x8xf32> to vector<8xf32>
    %278 = vector.shape_cast %277 : vector<8xf32> to vector<8x1xf32>
    %279 = vector.broadcast %278 : vector<8x1xf32> to vector<8x8xf32>
    %280 = arith.subf %270, %279 : vector<8x8xf32>
    %281 = math.exp %280 : vector<8x8xf32>
    %cst_122 = arith.constant dense<0.000000e+00> : vector<8xf32>
    %282 = vector.multi_reduction <add>, %281, %cst_122 [1] : vector<8x8xf32> to vector<8xf32>
    %283 = vector.shape_cast %282 : vector<8xf32> to vector<8x1xf32>
    %284 = tpu.reciprocal %283 : vector<8x1xf32> -> vector<8x1xf32>
    %285 = vector.broadcast %284 : vector<8x1xf32> to vector<8x8xf32>
    %286 = arith.mulf %281, %285 : vector<8x8xf32>
    %cst_123 = arith.constant dense<0xFF800000> : vector<8xf32>
    %287 = vector.multi_reduction <maximumf>, %276, %cst_123 [1] : vector<8x8xf32> to vector<8xf32>
    %288 = vector.shape_cast %287 : vector<8xf32> to vector<8x1xf32>
    %289 = vector.broadcast %288 : vector<8x1xf32> to vector<8x8xf32>
    %290 = arith.subf %276, %289 : vector<8x8xf32>
    %cst_124 = arith.constant -5.000000e+04 : f32
    %cst_125 = arith.constant 5.000000e+04 : f32
    %291 = vector.broadcast %cst_124 : f32 to vector<8x8xf32>
    %292 = arith.maximumf %291, %290 : vector<8x8xf32>
    %293 = vector.broadcast %cst_125 : f32 to vector<8x8xf32>
    %294 = arith.minimumf %293, %292 : vector<8x8xf32>
    %295 = math.exp %294 : vector<8x8xf32>
    %cst_126 = arith.constant dense<0.000000e+00> : vector<8xf32>
    %296 = vector.multi_reduction <add>, %295, %cst_126 [1] : vector<8x8xf32> to vector<8xf32>
    %297 = vector.shape_cast %296 : vector<8xf32> to vector<8x1xf32>
    %298 = tpu.reciprocal %297 : vector<8x1xf32> -> vector<8x1xf32>
    %299 = vector.broadcast %298 : vector<8x1xf32> to vector<8x8xf32>
    %300 = arith.mulf %295, %299 : vector<8x8xf32>
    %301 = vector.extract_strided_slice %143 {offsets = [0, 0], sizes = [8, 128], strides = [1, 1]} : vector<8x256xf32> to vector<8x128xf32>
    %302 = vector.extract_strided_slice %140 {offsets = [0, 0], sizes = [8, 128], strides = [1, 1]} : vector<8x256xf32> to vector<8x128xf32>
    %cst_127 = arith.constant dense<0.000000e+00> : vector<8x128xf32>
    %303 = tpu.matmul %286, %301, %cst_127 {dimension_numbers = #tpu.dot_dimension_numbers<[1], [0], [0], [1], [0, 0, 1, 1], [], []>} : vector<8x8xf32>, vector<8x128xf32>, vector<8x128xf32> -> vector<8x128xf32>
    %cst_128 = arith.constant dense<0.000000e+00> : vector<8x128xf32>
    %304 = tpu.matmul %300, %302, %cst_128 {dimension_numbers = #tpu.dot_dimension_numbers<[1], [0], [0], [1], [0, 0, 1, 1], [], []>} : vector<8x8xf32>, vector<8x128xf32>, vector<8x128xf32> -> vector<8x128xf32>
    %305 = vector.broadcast %170 : vector<1x1xf32> to vector<8x8xf32>
    %306 = arith.subf %150, %305 : vector<8x8xf32>
    %cst_129 = arith.constant -5.000000e+04 : f32
    %cst_130 = arith.constant 5.000000e+04 : f32
    %307 = vector.broadcast %cst_129 : f32 to vector<8x8xf32>
    %308 = arith.maximumf %307, %306 : vector<8x8xf32>
    %309 = vector.broadcast %cst_130 : f32 to vector<8x8xf32>
    %310 = arith.minimumf %309, %308 : vector<8x8xf32>
    %311 = vector.broadcast %170 : vector<1x1xf32> to vector<8x8xf32>
    %312 = arith.subf %151, %311 : vector<8x8xf32>
    %cst_131 = arith.constant -5.000000e+04 : f32
    %cst_132 = arith.constant 5.000000e+04 : f32
    %313 = vector.broadcast %cst_131 : f32 to vector<8x8xf32>
    %314 = arith.maximumf %313, %312 : vector<8x8xf32>
    %315 = vector.broadcast %cst_132 : f32 to vector<8x8xf32>
    %316 = arith.minimumf %315, %314 : vector<8x8xf32>
    %cst_133 = arith.constant dense<0xFF800000> : vector<8xf32>
    %317 = vector.multi_reduction <maximumf>, %310, %cst_133 [1] : vector<8x8xf32> to vector<8xf32>
    %318 = vector.shape_cast %317 : vector<8xf32> to vector<8x1xf32>
    %319 = vector.broadcast %318 : vector<8x1xf32> to vector<8x8xf32>
    %320 = arith.subf %310, %319 : vector<8x8xf32>
    %321 = math.exp %320 : vector<8x8xf32>
    %cst_134 = arith.constant dense<0.000000e+00> : vector<8xf32>
    %322 = vector.multi_reduction <add>, %321, %cst_134 [1] : vector<8x8xf32> to vector<8xf32>
    %323 = vector.shape_cast %322 : vector<8xf32> to vector<8x1xf32>
    %324 = tpu.reciprocal %323 : vector<8x1xf32> -> vector<8x1xf32>
    %325 = vector.broadcast %324 : vector<8x1xf32> to vector<8x8xf32>
    %326 = arith.mulf %321, %325 : vector<8x8xf32>
    %cst_135 = arith.constant dense<0xFF800000> : vector<8xf32>
    %327 = vector.multi_reduction <maximumf>, %316, %cst_135 [1] : vector<8x8xf32> to vector<8xf32>
    %328 = vector.shape_cast %327 : vector<8xf32> to vector<8x1xf32>
    %329 = vector.broadcast %328 : vector<8x1xf32> to vector<8x8xf32>
    %330 = arith.subf %316, %329 : vector<8x8xf32>
    %cst_136 = arith.constant -5.000000e+04 : f32
    %cst_137 = arith.constant 5.000000e+04 : f32
    %331 = vector.broadcast %cst_136 : f32 to vector<8x8xf32>
    %332 = arith.maximumf %331, %330 : vector<8x8xf32>
    %333 = vector.broadcast %cst_137 : f32 to vector<8x8xf32>
    %334 = arith.minimumf %333, %332 : vector<8x8xf32>
    %335 = math.exp %334 : vector<8x8xf32>
    %cst_138 = arith.constant dense<0.000000e+00> : vector<8xf32>
    %336 = vector.multi_reduction <add>, %335, %cst_138 [1] : vector<8x8xf32> to vector<8xf32>
    %337 = vector.shape_cast %336 : vector<8xf32> to vector<8x1xf32>
    %338 = tpu.reciprocal %337 : vector<8x1xf32> -> vector<8x1xf32>
    %339 = vector.broadcast %338 : vector<8x1xf32> to vector<8x8xf32>
    %340 = arith.mulf %335, %339 : vector<8x8xf32>
    %341 = vector.extract_strided_slice %143 {offsets = [0, 128], sizes = [8, 128], strides = [1, 1]} : vector<8x256xf32> to vector<8x128xf32>
    %342 = vector.extract_strided_slice %140 {offsets = [0, 128], sizes = [8, 128], strides = [1, 1]} : vector<8x256xf32> to vector<8x128xf32>
    %cst_139 = arith.constant dense<0.000000e+00> : vector<8x128xf32>
    %343 = tpu.matmul %326, %341, %cst_139 {dimension_numbers = #tpu.dot_dimension_numbers<[1], [0], [0], [1], [0, 0, 1, 1], [], []>} : vector<8x8xf32>, vector<8x128xf32>, vector<8x128xf32> -> vector<8x128xf32>
    %cst_140 = arith.constant dense<0.000000e+00> : vector<8x128xf32>
    %344 = tpu.matmul %340, %342, %cst_140 {dimension_numbers = #tpu.dot_dimension_numbers<[1], [0], [0], [1], [0, 0, 1, 1], [], []>} : vector<8x8xf32>, vector<8x128xf32>, vector<8x128xf32> -> vector<8x128xf32>
    %345 = tpu.concatenate %303, %343 in 1 : vector<8x128xf32>, vector<8x128xf32> -> vector<8x256xf32>
    %346 = tpu.concatenate %304, %344 in 1 : vector<8x128xf32>, vector<8x128xf32> -> vector<8x256xf32>
    %cst_141 = arith.constant dense<0.000000e+00> : vector<8x256xf32>
    %347 = tpu.matmul %345, %12, %cst_141 {dimension_numbers = #tpu.dot_dimension_numbers<[1], [0], [0], [1], [0, 0, 1, 1], [], []>} : vector<8x256xf32>, vector<256x256xf32>, vector<8x256xf32> -> vector<8x256xf32>
    %348 = vector.broadcast %13 : vector<1x256xf32> to vector<8x256xf32>
    %349 = arith.addf %347, %348 : vector<8x256xf32>
    %c1_142 = arith.constant 1 : index
    %c0_143 = arith.constant 0 : index
    %c0_144 = arith.constant 0 : index
    %350 = vector.load %arg19[%c1_142, %c0_143, %c0_144] : memref<2x8x256xf32, #tpu.memory_space<vmem>>, vector<1x8x256xf32>
    %351 = vector.shape_cast %350 : vector<1x8x256xf32> to vector<8x256xf32>
    %352 = vector.shape_cast %349 : vector<8x256xf32> to vector<1x8x256xf32>
    tpu.vector_store %arg19[%c1_142, %c0_143, %c0_144], %352 {strides = array<i32>} : memref<2x8x256xf32, #tpu.memory_space<vmem>>, vector<1x8x256xf32>,
    %cst_145 = arith.constant dense<0.000000e+00> : vector<8x256xf32>
    %353 = tpu.matmul %346, %14, %cst_145 {dimension_numbers = #tpu.dot_dimension_numbers<[1], [0], [0], [1], [0, 0, 1, 1], [], []>} : vector<8x256xf32>, vector<256x256xf32>, vector<8x256xf32> -> vector<8x256xf32>
    %354 = vector.broadcast %15 : vector<1x256xf32> to vector<8x256xf32>
    %355 = arith.addf %353, %354 : vector<8x256xf32>
    %c1_146 = arith.constant 1 : index
    %c0_147 = arith.constant 0 : index
    %c0_148 = arith.constant 0 : index
    %356 = vector.load %arg20[%c1_146, %c0_147, %c0_148] : memref<2x8x256xf32, #tpu.memory_space<vmem>>, vector<1x8x256xf32>
    %357 = vector.shape_cast %356 : vector<1x8x256xf32> to vector<8x256xf32>
    %358 = vector.shape_cast %355 : vector<8x256xf32> to vector<1x8x256xf32>
    tpu.vector_store %arg20[%c1_146, %c0_147, %c0_148], %358 {strides = array<i32>} : memref<2x8x256xf32, #tpu.memory_space<vmem>>, vector<1x8x256xf32>,
    return
  }
  func.func @transform_0(%arg0: i32) -> (i32, i32, i32) {
    %c0_i32 = arith.constant 0 : i32
    %c0_i32_0 = arith.constant 0 : i32
    %c0_i32_1 = arith.constant 0 : i32
    %c0_i32_2 = arith.constant 0 : i32
    return %c0_i32, %c0_i32_0, %c0_i32_1 : i32, i32, i32
  }
  func.func @transform_1(%arg0: i32) -> (i32, i32, i32) {
    %c0_i32 = arith.constant 0 : i32
    %c0_i32_0 = arith.constant 0 : i32
    %c0_i32_1 = arith.constant 0 : i32
    %c0_i32_2 = arith.constant 0 : i32
    return %c0_i32, %c0_i32_0, %c0_i32_1 : i32, i32, i32
  }
  func.func @transform_2(%arg0: i32) -> (i32, i32) {
    %c0_i32 = arith.constant 0 : i32
    %c0_i32_0 = arith.constant 0 : i32
    %c0_i32_1 = arith.constant 0 : i32
    return %c0_i32, %c0_i32_0 : i32, i32
  }
  func.func @transform_3(%arg0: i32) -> (i32, i32) {
    %c0_i32 = arith.constant 0 : i32
    %c0_i32_0 = arith.constant 0 : i32
    %c0_i32_1 = arith.constant 0 : i32
    return %c0_i32, %c0_i32_0 : i32, i32
  }
  func.func @transform_4(%arg0: i32) -> (i32, i32) {
    %c0_i32 = arith.constant 0 : i32
    %c0_i32_0 = arith.constant 0 : i32
    %c0_i32_1 = arith.constant 0 : i32
    return %c0_i32, %c0_i32_0 : i32, i32
  }
  func.func @transform_5(%arg0: i32) -> (i32, i32) {
    %c0_i32 = arith.constant 0 : i32
    %c0_i32_0 = arith.constant 0 : i32
    %c0_i32_1 = arith.constant 0 : i32
    return %c0_i32, %c0_i32_0 : i32, i32
  }
  func.func @transform_6(%arg0: i32) -> (i32, i32) {
    %c0_i32 = arith.constant 0 : i32
    %c0_i32_0 = arith.constant 0 : i32
    %c0_i32_1 = arith.constant 0 : i32
    return %c0_i32, %c0_i32_0 : i32, i32
  }
  func.func @transform_7(%arg0: i32) -> (i32, i32) {
    %c0_i32 = arith.constant 0 : i32
    %c0_i32_0 = arith.constant 0 : i32
    %c0_i32_1 = arith.constant 0 : i32
    return %c0_i32, %c0_i32_0 : i32, i32
  }
  func.func @transform_8(%arg0: i32) -> (i32, i32) {
    %c0_i32 = arith.constant 0 : i32
    %c0_i32_0 = arith.constant 0 : i32
    %c0_i32_1 = arith.constant 0 : i32
    return %c0_i32, %c0_i32_0 : i32, i32
  }
  func.func @transform_9(%arg0: i32) -> (i32, i32) {
    %c0_i32 = arith.constant 0 : i32
    %c0_i32_0 = arith.constant 0 : i32
    %c0_i32_1 = arith.constant 0 : i32
    return %c0_i32, %c0_i32_0 : i32, i32
  }
  func.func @transform_10(%arg0: i32) -> (i32, i32) {
    %c0_i32 = arith.constant 0 : i32
    %c0_i32_0 = arith.constant 0 : i32
    %c0_i32_1 = arith.constant 0 : i32
    return %c0_i32, %c0_i32_0 : i32, i32
  }
  func.func @transform_11(%arg0: i32) -> (i32, i32) {
    %c0_i32 = arith.constant 0 : i32
    %c0_i32_0 = arith.constant 0 : i32
    %c0_i32_1 = arith.constant 0 : i32
    return %c0_i32, %c0_i32_0 : i32, i32
  }
  func.func @transform_12(%arg0: i32) -> (i32, i32) {
    %c0_i32 = arith.constant 0 : i32
    %c0_i32_0 = arith.constant 0 : i32
    %c0_i32_1 = arith.constant 0 : i32
    return %c0_i32, %c0_i32_0 : i32, i32
  }
  func.func @transform_13(%arg0: i32) -> (i32, i32) {
    %c0_i32 = arith.constant 0 : i32
    %c0_i32_0 = arith.constant 0 : i32
    %c0_i32_1 = arith.constant 0 : i32
    return %c0_i32, %c0_i32_0 : i32, i32
  }
  func.func @transform_14(%arg0: i32) -> (i32, i32) {
    %c0_i32 = arith.constant 0 : i32
    %c0_i32_0 = arith.constant 0 : i32
    %c0_i32_1 = arith.constant 0 : i32
    return %c0_i32, %c0_i32_0 : i32, i32
  }
  func.func @transform_15(%arg0: i32) -> (i32, i32) {
    %c0_i32 = arith.constant 0 : i32
    %c0_i32_0 = arith.constant 0 : i32
    %c0_i32_1 = arith.constant 0 : i32
    return %c0_i32, %c0_i32_0 : i32, i32
  }
  func.func @transform_16(%arg0: i32) -> (i32, i32) {
    %c0_i32 = arith.constant 0 : i32
    %c0_i32_0 = arith.constant 0 : i32
    %c0_i32_1 = arith.constant 0 : i32
    return %c0_i32, %c0_i32_0 : i32, i32
  }
  func.func @transform_17(%arg0: i32) -> (i32, i32) {
    %c0_i32 = arith.constant 0 : i32
    %c0_i32_0 = arith.constant 0 : i32
    %c0_i32_1 = arith.constant 0 : i32
    return %c0_i32, %c0_i32_0 : i32, i32
  }
  func.func @transform_18(%arg0: i32) -> (i32, i32, i32) {
    %c0_i32 = arith.constant 0 : i32
    %c0_i32_0 = arith.constant 0 : i32
    %c0_i32_1 = arith.constant 0 : i32
    %c0_i32_2 = arith.constant 0 : i32
    return %c0_i32, %c0_i32_0, %c0_i32_1 : i32, i32, i32
  }
  func.func @transform_19(%arg0: i32) -> (i32, i32, i32) {
    %c0_i32 = arith.constant 0 : i32
    %c0_i32_0 = arith.constant 0 : i32
    %c0_i32_1 = arith.constant 0 : i32
    %c0_i32_2 = arith.constant 0 : i32
    return %c0_i32, %c0_i32_0, %c0_i32_1 : i32, i32, i32
  }
}

</mosaic_0001>

<bundles_post_ra>
// kernel: tpu_custom_call.1
= control target key start
LH: loop header
LB: loop body
LE: loop exit
PB: predicated region body
PF: predicated region fallthrough
CT: control target
= control target key end

     0   :  { %s4664_s0 = inlined_call_operand.hbm [shape: f32[2,8,256], index: 0, kind: input, shape index: {}]   ;;  %s4665_s1 = inlined_call_operand.hbm [shape: f32[2,8,256], index: 1, kind: input, shape index: {}]   ;;  %s4666_s2 = inlined_call_operand.hbm [shape: f32[1,256], index: 2, kind: input, shape index: {}]   ;;  %s4667_s3 = inlined_call_operand.vmem [shape: f32[1,256], index: 3, kind: input, shape index: {}]   ;;  %s4668_s4 = inlined_call_operand.hbm [shape: f32[1,256], index: 4, kind: input, shape index: {}]   ;;  %s4669_s5 = inlined_call_operand.vmem [shape: f32[1,256], index: 5, kind: input, shape index: {}]   ;;  %s4670_s6 = inlined_call_operand.hbm [shape: f32[256,256], index: 6, kind: input, shape index: {}]   ;;  %s4671_s7 = inlined_call_operand.vmem [shape: f32[1,256], index: 7, kind: input, shape index: {}]   ;;  %s4672_s8 = inlined_call_operand.hbm [shape: f32[256,256], index: 8, kind: input, shape index: {}]   ;;  %s4673_s9 = inlined_call_operand.vmem [shape: f32[1,256], index: 9, kind: input, shape index: {}]   ;;  %s4674_s10 = inlined_call_operand.hbm [shape: f32[256,256], index: 10, kind: input, shape index: {}]   ;;  %s4675_s11 = inlined_call_operand.vmem [shape: f32[1,256], index: 11, kind: input, shape index: {}]   ;;  %s4676_s12 = inlined_call_operand.hbm [shape: f32[256,256], index: 12, kind: input, shape index: {}]   ;;  %s4677_s13 = inlined_call_operand.vmem [shape: f32[1,256], index: 13, kind: input, shape index: {}]   ;;  %s4678_s14 = inlined_call_operand.hbm [shape: f32[256,256], index: 14, kind: input, shape index: {}]   ;;  %s4679_s15 = inlined_call_operand.vmem [shape: f32[1,256], index: 15, kind: input, shape index: {}]   ;;  %s4680_s16 = inlined_call_operand.hbm [shape: f32[256,256], index: 16, kind: input, shape index: {}]   ;;  %s4681_s17 = inlined_call_operand.vmem [shape: f32[1,256], index: 17, kind: input, shape index: {}]   ;;  %s4682_s18 = inlined_call_operand.hbm [shape: f32[2,8,256], index: 18, kind: output, shape index: {0}]   ;;  %s4683_s19 = inlined_call_operand.hbm [shape: f32[2,8,256], index: 19, kind: output, shape index: {1}]  }
   0x1   :  { %4873 = sst [smem:[#allocation121_spill]] %s4664_s0 }
   0x2   :  { %4874 = sst [smem:[#allocation122_spill]] %s4665_s1 }
   0x3   :  { %4875 = sst [smem:[#allocation123_spill]] %s4666_s2 }
   0x4   :  { %4876 = sst [smem:[#allocation124_spill]] %s4667_s3 }
   0x5   :  { %25 = vsyncpa [#allocation3], 0 }
   0x6   :  { %26 = vsyncpa [#allocation6], 0 }
   0x7   :  { %27 = vsyncpa [#allocation9], 0 }
   0x8   :  { %28 = vsyncpa [#allocation12], 0 }
   0x9   :  { %29 = vsyncpa [#allocation15], 0 }
   0xa   :  { %30 = vsyncpa [#allocation18], 0 }
   0xb   :  { %31 = vsyncpa [#allocation4], 0 }
   0xc   :  { %32 = vsyncpa [#allocation21], 0  ;;  %s4877_s20 = sld [smem:[#allocation122_spill]]  ;;  %s2921_s1 = smov [#allocation5]  }
   0xd   :  { %s52_s22 = sshll.u32 %s2921_s1, 4  ;;  %s77_s24 = sshll.u32 %s4668_s4, 4  ;;  %s53_s22 = int_to_ptr.vmem [resolvable:$true] %s52_s22  ;;  %s78_s24 = int_to_ptr.hbm [resolvable:$true] %s77_s24 }
   0xe   :  { %s2922_s25 = smov 256   ;;  %s2923_s3 = smov 16  }
   0xf   :  { %s2924_s26 = smov [#allocation8]   ;;  %s104_s0 = sshll.u32 %s4672_s8, 4  ;;  %s105_s0 = int_to_ptr.hbm [resolvable:$true] %s104_s0 }
  0x10   :  { %s79_s27 = sshll.u32 %s2924_s26, 4  ;;  %s134_s4 = sshll.u32 %s4676_s12, 4  ;;  %s80_s27 = int_to_ptr.vmem [resolvable:$true] %s79_s27  ;;  %s135_s4 = int_to_ptr.hbm [resolvable:$true] %s134_s4 }
  0x11   :  { %82 = dma.hbm_to_vmem [thread:$0]  %s78_s24, 32, %s80_s27, [#allocation9]  }
  0x12   :  { %s50_s21 = sshll.u32 %s4877_s20, 4  ;;  %s2925_s1 = smov [#allocation11]   ;;  %s51_s21 = int_to_ptr.hbm [resolvable:$true] %s50_s21 }
  0x13   :  { %58 = dma.hbm_to_vmem [thread:$0]  %s51_s21, 512, %s53_s22, [#allocation6], %s2922_s25, %s2922_s25, %s2923_s3  }
  0x14   :  { %s106_s2 = sshll.u32 %s2925_s1, 4  ;;  %s2926_s21 = smov [#allocation14]   ;;  %s107_s2 = int_to_ptr.vmem [resolvable:$true] %s106_s2 }
  0x15   :  { %112 = dma.hbm_to_vmem [thread:$0]  %s105_s0, 8192, %s107_s2, [#allocation12], %s2922_s25, %s2922_s25, %s2923_s3  }
  0x16   :  { %s136_s22 = sshll.u32 %s2926_s21, 4  ;;  %s4878_s8 = sld [smem:[#allocation121_spill]]  ;;  %s137_s22 = int_to_ptr.vmem [resolvable:$true] %s136_s22 }
  0x17   :  { %142 = dma.hbm_to_vmem [thread:$0]  %s135_s4, 8192, %s137_s22, [#allocation15], %s2922_s25, %s2922_s25, %s2923_s3  }
  0x18   :  { %s4879_s27 = sld [smem:[#allocation123_spill]]  ;;  %s2927_s30 = smov [#allocation2]  }
  0x19   :  { %s39_s20 = sshll.u32 %s2927_s30, 4  ;;  %s2928_s0 = smov [#allocation7]   ;;  %s40_s20 = int_to_ptr.vmem [resolvable:$true] %s39_s20 }
  0x1a   :  { %s66_s1 = sshll.u32 %s2928_s0, 4  ;;  %s89_s23 = sshll.u32 %s4670_s6, 4  ;;  %s67_s1 = int_to_ptr.vmem [resolvable:$true] %s66_s1  ;;  %s90_s23 = int_to_ptr.hbm [resolvable:$true] %s89_s23 }
  0x1b   :  { %s119_s26 = sshll.u32 %s4674_s10, 4  ;;  %s149_s6 = sshll.u32 %s4678_s14, 4  ;;  %s120_s26 = int_to_ptr.hbm [resolvable:$true] %s119_s26  ;;  %s150_s6 = int_to_ptr.hbm [resolvable:$true] %s149_s6 }
  0x1c   :  { %s37_s28 = sshll.u32 %s4878_s8, 4  ;;  %s2929_s8 = smov [#allocation10]   ;;  %s38_s28 = int_to_ptr.hbm [resolvable:$true] %s37_s28 }
  0x1d   :  { %45 = dma.hbm_to_vmem [thread:$0]  %s38_s28, 512, %s40_s20, [#allocation3], %s2922_s25, %s2922_s25, %s2923_s3  }
  0x1e   :  { %s64_s29 = sshll.u32 %s4879_s27, 4  ;;  %s91_s12 = sshll.u32 %s2929_s8, 4  ;;  %s65_s29 = int_to_ptr.hbm [resolvable:$true] %s64_s29  ;;  %s92_s12 = int_to_ptr.vmem [resolvable:$true] %s91_s12 }
  0x1f   :  { %69 = dma.hbm_to_vmem [thread:$0]  %s65_s29, 32, %s67_s1, [#allocation6]  }
  0x20   :  { %97 = dma.hbm_to_vmem [thread:$0]  %s90_s23, 8192, %s92_s12, [#allocation9], %s2922_s25, %s2922_s25, %s2923_s3  }
  0x21   :  { %s2930_s28 = smov [#allocation13]   ;;  %s164_s20 = sshll.u32 %s4680_s16, 4  ;;  %s165_s20 = int_to_ptr.hbm [resolvable:$true] %s164_s20 }
  0x22   :  { %s121_s24 = sshll.u32 %s2930_s28, 4  ;;  %s2931_s0 = smov [#allocation16]   ;;  %s122_s24 = int_to_ptr.vmem [resolvable:$true] %s121_s24 }
  0x23   :  { %127 = dma.hbm_to_vmem [thread:$0]  %s120_s26, 8192, %s122_s24, [#allocation12], %s2922_s25, %s2922_s25, %s2923_s3  }
  0x24   :  { %s151_s1 = sshll.u32 %s2931_s0, 4  ;;  %s2932_s2 = smov [#allocation17]   ;;  %s152_s1 = int_to_ptr.vmem [resolvable:$true] %s151_s1 }
  0x25   :  { %157 = dma.hbm_to_vmem [thread:$0]  %s150_s6, 8192, %s152_s1, [#allocation15], %s2922_s25, %s2922_s25, %s2923_s3  }
  0x26   :  { %s166_s14 = sshll.u32 %s2932_s2, 4  ;;  %s167_s14 = int_to_ptr.vmem [resolvable:$true] %s166_s14 }
  0x27   :  { %172 = dma.hbm_to_vmem [thread:$0]  %s165_s20, 8192, %s167_s14, [#allocation18], %s2922_s25, %s2922_s25, %s2923_s3  }
  0x28   :  { %2905 = dma.done.wait [#allocation3], 512  }
  0x29   :  { %2906 = vsyncadd [#allocation3], 4294966784 }
  0x2a   :  { %2907 = dma.done.wait [#allocation6], 544  }
  0x2b   :  { %2908 = vsyncadd [#allocation6], 4294966752 }
  0x2c   :  { %2909 = dma.done.wait [#allocation9], 8224  }
  0x2d   :  { %2910 = vsyncadd [#allocation9], 4294959072 }
  0x2e   :  { %2911 = dma.done.wait [#allocation12], 16384  }
  0x2f   :  { %2912 = vsyncadd [#allocation12], 4294950912 }
  0x30   :  { %2913 = dma.done.wait [#allocation15], 16384  }
  0x31   :  { %2914 = vsyncadd [#allocation15], 4294950912 }
  0x32   :  { %2915 = dma.done.wait [#allocation18], 8192  }
  0x33   :  { %2916 = vsyncadd [#allocation18], 4294959104  ;;  %v3090_v0 = vld [vmem:[#allocation2] sm:$0xff]  ;;  %v3092_v1 = vld [vmem:[#allocation2 + $0x8] sm:$0xff]  ;;  %v2933_v12 = vmov 256.0   ;;  %s4880_s23 = sld [smem:[#allocation124_spill]] }
  0x34   :  { %v611_v2 = vadd.f32 %v3092_v1, %v3090_v0  ;;  %v3096_v3 = vld [vmem:[#allocation2 + $0x10] sm:$0xff]  ;;  %v3098_v4 = vld [vmem:[#allocation2 + $0x18] sm:$0xff]  ;;  %v3102_v6 = vld [vmem:[#allocation5] sm:$0xff]  ;;  %2447 = vrcp.f32 %v2933_v12  ;;  %vm1582_vm13 = vcmask 64512   ;;  %s2376_s29 = sshll.u32 %s4682_s18, 4  ;;  %s2935_s20 = smov [#allocation20]   ;;  %s2377_s29 = int_to_ptr.hbm [resolvable:$true] %s2376_s29 }
  0x35   :  { %v1121_v5 = vadd.f32 %v3098_v4, %v3096_v3  ;;  %v3104_v7 = vld [vmem:[#allocation5 + $0x8] sm:$0xff]  ;;  %v3106_v8 = vld [vmem:[#allocation5 + $0x10] sm:$0xff]  ;;  %v3108_v9 = vld [vmem:[#allocation5 + $0x18] sm:$0xff]  ;;  %s2387_s0 = sshll.u32 %s2935_s20, 4  ;;  %s2389_s18 = sshll.u32 %s4683_s19, 4  ;;  %s2388_s0 = int_to_ptr.vmem [resolvable:$true] %s2387_s0  ;;  %s2390_s18 = int_to_ptr.hbm [resolvable:$true] %s2389_s18 }
  0x36   :  { %612 = vadd.xlane.f32.xlu0 %v611_v2  ;;  %v659_v10 = vadd.f32 %v3104_v7, %v3102_v6  ;;  %v1153_v11 = vadd.f32 %v3108_v9, %v3106_v8  ;;  %v249_v17 = vld [vmem:[#allocation10 + $0xf0] sm:$0xff]  ;;  %v250_v19 = vld [vmem:[#allocation10 + $0xf8] sm:$0xff]  ;;  %v247_v22 = vld [vmem:[#allocation10 + $0xe0] sm:$0xff] }
  0x37   :  { %1122 = vadd.xlane.f32.xlu2 %v1121_v5  ;;  %v281_v18 = vld [vmem:[#allocation10 + $0x1f0] sm:$0xff]  ;;  %703 = vmatpush.msra.mxu0 %v249_v17  ;;  %v282_v21 = vld [vmem:[#allocation10 + $0x1f8] sm:$0xff]  ;;  %v279_v23 = vld [vmem:[#allocation10 + $0x1e0] sm:$0xff] }
  0x38   :  { %723 = vmatpush.msra.mxu1 %v281_v18  ;;  %743 = vmatpush.msra.mxu2 %v250_v19  ;;  %v248_v24 = vld [vmem:[#allocation10 + $0xe8] sm:$0xff]  ;;  %v245_v26 = vld [vmem:[#allocation10 + $0xd0] sm:$0xff]  ;;  %v246_v28 = vld [vmem:[#allocation10 + $0xd8] sm:$0xff] }
  0x39   :  { %763 = vmatpush.msra.mxu3 %v282_v21  ;;  %v280_v25 = vld [vmem:[#allocation10 + $0x1e8] sm:$0xff]  ;;  %704 = vmatpush.msra.mxu0 %v247_v22  ;;  %v277_v27 = vld [vmem:[#allocation10 + $0x1d0] sm:$0xff]  ;;  %v278_v29 = vld [vmem:[#allocation10 + $0x1d8] sm:$0xff] }
  0x3a   :  { %v2448_v13 = vpop.eup %2447  ;;  %724 = vmatpush.msra.mxu1 %v279_v23  ;;  %744 = vmatpush.msra.mxu2 %v248_v24  ;;  %v243_v30 = vld [vmem:[#allocation10 + $0xc0] sm:$0xff]  ;;  %v244_v33 = vld [vmem:[#allocation10 + $0xc8] sm:$0xff]  ;;  %v241_v35 = vld [vmem:[#allocation10 + $0xb0] sm:$0xff] }
  0x3b   :  { %v615_v14 = vmul.f32 256.0, %v2448_v13  ;;  %vm619_vm0 = vweird.f32 %v2448_v13  ;;  %764 = vmatpush.msra.mxu3 %v280_v25  ;;  %v275_v31 = vld [vmem:[#allocation10 + $0x1c0] sm:$0xff]  ;;  %705 = vmatpush.msra.mxu0 %v245_v26  ;;  %v276_v34 = vld [vmem:[#allocation10 + $0x1c8] sm:$0xff]  ;;  %v273_v36 = vld [vmem:[#allocation10 + $0x1b0] sm:$0xff] }
  0x3c   :  { %725 = vmatpush.msra.mxu1 %v277_v27  ;;  %745 = vmatpush.msra.mxu2 %v246_v28  ;;  %v242_v38 = vld [vmem:[#allocation10 + $0xb8] sm:$0xff]  ;;  %v239_v42 = vld [vmem:[#allocation10 + $0xa0] sm:$0xff]  ;;  %v240_v45 = vld [vmem:[#allocation10 + $0xa8] sm:$0xff] }
  0x3d   :  { %v616_v15 = vsub.f32 1.0, %v615_v14  ;;  %765 = vmatpush.msra.mxu3 %v278_v29  ;;  %706 = vmatpush.msra.mxu0 %v243_v30  ;;  %v274_v39 = vld [vmem:[#allocation10 + $0x1b8] sm:$0xff]  ;;  %v271_v43 = vld [vmem:[#allocation10 + $0x1a0] sm:$0xff]  ;;  %v272_v46 = vld [vmem:[#allocation10 + $0x1a8] sm:$0xff] }
  0x3e   :  { %660 = vadd.xlane.f32.xlu0 %v659_v10  ;;  %726 = vmatpush.msra.mxu1 %v275_v31  ;;  %v237_v49 = vld [vmem:[#allocation10 + $0x90] sm:$0xff]  ;;  %v238_v53 = vld [vmem:[#allocation10 + $0x98] sm:$0xff]  ;;  %v235_v57 = vld [vmem:[#allocation10 + $0x80] sm:$0xff] }
  0x3f   :  { %1154 = vadd.xlane.f32.xlu2 %v1153_v11  ;;  %v617_v16 = vmul.f32 %v2448_v13, %v616_v15  ;;  %746 = vmatpush.msra.mxu2 %v244_v33  ;;  %v269_v50 = vld [vmem:[#allocation10 + $0x190] sm:$0xff]  ;;  %v270_v54 = vld [vmem:[#allocation10 + $0x198] sm:$0xff]  ;;  %v267_v58 = vld [vmem:[#allocation10 + $0x180] sm:$0xff] }
  0x40   :  { %766 = vmatpush.msra.mxu3 %v276_v34  ;;  %707 = vmatpush.msra.mxu0 %v241_v35  ;;  %v236_v61 = vld [vmem:[#allocation10 + $0x88] sm:$0xff]  ;;  %v233_v2 = vld [vmem:[#allocation10 + $0x70] sm:$0xff]  ;;  %v234_v10 = vld [vmem:[#allocation10 + $0x78] sm:$0xff] }
  0x41   :  { %v618_v20 = vadd.f32 %v2448_v13, %v617_v16  ;;  %727 = vmatpush.msra.mxu1 %v273_v36  ;;  %747 = vmatpush.msra.mxu2 %v242_v38  ;;  %v268_v63 = vld [vmem:[#allocation10 + $0x188] sm:$0xff]  ;;  %v266_v11 = vld [vmem:[#allocation10 + $0x178] sm:$0xff]  ;;  %v263_v14 = vld [vmem:[#allocation10 + $0x160] sm:$0xff] }
  0x42   :  { %767 = vmatpush.msra.mxu3 %v274_v39  ;;  %708 = vmatpush.msra.mxu0 %v239_v42  ;;  %v232_v17 = vld [vmem:[#allocation10 + $0x68] sm:$0xff]  ;;  %v261_v21 = vld [vmem:[#allocation10 + $0x150] sm:$0xff]  ;;  %v230_v23 = vld [vmem:[#allocation10 + $0x58] sm:$0xff] }
  0x43   :  { %v3114_v32 = vsel %vm619_vm0, %v2448_v13, %v618_v20  ;;  %728 = vmatpush.msra.mxu1 %v271_v43  ;;  %748 = vmatpush.msra.mxu2 %v240_v45  ;;  %v231_v13 = vld [vmem:[#allocation10 + $0x60] sm:$0xff]  ;;  %v264_v18 = vld [vmem:[#allocation10 + $0x168] sm:$0xff]  ;;  %v229_v20 = vld [vmem:[#allocation10 + $0x50] sm:$0xff] }
  0x44   :  { %768 = vmatpush.msra.mxu3 %v272_v46  ;;  %709 = vmatpush.msra.mxu0 %v237_v49  ;;  %v262_v24 = vld [vmem:[#allocation10 + $0x158] sm:$0xff]  ;;  %v259_v26 = vld [vmem:[#allocation10 + $0x140] sm:$0xff]  ;;  %v228_v27 = vld [vmem:[#allocation10 + $0x48] sm:$0xff] }
  0x45   :  { %729 = vmatpush.msra.mxu1 %v269_v50  ;;  %749 = vmatpush.msra.mxu2 %v238_v53  ;;  %v260_v28 = vld [vmem:[#allocation10 + $0x148] sm:$0xff]  ;;  %v225_v29 = vld [vmem:[#allocation10 + $0x30] sm:$0xff]  ;;  %v226_v33 = vld [vmem:[#allocation10 + $0x38] sm:$0xff] }
  0x46   :  { %769 = vmatpush.msra.mxu3 %v270_v54  ;;  %710 = vmatpush.msra.mxu0 %v235_v57  ;;  %v257_v31 = vld [vmem:[#allocation10 + $0x130] sm:$0xff]  ;;  %v258_v34 = vld [vmem:[#allocation10 + $0x138] sm:$0xff]  ;;  %v223_v35 = vld [vmem:[#allocation10 + $0x20] sm:$0xff] }
  0x47   :  { %730 = vmatpush.msra.mxu1 %v267_v58  ;;  %750 = vmatpush.msra.mxu2 %v236_v61  ;;  %v255_v36 = vld [vmem:[#allocation10 + $0x120] sm:$0xff]  ;;  %v256_v38 = vld [vmem:[#allocation10 + $0x128] sm:$0xff]  ;;  %v221_v39 = vld [vmem:[#allocation10 + $0x10] sm:$0xff] }
  0x48   :  { %770 = vmatpush.msra.mxu3 %v268_v63  ;;  %711 = vmatpush.msra.mxu0 %v233_v2  ;;  %v222_v42 = vld [vmem:[#allocation10 + $0x18] sm:$0xff]  ;;  %v251_v45 = vld [vmem:[#allocation10 + $0x100] sm:$0xff]  ;;  %v220_v46 = vld [vmem:[#allocation10 + $0x8] sm:$0xff] }
  0x49   :  { %751 = vmatpush.msra.mxu2 %v234_v10  ;;  %v254_v43 = vld [vmem:[#allocation10 + $0x118] sm:$0xff]  ;;  %v252_v49 = vld [vmem:[#allocation10 + $0x108] sm:$0xff]  ;;  %v314_v50 = vld [vmem:[#allocation11 + $0xf0] sm:$0xff] }
  0x4a   :  { %771 = vmatpush.msra.mxu3 %v266_v11  ;;  %712 = vmatpush.msra.mxu0 %v231_v13  ;;  %v346_v53 = vld [vmem:[#allocation11 + $0x1f0] sm:$0xff]  ;;  %v315_v54 = vld [vmem:[#allocation11 + $0xf8] sm:$0xff]  ;;  %v344_v57 = vld [vmem:[#allocation11 + $0x1e0] sm:$0xff] }
  0x4b   :  { %752 = vmatpush.msra.mxu2 %v232_v17  ;;  %v313_v58 = vld [vmem:[#allocation11 + $0xe8] sm:$0xff]  ;;  %v342_v61 = vld [vmem:[#allocation11 + $0x1d0] sm:$0xff]  ;;  %v343_v63 = vld [vmem:[#allocation11 + $0x1d8] sm:$0xff] }
  0x4c   :  { %772 = vmatpush.msra.mxu3 %v264_v18  ;;  %713 = vmatpush.msra.mxu0 %v229_v20  ;;  %v309_v2 = vld [vmem:[#allocation11 + $0xc8] sm:$0xff]  ;;  %v307_v10 = vld [vmem:[#allocation11 + $0xb8] sm:$0xff]  ;;  %v336_v13 = vld [vmem:[#allocation11 + $0x1a0] sm:$0xff] }
  0x4d   :  { %753 = vmatpush.msra.mxu2 %v230_v23  ;;  %v339_v11 = vld [vmem:[#allocation11 + $0x1b8] sm:$0xff]  ;;  %v337_v17 = vld [vmem:[#allocation11 + $0x1a8] sm:$0xff]  ;;  %v302_v18 = vld [vmem:[#allocation11 + $0x90] sm:$0xff] }
  0x4e   :  { %773 = vmatpush.msra.mxu3 %v262_v24  ;;  %v334_v20 = vld [vmem:[#allocation11 + $0x190] sm:$0xff]  ;;  %v332_v23 = vld [vmem:[#allocation11 + $0x180] sm:$0xff]  ;;  %v301_v24 = vld [vmem:[#allocation11 + $0x88] sm:$0xff] }
  0x4f   :  { %754 = vmatpush.msra.mxu2 %v228_v27  ;;  %v299_v27 = vld [vmem:[#allocation11 + $0x78] sm:$0xff] }
  0x50   :  { %774 = vmatpush.msra.mxu3 %v260_v28  ;;  %v331_v28 = vld [vmem:[#allocation11 + $0x178] sm:$0xff] }
  0x51   :  { %755 = vmatpush.msra.mxu2 %v226_v33  ;;  %v294_v33 = vld [vmem:[#allocation11 + $0x50] sm:$0xff] }
  0x52   :  { %775 = vmatpush.msra.mxu3 %v258_v34  ;;  %v326_v34 = vld [vmem:[#allocation11 + $0x150] sm:$0xff] }
  0x54   :  { %776 = vmatpush.msra.mxu3 %v256_v38  ;;  %v324_v38 = vld [vmem:[#allocation11 + $0x140] sm:$0xff] }
  0x56   :  { %777 = vmatpush.msra.mxu3 %v254_v43  ;;  %v291_v43 = vld [vmem:[#allocation11 + $0x38] sm:$0xff] }
  0x58   :  { %778 = vmatpush.msra.mxu3 %v252_v49  ;;  %v289_v49 = vld [vmem:[#allocation11 + $0x28] sm:$0xff] }
  0xa9   :  { %v613_v37 = vpop.xlane.xlu0 %612 }
  0xaa   :  { %v621_v40 = vmul.f32 %v3114_v32, %v613_v37  ;;  %v1123_v41 = vpop.xlane.xlu2 %1122  ;;  %v224_v37 = vld [vmem:[#allocation10 + $0x28] sm:$0xff] }
  0xab   :  { %v1124_v44 = vmul.f32 %v1123_v41, %v3114_v32  ;;  %v253_v41 = vld [vmem:[#allocation10 + $0x110] sm:$0xff]  ;;  %756 = vmatpush.msra.mxu2 %v224_v37  ;;  %v292_v37 = vld [vmem:[#allocation11 + $0x40] sm:$0xff] }
  0xac   :  { %v3119_v47 = vsub.f32 %v3090_v0, %v621_v40  ;;  %v3122_v48 = vsub.f32 %v3092_v1, %v621_v40 }
  0xad   :  { %v3125_v51 = vsub.f32 %v3096_v3, %v1124_v44  ;;  %v3128_v52 = vsub.f32 %v3098_v4, %v1124_v44  ;;  %v265_v3 = vld [vmem:[#allocation10 + $0x170] sm:$0xff]  ;;  %v219_v44 = vld [vmem:[#allocation10] sm:$0xff]  ;;  %757 = vmatpush.msra.mxu2 %v222_v42 }
  0xae   :  { %v624_v55 = vmul.f32 %v3119_v47, %v3119_v47  ;;  %v625_v56 = vmul.f32 %v3122_v48, %v3122_v48  ;;  %731 = vmatpush.msra.mxu1 %v265_v3  ;;  %v341_v3 = vld [vmem:[#allocation11 + $0x1c8] sm:$0xff]  ;;  %v322_v42 = vld [vmem:[#allocation11 + $0x130] sm:$0xff] }
  0xaf   :  { %v1127_v59 = vmul.f32 %v3125_v51, %v3125_v51  ;;  %v1128_v60 = vmul.f32 %v3128_v52, %v3128_v52  ;;  %758 = vmatpush.msra.mxu2 %v220_v46  ;;  %v320_v46 = vld [vmem:[#allocation11 + $0x120] sm:$0xff] }
  0xb0   :  { %v626_v62 = vadd.f32 %v625_v56, %v624_v55  ;;  %732 = vmatpush.msra.mxu1 %v263_v14  ;;  %v347_v55 = vld [vmem:[#allocation11 + $0x1f8] sm:$0xff]  ;;  %v312_v56 = vld [vmem:[#allocation11 + $0xe0] sm:$0xff]  ;;  %v305_v14 = vld [vmem:[#allocation11 + $0xa8] sm:$0xff] }
  0xb1   :  { %v661_v0 = vpop.xlane.xlu0 %660  ;;  %v1129_v1 = vadd.f32 %v1128_v60, %v1127_v59  ;;  %828 = vmatpush.msrb.mxu2 %v315_v54  ;;  %848 = vmatpush.msrb.mxu3 %v347_v55  ;;  %v345_v59 = vld [vmem:[#allocation11 + $0x1e8] sm:$0xff]  ;;  %v310_v60 = vld [vmem:[#allocation11 + $0xd0] sm:$0xff]  ;;  %v287_v55 = vld [vmem:[#allocation11 + $0x18] sm:$0xff] }
  0xb2   :  { %v662_v4 = vmul.f32 %v661_v0, %v3114_v32  ;;  %627 = vadd.xlane.f32.xlu1 %v626_v62  ;;  %v1155_v5 = vpop.xlane.xlu2 %1154  ;;  %733 = vmatpush.msra.mxu1 %v261_v21  ;;  %v311_v62 = vld [vmem:[#allocation11 + $0xd8] sm:$0xff]  ;;  %v308_v0 = vld [vmem:[#allocation11 + $0xc0] sm:$0xff]  ;;  %v318_v54 = vld [vmem:[#allocation11 + $0x110] sm:$0xff] }
  0xb3   :  { %v1156_v12 = vmul.f32 %v1155_v5, %v3114_v32  ;;  %1130 = vadd.xlane.f32.xlu0 %v1129_v1  ;;  %829 = vmatpush.msrb.mxu2 %v313_v58  ;;  %v340_v1 = vld [vmem:[#allocation11 + $0x1c0] sm:$0xff]  ;;  %v338_v5 = vld [vmem:[#allocation11 + $0x1b0] sm:$0xff]  ;;  %v303_v21 = vld [vmem:[#allocation11 + $0x98] sm:$0xff] }
  0xb4   :  { %v3141_v15 = vsub.f32 %v3102_v6, %v662_v4  ;;  %v3144_v16 = vsub.f32 %v3104_v7, %v662_v4  ;;  %734 = vmatpush.msra.mxu1 %v259_v26  ;;  %849 = vmatpush.msrb.mxu3 %v345_v59  ;;  %v306_v4 = vld [vmem:[#allocation11 + $0xb0] sm:$0xff]  ;;  %v316_v58 = vld [vmem:[#allocation11 + $0x100] sm:$0xff]  ;;  %v285_v59 = vld [vmem:[#allocation11 + $0x8] sm:$0xff] }
  0xb5   :  { %v3147_v19 = vsub.f32 %v3106_v8, %v1156_v12  ;;  %v3154_v7 = vsub.f32 %v3108_v9, %v1156_v12  ;;  %v227_v8 = vld [vmem:[#allocation10 + $0x40] sm:$0xff]  ;;  %830 = vmatpush.msrb.mxu2 %v311_v62  ;;  %v330_v26 = vld [vmem:[#allocation11 + $0x170] sm:$0xff] }
  0xb6   :  { %v665_v22 = vmul.f32 %v3141_v15, %v3141_v15  ;;  %v666_v6 = vmul.f32 %v3144_v16, %v3144_v16  ;;  %714 = vmatpush.msra.mxu0 %v227_v8  ;;  %735 = vmatpush.msra.mxu1 %v257_v31  ;;  %v304_v12 = vld [vmem:[#allocation11 + $0xa0] sm:$0xff]  ;;  %v333_v8 = vld [vmem:[#allocation11 + $0x188] sm:$0xff] }
  0xb7   :  { %v1159_v9 = vmul.f32 %v3147_v19, %v3147_v19  ;;  %v1160_v30 = vmul.f32 %v3154_v7, %v3154_v7  ;;  %850 = vmatpush.msrb.mxu3 %v343_v63  ;;  %831 = vmatpush.msrb.mxu2 %v309_v2  ;;  %v329_v31 = vld [vmem:[#allocation11 + $0x168] sm:$0xff] }
  0xb8   :  { %v667_v25 = vadd.f32 %v666_v6, %v665_v22  ;;  %715 = vmatpush.msra.mxu0 %v225_v29  ;;  %736 = vmatpush.msra.mxu1 %v255_v36  ;;  %v335_v22 = vld [vmem:[#allocation11 + $0x198] sm:$0xff]  ;;  %v300_v6 = vld [vmem:[#allocation11 + $0x80] sm:$0xff] }
  0xb9   :  { %v1161_v40 = vadd.f32 %v1160_v30, %v1159_v9  ;;  %851 = vmatpush.msrb.mxu3 %v341_v3  ;;  %832 = vmatpush.msrb.mxu2 %v307_v10  ;;  %v296_v29 = vld [vmem:[#allocation11 + $0x60] sm:$0xff]  ;;  %v297_v30 = vld [vmem:[#allocation11 + $0x68] sm:$0xff]  ;;  %v327_v36 = vld [vmem:[#allocation11 + $0x158] sm:$0xff] }
  0xba   :  { %668 = vadd.xlane.f32.xlu1 %v667_v25  ;;  %716 = vmatpush.msra.mxu0 %v223_v35  ;;  %v298_v25 = vld [vmem:[#allocation11 + $0x70] sm:$0xff]  ;;  %v328_v9 = vld [vmem:[#allocation11 + $0x160] sm:$0xff]  ;;  %v295_v35 = vld [vmem:[#allocation11 + $0x58] sm:$0xff] }
  0xbb   :  { %737 = vmatpush.msra.mxu1 %v253_v41  ;;  %852 = vmatpush.msrb.mxu3 %v339_v11  ;;  %v290_v41 = vld [vmem:[#allocation11 + $0x30] sm:$0xff] }
  0xbc   :  { %717 = vmatpush.msra.mxu0 %v221_v39  ;;  %833 = vmatpush.msrb.mxu2 %v305_v14  ;;  %v293_v39 = vld [vmem:[#allocation11 + $0x48] sm:$0xff] }
  0xbd   :  { %738 = vmatpush.msra.mxu1 %v251_v45  ;;  %853 = vmatpush.msrb.mxu3 %v337_v17  ;;  %v288_v45 = vld [vmem:[#allocation11 + $0x20] sm:$0xff] }
  0xbe   :  { %718 = vmatpush.msra.mxu0 %v219_v44  ;;  %834 = vmatpush.msrb.mxu2 %v303_v21  ;;  %v323_v44 = vld [vmem:[#allocation11 + $0x138] sm:$0xff] }
  0xbf   :  { %808 = vmatpush.msrb.mxu1 %v346_v53  ;;  %854 = vmatpush.msrb.mxu3 %v335_v22  ;;  %v286_v53 = vld [vmem:[#allocation11 + $0x10] sm:$0xff] }
  0xc0   :  { %788 = vmatpush.msrb.mxu0 %v314_v50  ;;  %835 = vmatpush.msrb.mxu2 %v301_v24  ;;  %v321_v50 = vld [vmem:[#allocation11 + $0x128] sm:$0xff] }
  0xc1   :  { %809 = vmatpush.msrb.mxu1 %v344_v57  ;;  %855 = vmatpush.msrb.mxu3 %v333_v8  ;;  %v284_v57 = vld [vmem:[#allocation11] sm:$0xff] }
  0xc2   :  { %1162 = vadd.xlane.f32.xlu1 %v1161_v40  ;;  %789 = vmatpush.msrb.mxu0 %v312_v56  ;;  %v325_v40 = vld [vmem:[#allocation11 + $0x148] sm:$0xff]  ;;  %v319_v56 = vld [vmem:[#allocation11 + $0x118] sm:$0xff] }
  0xc3   :  { %810 = vmatpush.msrb.mxu1 %v342_v61  ;;  %836 = vmatpush.msrb.mxu2 %v299_v27 }
  0xc4   :  { %790 = vmatpush.msrb.mxu0 %v310_v60  ;;  %856 = vmatpush.msrb.mxu3 %v331_v28  ;;  %v317_v60 = vld [vmem:[#allocation11 + $0x108] sm:$0xff] }
  0xc5   :  { %811 = vmatpush.msrb.mxu1 %v340_v1  ;;  %837 = vmatpush.msrb.mxu2 %v297_v30  ;;  %v3192_v30 = vld [vmem:[%s4669_s5] sm:$0x3] }
  0xc6   :  { %791 = vmatpush.msrb.mxu0 %v308_v0  ;;  %857 = vmatpush.msrb.mxu3 %v329_v31 }
  0xc7   :  { %812 = vmatpush.msrb.mxu1 %v338_v5  ;;  %838 = vmatpush.msrb.mxu2 %v295_v35 }
  0xc8   :  { %792 = vmatpush.msrb.mxu0 %v306_v4  ;;  %858 = vmatpush.msrb.mxu3 %v327_v36  ;;  %v3200_v36 = vld [vmem:[#allocation13 + $0xf8] sm:$0xff] }
  0xc9   :  { %813 = vmatpush.msrb.mxu1 %v336_v13  ;;  %839 = vmatpush.msrb.mxu2 %v293_v39 }
  0xca   :  { %793 = vmatpush.msrb.mxu0 %v304_v12  ;;  %859 = vmatpush.msrb.mxu3 %v325_v40  ;;  %v3162_v12 = vld [vmem:[#allocation7] sm:$0x3] }
  0xcb   :  { %814 = vmatpush.msrb.mxu1 %v334_v20  ;;  %840 = vmatpush.msrb.mxu2 %v291_v43  ;;  %v4690_v20 = vperm.slane %v3162_v12, 0  ;;  %v4691_v21 = vperm.slane %v3162_v12, 1  ;;  %v3211_v43 = vld [vmem:[#allocation13 + $0x1e0] sm:$0xff] }
  0xcc   :  { %794 = vmatpush.msrb.mxu0 %v302_v18  ;;  %860 = vmatpush.msrb.mxu3 %v323_v44  ;;  %v3167_v18 = vld [vmem:[%s4880_s23] sm:$0x3]  ;;  %v4684_v44 = vperm.slane %v3192_v30, 0 }
  0xcd   :  { %815 = vmatpush.msrb.mxu1 %v332_v23  ;;  %841 = vmatpush.msrb.mxu2 %v289_v49  ;;  %v4688_v8 = vperm.slane %v3167_v18, 0  ;;  %v3218_v49 = vld [vmem:[#allocation13 + $0xe8] sm:$0xff] }
  0xce   :  { %795 = vmatpush.msrb.mxu0 %v300_v6  ;;  %861 = vmatpush.msrb.mxu3 %v321_v50  ;;  %v3220_v50 = vld [vmem:[#allocation13 + $0x1e8] sm:$0xff] }
  0xcf   :  { %816 = vmatpush.msrb.mxu1 %v330_v26  ;;  %842 = vmatpush.msrb.mxu2 %v287_v55  ;;  %v3227_v55 = vld [vmem:[#allocation13 + $0xd0] sm:$0xff] }
  0xd0   :  { %796 = vmatpush.msrb.mxu0 %v298_v25  ;;  %862 = vmatpush.msrb.mxu3 %v319_v56  ;;  %v4689_v25 = vperm.slane %v3167_v18, 1  ;;  %v3235_v56 = vld [vmem:[#allocation13 + $0x1d8] sm:$0xff] }
  0xd1   :  { %817 = vmatpush.msrb.mxu1 %v328_v9  ;;  %843 = vmatpush.msrb.mxu2 %v285_v59  ;;  %v3179_v9 = vld [vmem:[#allocation8] sm:$0x3]  ;;  %v3244_v59 = vld [vmem:[#allocation13 + $0xc0] sm:$0xff] }
  0xd2   :  { %797 = vmatpush.msrb.mxu0 %v296_v29  ;;  %863 = vmatpush.msrb.mxu3 %v317_v60  ;;  %v4687_v39 = vperm.slane %v3179_v9, 1  ;;  %v3246_v60 = vld [vmem:[#allocation13 + $0x1c0] sm:$0xff] }
  0xd3   :  { %818 = vmatpush.msrb.mxu1 %v326_v34  ;;  %v3196_v34 = vld [vmem:[#allocation13 + $0x1f0] sm:$0xff] }
  0xd4   :  { %798 = vmatpush.msrb.mxu0 %v294_v33  ;;  %v3194_v33 = vld [vmem:[#allocation13 + $0xf0] sm:$0xff] }
  0xd5   :  { %819 = vmatpush.msrb.mxu1 %v324_v38  ;;  %v4686_v38 = vperm.slane %v3179_v9, 0 }
  0xd6   :  { %799 = vmatpush.msrb.mxu0 %v292_v37  ;;  %v3202_v37 = vld [vmem:[#allocation13 + $0x1f8] sm:$0xff] }
  0xd7   :  { %820 = vmatpush.msrb.mxu1 %v322_v42  ;;  %v3209_v42 = vld [vmem:[#allocation13 + $0xe0] sm:$0xff] }
  0xd8   :  { %800 = vmatpush.msrb.mxu0 %v290_v41 }
  0xd9   :  { %821 = vmatpush.msrb.mxu1 %v320_v46 }
  0xda   :  { %801 = vmatpush.msrb.mxu0 %v288_v45 }
  0xdb   :  { %822 = vmatpush.msrb.mxu1 %v318_v54 }
  0xdc   :  { %802 = vmatpush.msrb.mxu0 %v286_v53  ;;  %v4685_v53 = vperm.slane %v3192_v30, 1 }
  0xdd   :  { %823 = vmatpush.msrb.mxu1 %v316_v58 }
  0xde   :  { %803 = vmatpush.msrb.mxu0 %v284_v57 }
 0x125   :  { %v628_v61 = vpop.xlane.xlu1 %627 }
 0x126   :  { %v629_v62 = vmul.f32 %v628_v61, %v3114_v32  ;;  %v1131_v35 = vpop.xlane.xlu0 %1130  ;;  %v3250_v61 = vld [vmem:[#allocation13 + $0xc8] sm:$0xff] }
 0x127   :  { %v1132_v40 = vmul.f32 %v1131_v35, %v3114_v32 }
 0x128   :  { %v630_v63 = vadd.f32 1e-05, %v629_v62  ;;  %v3252_v62 = vld [vmem:[#allocation13 + $0x1c8] sm:$0xff] }
 0x129   :  { %v3223_v54 = vadd.f32 1e-05, %v1132_v40  ;;  %v3318_v40 = vld [vmem:[#allocation13 + $0x88] sm:$0xff] }
 0x12a   :  { %2449 = vrsqrt.f32 %v630_v63  ;;  %vm637_vm2 = vweird.f32 %v630_v63  ;;  %4883 = vst [vmem:[#allocation32_spill] sm:$0xff] %v3318_v40 }
 0x12b   :  { %vm1140_vm7 = vweird.f32 %v3223_v54 }
 0x12d   :  { %v669_v0 = vpop.xlane.xlu1 %668 }
 0x12e   :  { %v670_v1 = vmul.f32 %v669_v0, %v3114_v32 }
 0x130   :  { %v2450_v2 = vpop.eup %2449  ;;  %v671_v3 = vadd.f32 1e-05, %v670_v1  ;;  %v3268_v1 = vld [vmem:[#allocation13 + $0xb0] sm:$0xff] }
 0x131   :  { %v632_v4 = vmul.f32 %v2450_v2, %v630_v63  ;;  %vm638_vm1 = vweird.f32 %v2450_v2 }
 0x132   :  { %2451 = vrsqrt.f32 %v671_v3  ;;  %vm639_vm3 = vmor %vm637_vm2, %vm638_vm1  ;;  %vm678_vm5 = vweird.f32 %v671_v3 }
 0x133   :  { %v633_v5 = vmul.f32 %v2450_v2, %v632_v4  ;;  %2453 = vrsqrt.f32 %v3223_v54  ;;  %v3276_v4 = vld [vmem:[#allocation13 + $0xb8] sm:$0xff] }
 0x135   :  { %v634_v10 = vmul.f32 0.5, %v633_v5  ;;  %v3278_v5 = vld [vmem:[#allocation13 + $0x1b8] sm:$0xff] }
 0x137   :  { %v635_v11 = vsub.f32 1.5, %v634_v10  ;;  %v3282_v10 = vld [vmem:[#allocation13 + $0xa0] sm:$0xff] }
 0x138   :  { %v2452_v13 = vpop.eup %2451 }
 0x139   :  { %v636_v14 = vmul.f32 %v2450_v2, %v635_v11  ;;  %v673_v17 = vmul.f32 %v2452_v13, %v671_v3  ;;  %vm679_vm4 = vweird.f32 %v2452_v13  ;;  %v3272_v3 = vpop.eup %2453  ;;  %v3284_v11 = vld [vmem:[#allocation13 + $0x1a0] sm:$0xff] }
 0x13a   :  { %vm680_vm6 = vmor %vm678_vm5, %vm679_vm4  ;;  %vm1141_vm8 = vweird.f32 %v3272_v3 }
 0x13b   :  { %v640_v22 = vsel %vm639_vm3, %v2450_v2, %v636_v14  ;;  %v674_v6 = vmul.f32 %v2452_v13, %v673_v17  ;;  %v3270_v2 = vld [vmem:[#allocation13 + $0x1b0] sm:$0xff]  ;;  %v1163_v14 = vpop.xlane.xlu1 %1162  ;;  %v3290_v17 = vld [vmem:[#allocation13 + $0xa8] sm:$0xff]  ;;  %vm1142_vm9 = vmor %vm1140_vm7, %vm1141_vm8 }
 0x13c   :  { %v641_v23 = vmul.f32 %v640_v22, %v3119_v47  ;;  %v642_v24 = vmul.f32 %v640_v22, %v3122_v48  ;;  %4881 = vst [vmem:[#allocation30_spill] sm:$0xff] %v3290_v17  ;;  %v3292_v22 = vld [vmem:[#allocation13 + $0x1a8] sm:$0xff] }
 0x13d   :  { %v675_v26 = vmul.f32 0.5, %v674_v6  ;;  %v1164_v6 = vmul.f32 %v1163_v14, %v3114_v32  ;;  %v3312_v32 = vld [vmem:[#allocation13 + $0x80] sm:$0xff] }
 0x13e   :  { %v648_v27 = vmul.f32 %v4690_v20, %v641_v23  ;;  %v649_v28 = vmul.f32 %v4691_v21, %v642_v24  ;;  %v3297_v23 = vld [vmem:[#allocation13 + $0x90] sm:$0xff]  ;;  %v3339_v14 = vld [vmem:[#allocation13 + $0x60] sm:$0xff] }
 0x13f   :  { %v676_v29 = vsub.f32 1.5, %v675_v26  ;;  %v3299_v24 = vld [vmem:[#allocation13 + $0x190] sm:$0xff]  ;;  %4885 = vst [vmem:[#allocation34_spill] sm:$0xff] %v3339_v14 }
 0x140   :  { %v3183_v47 = vadd.f32 %v4688_v8, %v648_v27  ;;  %v3187_v48 = vadd.f32 %v4689_v25, %v649_v28  ;;  %v3304_v27 = vld [vmem:[#allocation13 + $0x98] sm:$0xff]  ;;  %v3370_v25 = vld [vmem:[#allocation13 + $0x140] sm:$0xff] }
 0x141   :  { %v677_v31 = vmul.f32 %v2452_v13, %v676_v29  ;;  %4882 = vst [vmem:[#allocation31_spill] sm:$0xff] %v3304_v27  ;;  %v3306_v28 = vld [vmem:[#allocation13 + $0x198] sm:$0xff]  ;;  %v3308_v29 = vadd.f32 1e-05, %v1164_v6  ;;  %v3341_v6 = vld [vmem:[#allocation13 + $0x160] sm:$0xff] }
 0x142   :  { %719 = vmatmul.f32.vlgmr.msra.gmra.mxu0 %v3183_v47  ;;  %739 = vmatmul.f32.vlgmr.msra.gmra.mxu1 %v3187_v48  ;;  %v3364_v8 = vld [vmem:[#allocation13 + $0x158] sm:$0xff] }
 0x143   :  { %v681_v41 = vsel %vm680_vm6, %v2452_v13, %v677_v31  ;;  %759 = vmatmul.f32.vlgmr.msra.gmra.mxu2 %v3183_v47  ;;  %779 = vmatmul.f32.vlgmr.msra.gmra.mxu3 %v3187_v48  ;;  %v1135_v13 = vmul.f32 %v3272_v3, %v3223_v54  ;;  %v3314_v31 = vld [vmem:[#allocation13 + $0x180] sm:$0xff]  ;;  %2455 = vrsqrt.f32 %v3308_v29  ;;  %4890 = vst [vmem:[#allocation39_spill] sm:$0xff] %v3364_v8  ;;  %vm1172_vm10 = vweird.f32 %v3308_v29 }
 0x144   :  { %v682_v45 = vmul.f32 %v681_v41, %v3141_v15  ;;  %v683_v46 = vmul.f32 %v681_v41, %v3144_v16  ;;  %873 = vmatpush.msra.mxu0 %v3194_v33  ;;  %893 = vmatpush.msra.mxu1 %v3196_v34  ;;  %v3229_v15 = vld [vmem:[#allocation13 + $0x1d0] sm:$0xff]  ;;  %v3233_v16 = vld [vmem:[#allocation13 + $0xd8] sm:$0xff]  ;;  %v3320_v41 = vld [vmem:[#allocation13 + $0x188] sm:$0xff] }
 0x145   :  { %913 = vmatpush.msra.mxu2 %v3200_v36  ;;  %933 = vmatpush.msra.mxu3 %v3202_v37  ;;  %v1136_v26 = vmul.f32 %v3272_v3, %v1135_v13  ;;  %v3335_v13 = vld [vmem:[#allocation13 + $0x178] sm:$0xff]  ;;  %v3368_v54 = vld [vmem:[#allocation13 + $0x40] sm:$0xff] }
 0x146   :  { %874 = vmatpush.msra.mxu0 %v3209_v42  ;;  %894 = vmatpush.msra.mxu1 %v3211_v43  ;;  %v689_v57 = vmul.f32 %v4686_v38, %v682_v45  ;;  %v690_v58 = vmul.f32 %v4687_v39, %v683_v46  ;;  %v3325_v45 = vld [vmem:[#allocation13 + $0x70] sm:$0xff]  ;;  %v3362_v39 = vld [vmem:[#allocation13 + $0x58] sm:$0xff]  ;;  %4891 = vst [vmem:[#allocation40_spill] sm:$0xff] %v3368_v54 }
 0x147   :  { %914 = vmatpush.msra.mxu2 %v3218_v49  ;;  %934 = vmatpush.msra.mxu3 %v3220_v50  ;;  %v1137_v35 = vmul.f32 0.5, %v1136_v26  ;;  %v3327_v46 = vld [vmem:[#allocation13 + $0x170] sm:$0xff]  ;;  %4889 = vst [vmem:[#allocation38_spill] sm:$0xff] %v3362_v39 }
 0x148   :  { %875 = vmatpush.msra.mxu0 %v3227_v55  ;;  %895 = vmatpush.msra.mxu1 %v3229_v15  ;;  %v3256_v63 = vadd.f32 %v4684_v44, %v689_v57  ;;  %v3260_v0 = vadd.f32 %v4685_v53, %v690_v58  ;;  %v3333_v58 = vld [vmem:[#allocation13 + $0x78] sm:$0xff]  ;;  %v3348_v44 = vld [vmem:[#allocation13 + $0x168] sm:$0xff]  ;;  %v3354_v53 = vld [vmem:[#allocation13 + $0x50] sm:$0xff] }
 0x149   :  { %915 = vmatpush.msra.mxu2 %v3233_v16  ;;  %935 = vmatpush.msra.mxu3 %v3235_v56  ;;  %v1138_v57 = vsub.f32 1.5, %v1137_v35  ;;  %4884 = vst [vmem:[#allocation33_spill] sm:$0xff] %v3333_v58  ;;  %v3346_v35 = vld [vmem:[#allocation13 + $0x68] sm:$0xff]  ;;  %v3356_v38 = vld [vmem:[#allocation13 + $0x150] sm:$0xff] }
 0x14a   :  { %876 = vmatpush.msra.mxu0 %v3244_v59  ;;  %896 = vmatpush.msra.mxu1 %v3246_v60  ;;  %4886 = vst [vmem:[#allocation35_spill] sm:$0xff] %v3346_v35 }
 0x14b   :  { %916 = vmatpush.msra.mxu2 %v3250_v61  ;;  %936 = vmatpush.msra.mxu3 %v3252_v62  ;;  %v1139_v26 = vmul.f32 %v3272_v3, %v1138_v57  ;;  %4887 = vst [vmem:[#allocation36_spill] sm:$0xff] %v3348_v44  ;;  %v3358_v57 = vpop.eup %2455 }
 0x14c   :  { %804 = vmatmul.f32.vlgmr.msrb.gmra.mxu0 %v3256_v63  ;;  %824 = vmatmul.f32.vlgmr.msrb.gmra.mxu1 %v3260_v0  ;;  %4888 = vst [vmem:[#allocation37_spill] sm:$0xff] %v3354_v53  ;;  %v1167_v21 = vmul.f32 %v3358_v57, %v3308_v29  ;;  %vm1173_vm11 = vweird.f32 %v3358_v57 }
 0x14d   :  { %844 = vmatmul.f32.vlgmr.msrb.gmra.mxu2 %v3256_v63  ;;  %864 = vmatmul.f32.vlgmr.msrb.gmra.mxu3 %v3260_v0  ;;  %v1143_v20 = vsel %vm1142_vm9, %v3272_v3, %v1139_v26  ;;  %v3390_v26 = vld [vmem:[#allocation13 + $0x38] sm:$0xff]  ;;  %vm3424_vm12 = vmor %vm1172_vm10, %vm1173_vm11 }
 0x14e   :  { %877 = vmatpush.msra.mxu0 %v3268_v1  ;;  %897 = vmatpush.msra.mxu1 %v3270_v2  ;;  %v1168_v3 = vmul.f32 %v3358_v57, %v1167_v21  ;;  %4896 = vst [vmem:[#allocation45_spill] sm:$0xff] %v3390_v26 }
 0x14f   :  { %917 = vmatpush.msra.mxu2 %v3276_v4  ;;  %937 = vmatpush.msra.mxu3 %v3278_v5 }
 0x150   :  { %878 = vmatpush.msra.mxu0 %v3282_v10  ;;  %898 = vmatpush.msra.mxu1 %v3284_v11  ;;  %v1169_v21 = vmul.f32 0.5, %v1168_v3 }
 0x151   :  { %918 = vmatpush.msra.mxu2 %v3290_v17  ;;  %938 = vmatpush.msra.mxu3 %v3292_v22  ;;  %v4905_v17 = vperm.slane %v3162_v12, 0 }
 0x152   :  { %879 = vmatpush.msra.mxu0 %v3297_v23  ;;  %899 = vmatpush.msra.mxu1 %v3299_v24  ;;  %v1170_v3 = vsub.f32 1.5, %v1169_v21 }
 0x153   :  { %919 = vmatpush.msra.mxu2 %v3304_v27  ;;  %939 = vmatpush.msra.mxu3 %v3306_v28  ;;  %v3385_v27 = vld [vmem:[#allocation13 + $0x130] sm:$0xff] }
 0x154   :  { %880 = vmatpush.msra.mxu0 %v3312_v32  ;;  %900 = vmatpush.msra.mxu1 %v3314_v31  ;;  %4895 = vst [vmem:[#allocation44_spill] sm:$0xff] %v3385_v27  ;;  %v1171_v29 = vmul.f32 %v3358_v57, %v1170_v3 }
 0x155   :  { %920 = vmatpush.msra.mxu2 %v3318_v40  ;;  %940 = vmatpush.msra.mxu3 %v3320_v41  ;;  %v3379_v40 = vld [vmem:[#allocation13 + $0x148] sm:$0xff] }
 0x156   :  { %881 = vmatpush.msra.mxu0 %v3325_v45  ;;  %901 = vmatpush.msra.mxu1 %v3327_v46  ;;  %4893 = vst [vmem:[#allocation42_spill] sm:$0xff] %v3379_v40  ;;  %v1175_v3 = vsel %vm3424_vm12, %v3358_v57, %v1171_v29  ;;  %v3472_v57 = vld [vmem:[#allocation14 + $0x1f8] sm:$0xff]  ;;  %v3482_v29 = vld [vmem:[#allocation14 + $0xe8] sm:$0xff] }
 0x157   :  { %921 = vmatpush.msra.mxu2 %v3333_v58  ;;  %941 = vmatpush.msra.mxu3 %v3335_v13  ;;  %v3377_v58 = vld [vmem:[#allocation13 + $0x48] sm:$0xff]  ;;  %4913 = vst [vmem:[#allocation56_spill] sm:$0xff] %v3472_v57 }
 0x158   :  { %882 = vmatpush.msra.mxu0 %v3339_v14  ;;  %902 = vmatpush.msra.mxu1 %v3341_v6  ;;  %4892 = vst [vmem:[#allocation41_spill] sm:$0xff] %v3377_v58  ;;  %v1144_v14 = vmul.f32 %v1143_v20, %v3125_v51  ;;  %v3406_v51 = vld [vmem:[#allocation13 + $0x28] sm:$0xff] }
 0x159   :  { %922 = vmatpush.msra.mxu2 %v3346_v35  ;;  %942 = vmatpush.msra.mxu3 %v3348_v44  ;;  %v3383_v35 = vld [vmem:[#allocation13 + $0x30] sm:$0xff]  ;;  %v3400_v44 = vld [vmem:[#allocation13 + $0x120] sm:$0xff]  ;;  %4900 = vst [vmem:[#allocation49_spill] sm:$0xff] %v3406_v51 }
 0x15a   :  { %883 = vmatpush.msra.mxu0 %v3354_v53  ;;  %903 = vmatpush.msra.mxu1 %v3356_v38  ;;  %4894 = vst [vmem:[#allocation43_spill] sm:$0xff] %v3383_v35  ;;  %v3392_v53 = vld [vmem:[#allocation13 + $0x138] sm:$0xff]  ;;  %v1146_v21 = vmul.f32 %v1144_v14, %v4905_v17  ;;  %v4910_v14 = vperm.slane %v3167_v18, 0 }
 0x15b   :  { %923 = vmatpush.msra.mxu2 %v3362_v39  ;;  %943 = vmatpush.msra.mxu3 %v3364_v8  ;;  %4897 = vst [vmem:[#allocation46_spill] sm:$0xff] %v3392_v53  ;;  %v1145_v39 = vmul.f32 %v1143_v20, %v3128_v52  ;;  %v3398_v8 = vld [vmem:[#allocation13 + $0x20] sm:$0xff]  ;;  %v3408_v52 = vld [vmem:[#allocation13 + $0x128] sm:$0xff]  ;;  %v3412_v20 = vld [vmem:[#allocation13 + $0x10] sm:$0xff] }
 0x15c   :  { %884 = vmatpush.msra.mxu0 %v3368_v54  ;;  %904 = vmatpush.msra.mxu1 %v3370_v25  ;;  %4898 = vst [vmem:[#allocation47_spill] sm:$0xff] %v3398_v8  ;;  %v3420_v54 = vld [vmem:[#allocation13 + $0x118] sm:$0xff] }
 0x15d   :  { %924 = vmatpush.msra.mxu2 %v3377_v58  ;;  %944 = vmatpush.msra.mxu3 %v3379_v40  ;;  %4899 = vst [vmem:[#allocation48_spill] sm:$0xff] %v3400_v44  ;;  %v3414_v58 = vld [vmem:[#allocation13 + $0x110] sm:$0xff]  ;;  %v3470_v40 = vld [vmem:[#allocation14 + $0xf8] sm:$0xff] }
 0x15e   :  { %885 = vmatpush.msra.mxu0 %v3383_v35  ;;  %905 = vmatpush.msra.mxu1 %v3385_v27  ;;  %v3418_v35 = vld [vmem:[#allocation13 + $0x18] sm:$0xff]  ;;  %v3441_v27 = vld [vmem:[#allocation13 + $0x8] sm:$0xff]  ;;  %4912 = vst [vmem:[#allocation55_spill] sm:$0xff] %v3470_v40 }
 0x15f   :  { %925 = vmatpush.msra.mxu2 %v3390_v26  ;;  %945 = vmatpush.msra.mxu3 %v3392_v53  ;;  %4901 = vst [vmem:[#allocation50_spill] sm:$0xff] %v3418_v35  ;;  %v4904_v26 = vperm.slane %v3162_v12, 1  ;;  %v4909_v12 = vperm.slane %v3167_v18, 1  ;;  %v3464_v18 = vld [vmem:[#allocation14 + $0xf0] sm:$0xff] }
 0x160   :  { %886 = vmatpush.msra.mxu0 %v3398_v8  ;;  %906 = vmatpush.msra.mxu1 %v3400_v44  ;;  %v3434_v8 = vld [vmem:[#allocation13] sm:$0xff]  ;;  %4907 = vst [vmem:[#allocation52_spill] sm:$0xff] %v3441_v27 }
 0x161   :  { %v1147_v53 = vmul.f32 %v1145_v39, %v4904_v26  ;;  %926 = vmatpush.msra.mxu2 %v3406_v51  ;;  %946 = vmatpush.msra.mxu3 %v3408_v52  ;;  %4906 = vst [vmem:[#allocation51_spill] sm:$0xff] %v3434_v8  ;;  %v3436_v44 = vld [vmem:[#allocation13 + $0x100] sm:$0xff]  ;;  %v3443_v39 = vld [vmem:[#allocation13 + $0x108] sm:$0xff]  ;;  %v3451_v26 = vadd.f32 %v1146_v21, %v4910_v14  ;;  %v3466_v21 = vld [vmem:[#allocation14 + $0x1f0] sm:$0xff]  ;;  %v4917_v14 = vperm.slane %v3179_v9, 1 }
 0x162   :  { %887 = vmatpush.msra.mxu0 %v3412_v20  ;;  %907 = vmatpush.msra.mxu1 %v3414_v58  ;;  %4908 = vst [vmem:[#allocation53_spill] sm:$0xff] %v3443_v39  ;;  %v1176_v51 = vmul.f32 %v1175_v3, %v3147_v19  ;;  %v3476_v19 = vld [vmem:[#allocation14 + $0xe0] sm:$0xff] }
 0x163   :  { %v3447_v17 = vadd.f32 %v1147_v53, %v4909_v12  ;;  %927 = vmatpush.msra.mxu2 %v3418_v35  ;;  %947 = vmatpush.msra.mxu3 %v3420_v54  ;;  %v1177_v53 = vmul.f32 %v1175_v3, %v3154_v7  ;;  %4911 = vst [vmem:[#allocation54_spill] sm:$0xff] %v3464_v18  ;;  %v3478_v7 = vld [vmem:[#allocation14 + $0x1e0] sm:$0xff]  ;;  %v3484_v12 = vld [vmem:[#allocation14 + $0x1e8] sm:$0xff]  ;;  %v3494_v35 = vld [vmem:[#allocation14 + $0x1d0] sm:$0xff] }
 0x164   :  { %888 = vmatpush.msra.mxu0 %v3434_v8  ;;  %908 = vmatpush.msra.mxu1 %v3436_v44  ;;  %4914 = vst [vmem:[#allocation57_spill] sm:$0xff] %v3476_v19  ;;  %v3500_v8 = vld [vmem:[#allocation14 + $0x1d8] sm:$0xff] }
 0x165   :  { %928 = vmatpush.msra.mxu2 %v3441_v27  ;;  %948 = vmatpush.msra.mxu3 %v3443_v39  ;;  %4915 = vst [vmem:[#allocation58_spill] sm:$0xff] %v3482_v29  ;;  %v1179_v3 = vmul.f32 %v1177_v53, %v4917_v14  ;;  %v4918_v27 = vperm.slane %v3179_v9, 0  ;;  %v4922_v53 = vperm.slane %v3192_v30, 1  ;;  %v3512_v14 = vld [vmem:[#allocation14 + $0xc0] sm:$0xff]  ;;  %v2493_v39 = vld [vmem:[#allocation10 + $0x1f8] sm:$0xff] }
 0x166   :  { %889 = vmatmul.f32.vlgmr.msra.gmra.mxu0 %v3183_v47  ;;  %909 = vmatmul.f32.vlgmr.msra.gmra.mxu1 %v3187_v48  ;;  %4916 = vst [vmem:[#allocation59_spill] sm:$0xff] %v3484_v12 }
 0x167   :  { %929 = vmatmul.f32.vlgmr.msra.gmra.mxu2 %v3183_v47  ;;  %949 = vmatmul.f32.vlgmr.msra.gmra.mxu3 %v3187_v48  ;;  %v1178_v47 = vmul.f32 %v1176_v51, %v4918_v27  ;;  %v3492_v48 = vld [vmem:[#allocation14 + $0xd0] sm:$0xff]  ;;  %4921 = vst [vmem:[#allocation62_spill] sm:$0xff] %v3500_v8  ;;  %v3504_v9 = vadd.f32 %v1179_v3, %v4922_v53  ;;  %v4923_v27 = vperm.slane %v3192_v30, 0  ;;  %v3520_v3 = vld [vmem:[#allocation14 + $0x1c8] sm:$0xff]  ;;  %v3530_v53 = vld [vmem:[#allocation14 + $0xb8] sm:$0xff] }
 0x168   :  { %958 = vmatpush.msrb.mxu0 %v3464_v18  ;;  %978 = vmatpush.msrb.mxu1 %v3466_v21  ;;  %4919 = vst [vmem:[#allocation60_spill] sm:$0xff] %v3492_v48  ;;  %v3498_v18 = vld [vmem:[#allocation14 + $0xd8] sm:$0xff]  ;;  %v3524_v30 = vld [vmem:[#allocation14 + $0xb0] sm:$0xff] }
 0x169   :  { %998 = vmatpush.msrb.mxu2 %v3470_v40  ;;  %1018 = vmatpush.msrb.mxu3 %v3472_v57  ;;  %4920 = vst [vmem:[#allocation61_spill] sm:$0xff] %v3498_v18  ;;  %v3508_v51 = vadd.f32 %v1178_v47, %v4923_v27  ;;  %v3514_v40 = vld [vmem:[#allocation14 + $0x1c0] sm:$0xff]  ;;  %v3526_v47 = vld [vmem:[#allocation14 + $0x1b0] sm:$0xff]  ;;  %v3532_v27 = vld [vmem:[#allocation14 + $0x1b8] sm:$0xff] }
 0x16a   :  { %959 = vmatpush.msrb.mxu0 %v3476_v19  ;;  %979 = vmatpush.msrb.mxu1 %v3478_v7  ;;  %4924 = vst [vmem:[#allocation63_spill] sm:$0xff] %v3512_v14  ;;  %v3518_v19 = vld [vmem:[#allocation14 + $0xc8] sm:$0xff] }
 0x16b   :  { %999 = vmatpush.msrb.mxu2 %v3482_v29  ;;  %1019 = vmatpush.msrb.mxu3 %v3484_v12  ;;  %4925 = vst [vmem:[#allocation64_spill] sm:$0xff] %v3514_v40  ;;  %v3536_v29 = vld [vmem:[#allocation14 + $0xa0] sm:$0xff] }
 0x16c   :  { %960 = vmatpush.msrb.mxu0 %v3492_v48  ;;  %980 = vmatpush.msrb.mxu1 %v3494_v35  ;;  %4926 = vst [vmem:[#allocation65_spill] sm:$0xff] %v3518_v19  ;;  %v3542_v48 = vld [vmem:[#allocation14 + $0xa8] sm:$0xff]  ;;  %v3560_v12 = vld [vmem:[#allocation14 + $0x80] sm:$0xff] }
 0x16d   :  { %4927 = vst [vmem:[#allocation66_spill] sm:$0xff] %v3520_v3  ;;  %1000 = vmatpush.msrb.mxu2 %v3498_v18  ;;  %1020 = vmatpush.msrb.mxu3 %v3500_v8  ;;  %v3538_v18 = vld [vmem:[#allocation14 + $0x1a0] sm:$0xff]  ;;  %v3548_v8 = vld [vmem:[#allocation14 + $0x90] sm:$0xff] }
 0x16e   :  { %4928 = vst [vmem:[#allocation67_spill] sm:$0xff] %v3524_v30  ;;  %961 = vmatpush.msrb.mxu0 %v3512_v14  ;;  %981 = vmatpush.msrb.mxu1 %v3514_v40  ;;  %v3544_v14 = vld [vmem:[#allocation14 + $0x1a8] sm:$0xff]  ;;  %v2492_v40 = vld [vmem:[#allocation10 + $0x1c0] sm:$0xff] }
 0x16f   :  { %4929 = vst [vmem:[#allocation68_spill] sm:$0xff] %v3526_v47  ;;  %1001 = vmatpush.msrb.mxu2 %v3518_v19  ;;  %1021 = vmatpush.msrb.mxu3 %v3520_v3  ;;  %v3550_v19 = vld [vmem:[#allocation14 + $0x190] sm:$0xff]  ;;  %v3554_v3 = vld [vmem:[#allocation14 + $0x98] sm:$0xff] }
 0x170   :  { %4930 = vst [vmem:[#allocation69_spill] sm:$0xff] %v3530_v53  ;;  %962 = vmatpush.msrb.mxu0 %v3524_v30  ;;  %982 = vmatpush.msrb.mxu1 %v3526_v47  ;;  %v3556_v30 = vld [vmem:[#allocation14 + $0x198] sm:$0xff] }
 0x171   :  { %4931 = vst [vmem:[#allocation70_spill] sm:$0xff] %v3532_v27  ;;  %1002 = vmatpush.msrb.mxu2 %v3530_v53  ;;  %1022 = vmatpush.msrb.mxu3 %v3532_v27  ;;  %v3562_v53 = vld [vmem:[#allocation14 + $0x180] sm:$0xff]  ;;  %v3566_v27 = vld [vmem:[#allocation14 + $0x88] sm:$0xff] }
 0x172   :  { %4932 = vst [vmem:[#allocation71_spill] sm:$0xff] %v3536_v29  ;;  %963 = vmatpush.msrb.mxu0 %v3536_v29  ;;  %983 = vmatpush.msrb.mxu1 %v3538_v18  ;;  %v3568_v29 = vld [vmem:[#allocation14 + $0x188] sm:$0xff] }
 0x173   :  { %4933 = vst [vmem:[#allocation72_spill] sm:$0xff] %v3538_v18  ;;  %1003 = vmatpush.msrb.mxu2 %v3542_v48  ;;  %1023 = vmatpush.msrb.mxu3 %v3544_v14  ;;  %v3572_v18 = vld [vmem:[#allocation14 + $0x70] sm:$0xff] }
 0x174   :  { %4934 = vst [vmem:[#allocation73_spill] sm:$0xff] %v3542_v48  ;;  %964 = vmatpush.msrb.mxu0 %v3548_v8  ;;  %984 = vmatpush.msrb.mxu1 %v3550_v19  ;;  %v3574_v48 = vld [vmem:[#allocation14 + $0x170] sm:$0xff] }
 0x175   :  { %4935 = vst [vmem:[#allocation74_spill] sm:$0xff] %v3544_v14  ;;  %1004 = vmatpush.msrb.mxu2 %v3554_v3  ;;  %1024 = vmatpush.msrb.mxu3 %v3556_v30  ;;  %v3578_v14 = vld [vmem:[#allocation14 + $0x78] sm:$0xff] }
 0x176   :  { %4936 = vst [vmem:[#allocation75_spill] sm:$0xff] %v3548_v8  ;;  %965 = vmatpush.msrb.mxu0 %v3560_v12  ;;  %985 = vmatpush.msrb.mxu1 %v3562_v53  ;;  %v3580_v8 = vld [vmem:[#allocation14 + $0x178] sm:$0xff] }
 0x177   :  { %4937 = vst [vmem:[#allocation76_spill] sm:$0xff] %v3550_v19  ;;  %1005 = vmatpush.msrb.mxu2 %v3566_v27  ;;  %1025 = vmatpush.msrb.mxu3 %v3568_v29  ;;  %v3584_v19 = vld [vmem:[#allocation14 + $0x60] sm:$0xff] }
 0x178   :  { %4938 = vst [vmem:[#allocation77_spill] sm:$0xff] %v3554_v3  ;;  %v3586_v3 = vld [vmem:[#allocation14 + $0x160] sm:$0xff]  ;;  %966 = vmatpush.msrb.mxu0 %v3572_v18  ;;  %986 = vmatpush.msrb.mxu1 %v3574_v48 }
 0x179   :  { %4939 = vst [vmem:[#allocation78_spill] sm:$0xff] %v3556_v30  ;;  %v3590_v30 = vld [vmem:[#allocation14 + $0x68] sm:$0xff]  ;;  %1006 = vmatpush.msrb.mxu2 %v3578_v14  ;;  %1026 = vmatpush.msrb.mxu3 %v3580_v8 }
 0x17a   :  { %4940 = vst [vmem:[#allocation79_spill] sm:$0xff] %v3560_v12  ;;  %v3592_v12 = vld [vmem:[#allocation14 + $0x168] sm:$0xff]  ;;  %967 = vmatpush.msrb.mxu0 %v3584_v19  ;;  %987 = vmatpush.msrb.mxu1 %v3586_v3 }
 0x17b   :  { %4941 = vst [vmem:[#allocation80_spill] sm:$0xff] %v3562_v53  ;;  %v3596_v53 = vld [vmem:[#allocation14 + $0x50] sm:$0xff]  ;;  %1007 = vmatpush.msrb.mxu2 %v3590_v30  ;;  %1027 = vmatpush.msrb.mxu3 %v3592_v12 }
 0x17c   :  { %4942 = vst [vmem:[#allocation81_spill] sm:$0xff] %v3566_v27  ;;  %v3598_v27 = vld [vmem:[#allocation14 + $0x150] sm:$0xff]  ;;  %968 = vmatpush.msrb.mxu0 %v3596_v53 }
 0x17d   :  { %4943 = vst [vmem:[#allocation82_spill] sm:$0xff] %v3568_v29  ;;  %v3602_v29 = vld [vmem:[#allocation14 + $0x58] sm:$0xff]  ;;  %988 = vmatpush.msrb.mxu1 %v3598_v27 }
 0x17e   :  { %4944 = vst [vmem:[#allocation83_spill] sm:$0xff] %v3572_v18  ;;  %v3604_v18 = vld [vmem:[#allocation14 + $0x158] sm:$0xff]  ;;  %1008 = vmatpush.msrb.mxu2 %v3602_v29 }
 0x17f   :  { %4945 = vst [vmem:[#allocation84_spill] sm:$0xff] %v3574_v48  ;;  %v3608_v48 = vld [vmem:[#allocation14 + $0x40] sm:$0xff]  ;;  %1028 = vmatpush.msrb.mxu3 %v3604_v18 }
 0x180   :  { %4946 = vst [vmem:[#allocation85_spill] sm:$0xff] %v3578_v14  ;;  %v3610_v14 = vld [vmem:[#allocation14 + $0x140] sm:$0xff]  ;;  %969 = vmatpush.msrb.mxu0 %v3608_v48 }
 0x181   :  { %4947 = vst [vmem:[#allocation86_spill] sm:$0xff] %v3580_v8  ;;  %v3614_v8 = vld [vmem:[#allocation14 + $0x48] sm:$0xff]  ;;  %989 = vmatpush.msrb.mxu1 %v3610_v14 }
 0x182   :  { %4948 = vst [vmem:[#allocation87_spill] sm:$0xff] %v3584_v19  ;;  %v3616_v19 = vld [vmem:[#allocation14 + $0x148] sm:$0xff]  ;;  %1009 = vmatpush.msrb.mxu2 %v3614_v8 }
 0x183   :  { %4949 = vst [vmem:[#allocation88_spill] sm:$0xff] %v3586_v3  ;;  %v3620_v3 = vld [vmem:[#allocation14 + $0x30] sm:$0xff]  ;;  %1029 = vmatpush.msrb.mxu3 %v3616_v19 }
 0x184   :  { %4950 = vst [vmem:[#allocation89_spill] sm:$0xff] %v3590_v30  ;;  %v3622_v30 = vld [vmem:[#allocation14 + $0x130] sm:$0xff]  ;;  %970 = vmatpush.msrb.mxu0 %v3620_v3 }
 0x185   :  { %4951 = vst [vmem:[#allocation90_spill] sm:$0xff] %v3592_v12  ;;  %v3626_v12 = vld [vmem:[#allocation14 + $0x38] sm:$0xff]  ;;  %990 = vmatpush.msrb.mxu1 %v3622_v30 }
 0x186   :  { %4952 = vst [vmem:[#allocation91_spill] sm:$0xff] %v3596_v53  ;;  %v3628_v53 = vld [vmem:[#allocation14 + $0x138] sm:$0xff]  ;;  %1010 = vmatpush.msrb.mxu2 %v3626_v12 }
 0x187   :  { %4953 = vst [vmem:[#allocation92_spill] sm:$0xff] %v3598_v27  ;;  %v3632_v27 = vld [vmem:[#allocation14 + $0x20] sm:$0xff]  ;;  %1030 = vmatpush.msrb.mxu3 %v3628_v53 }
 0x188   :  { %4954 = vst [vmem:[#allocation93_spill] sm:$0xff] %v3602_v29  ;;  %v3634_v29 = vld [vmem:[#allocation14 + $0x120] sm:$0xff]  ;;  %971 = vmatpush.msrb.mxu0 %v3632_v27 }
 0x189   :  { %4955 = vst [vmem:[#allocation94_spill] sm:$0xff] %v3604_v18  ;;  %v3638_v18 = vld [vmem:[#allocation14 + $0x28] sm:$0xff]  ;;  %991 = vmatpush.msrb.mxu1 %v3634_v29 }
 0x18a   :  { %4956 = vst [vmem:[#allocation95_spill] sm:$0xff] %v3608_v48  ;;  %v3640_v48 = vld [vmem:[#allocation14 + $0x128] sm:$0xff]  ;;  %1011 = vmatpush.msrb.mxu2 %v3638_v18 }
 0x18b   :  { %4957 = vst [vmem:[#allocation96_spill] sm:$0xff] %v3610_v14  ;;  %v3644_v14 = vld [vmem:[#allocation14 + $0x10] sm:$0xff]  ;;  %1031 = vmatpush.msrb.mxu3 %v3640_v48 }
 0x18c   :  { %4958 = vst [vmem:[#allocation97_spill] sm:$0xff] %v3614_v8  ;;  %v3646_v8 = vld [vmem:[#allocation14 + $0x110] sm:$0xff]  ;;  %972 = vmatpush.msrb.mxu0 %v3644_v14 }
 0x18d   :  { %4959 = vst [vmem:[#allocation98_spill] sm:$0xff] %v3616_v19  ;;  %v3650_v19 = vld [vmem:[#allocation14 + $0x18] sm:$0xff]  ;;  %992 = vmatpush.msrb.mxu1 %v3646_v8 }
 0x18e   :  { %4960 = vst [vmem:[#allocation99_spill] sm:$0xff] %v3620_v3  ;;  %v3652_v3 = vld [vmem:[#allocation14 + $0x118] sm:$0xff]  ;;  %1012 = vmatpush.msrb.mxu2 %v3650_v19 }
 0x18f   :  { %4961 = vst [vmem:[#allocation100_spill] sm:$0xff] %v3622_v30  ;;  %v3656_v30 = vld [vmem:[#allocation14] sm:$0xff]  ;;  %1032 = vmatpush.msrb.mxu3 %v3652_v3 }
 0x190   :  { %4962 = vst [vmem:[#allocation101_spill] sm:$0xff] %v3626_v12  ;;  %v3658_v12 = vld [vmem:[#allocation14 + $0x100] sm:$0xff]  ;;  %973 = vmatpush.msrb.mxu0 %v3656_v30 }
 0x191   :  { %4963 = vst [vmem:[#allocation102_spill] sm:$0xff] %v3628_v53  ;;  %v3662_v53 = vld [vmem:[#allocation14 + $0x8] sm:$0xff]  ;;  %993 = vmatpush.msrb.mxu1 %v3658_v12  ;;  %974 = vmatmul.f32.vlgmr.msrb.gmra.mxu0 %v3256_v63 }
 0x192   :  { %4964 = vst [vmem:[#allocation103_spill] sm:$0xff] %v3632_v27  ;;  %v3664_v27 = vld [vmem:[#allocation14 + $0x108] sm:$0xff]  ;;  %1013 = vmatpush.msrb.mxu2 %v3662_v53  ;;  %994 = vmatmul.f32.vlgmr.msrb.gmra.mxu1 %v3260_v0 }
 0x193   :  { %4965 = vst [vmem:[#allocation104_spill] sm:$0xff] %v3634_v29  ;;  %1033 = vmatpush.msrb.mxu3 %v3664_v27  ;;  %1014 = vmatmul.f32.vlgmr.msrb.gmra.mxu2 %v3256_v63  ;;  %v3688_v63 = vld [vmem:[%s4673_s9] sm:$0x3]  ;;  %v2490_v29 = vld [vmem:[#allocation10 + $0x1e0] sm:$0xff] }
 0x194   :  { %4966 = vst [vmem:[#allocation105_spill] sm:$0xff] %v3638_v18  ;;  %1034 = vmatmul.f32.vlgmr.msrb.gmra.mxu3 %v3260_v0  ;;  %v2489_v0 = vld [vmem:[#allocation10 + $0x1f0] sm:$0xff] }
 0x195   :  { %4967 = vst [vmem:[#allocation106_spill] sm:$0xff] %v3640_v48 }
 0x196   :  { %4968 = vst [vmem:[#allocation107_spill] sm:$0xff] %v3644_v14 }
 0x197   :  { %4969 = vst [vmem:[#allocation108_spill] sm:$0xff] %v3646_v8 }
 0x198   :  { %4970 = vst [vmem:[#allocation109_spill] sm:$0xff] %v3650_v19  ;;  %v3679_v19 = vld [vmem:[%s4671_s7] sm:$0x3] }
 0x199   :  { %4971 = vst [vmem:[#allocation110_spill] sm:$0xff] %v3652_v3  ;;  %v4773_v18 = vperm.slane %v3679_v19, 0  ;;  %v700_v3 = vperm.slane %v3679_v19, 1 }
 0x19a   :  { %4972 = vst [vmem:[#allocation111_spill] sm:$0xff] %v3656_v30 }
 0x19b   :  { %4973 = vst [vmem:[#allocation112_spill] sm:$0xff] %v3658_v12  ;;  %v784_v12 = vperm.slane %v3688_v63, 0 }
 0x19c   :  { %4974 = vst [vmem:[#allocation113_spill] sm:$0xff] %v3662_v53 }
 0x19d   :  { %4975 = vst [vmem:[#allocation114_spill] sm:$0xff] %v3664_v27 }
 0x19e   :  { %4976 = vst [vmem:[#allocation115_spill] sm:$0xff] %v3679_v19  ;;  %v785_v19 = vperm.slane %v3688_v63, 1 }
 0x1bf   :  { %v720_v30 = vpop.f32.mrf.mxu0  ;;  %v740_v27 = vpop.f32.mrf.mxu1 }
 0x1c0   :  { %v721_v53 = vadd.f32 %v720_v30, %v4773_v18  ;;  %v2491_v18 = vld [vmem:[#allocation10 + $0x1d0] sm:$0xff] }
 0x1c2   :  { %v741_v14 = vadd.f32 %v740_v27, %v721_v53 }
 0x1c4   :  { %1073 = vmatpush.xpose.msra.mxu1 %v741_v14 }
 0x1c6   :  { %v760_v48 = vpop.f32.mrf.mxu2  ;;  %v780_v30 = vpop.f32.mrf.mxu3 }
 0x1c7   :  { %v761_v8 = vadd.f32 %v760_v48, %v700_v3  ;;  %v2494_v48 = vld [vmem:[#allocation10 + $0x1b0] sm:$0xff] }
 0x1c8   :  { %1202 = vmatpush.msrb.mxu1 %v2489_v0 }
 0x1c9   :  { %v781_v53 = vadd.f32 %v780_v30, %v761_v8  ;;  %v805_v27 = vpop.f32.mrf.mxu0  ;;  %v825_v57 = vpop.f32.mrf.mxu1  ;;  %v2495_v8 = vld [vmem:[#allocation10 + $0xf0] sm:$0xff]  ;;  %v2497_v30 = vld [vmem:[#allocation10 + $0x1a0] sm:$0xff] }
 0x1ca   :  { %1203 = vmatpush.msrb.mxu1 %v2490_v29  ;;  %v806_v47 = vadd.f32 %v805_v27, %v784_v12  ;;  %v2496_v29 = vld [vmem:[#allocation10 + $0x1e8] sm:$0xff] }
 0x1cb   :  { %1113 = vmatpush.xpose.msra.mxu3 %v781_v53 }
 0x1cc   :  { %1204 = vmatpush.msrb.mxu1 %v2491_v18  ;;  %v826_v0 = vadd.f32 %v825_v57, %v806_v47  ;;  %v2499_v57 = vld [vmem:[#allocation10 + $0xe0] sm:$0xff]  ;;  %v2500_v47 = vld [vmem:[#allocation10 + $0x190] sm:$0xff] }
 0x1ce   :  { %1205 = vmatpush.msrb.mxu1 %v2492_v40  ;;  %1053 = vmatpush.xpose.msra.mxu0 %v826_v0  ;;  %v2498_v40 = vld [vmem:[#allocation10 + $0x1d8] sm:$0xff] }
 0x1cf   :  { %1242 = vmatpush.msrb.mxu3 %v2493_v39  ;;  %1074 = vmatmul.f32.vlgmr.msra.gmra.mxu1 %v826_v0  ;;  %v2501_v0 = vld [vmem:[#allocation10 + $0x1c8] sm:$0xff] }
 0x1d0   :  { %1206 = vmatpush.msrb.mxu1 %v2494_v48  ;;  %v845_v18 = vpop.f32.mrf.mxu2  ;;  %v865_v39 = vpop.f32.mrf.mxu3 }
 0x1d1   :  { %1243 = vmatpush.msrb.mxu3 %v2496_v29  ;;  %v846_v27 = vadd.f32 %v845_v18, %v785_v19  ;;  %1054 = vmatmul.f32.vlgmr.msra.gmra.mxu0 %v741_v14  ;;  %v2503_v29 = vld [vmem:[#allocation10 + $0x180] sm:$0xff]  ;;  %v2505_v18 = vld [vmem:[#allocation10 + $0xf8] sm:$0xff] }
 0x1d2   :  { %1182 = vmatpush.msrb.mxu0 %v2495_v8  ;;  %1207 = vmatpush.msrb.mxu1 %v2497_v30  ;;  %v2502_v8 = vld [vmem:[#allocation10 + $0xd0] sm:$0xff]  ;;  %v2504_v30 = vld [vmem:[#allocation10 + $0xc0] sm:$0xff]  ;;  %v2506_v14 = vld [vmem:[#allocation10 + $0x1b8] sm:$0xff] }
 0x1d3   :  { %1244 = vmatpush.msrb.mxu3 %v2498_v40  ;;  %v866_v48 = vadd.f32 %v865_v39, %v846_v27  ;;  %v2507_v40 = vld [vmem:[#allocation10 + $0x170] sm:$0xff]  ;;  %v2509_v27 = vld [vmem:[#allocation10 + $0xe8] sm:$0xff] }
 0x1d4   :  { %1183 = vmatpush.msrb.mxu0 %v2499_v57  ;;  %1208 = vmatpush.msrb.mxu1 %v2500_v47  ;;  %v2508_v57 = vld [vmem:[#allocation10 + $0xb0] sm:$0xff]  ;;  %v2510_v39 = vld [vmem:[#allocation10 + $0x1a8] sm:$0xff]  ;;  %v2511_v47 = vld [vmem:[#allocation10 + $0xa0] sm:$0xff] }
 0x1d5   :  { %1245 = vmatpush.msrb.mxu3 %v2501_v0  ;;  %1093 = vmatpush.xpose.msra.mxu2 %v866_v48  ;;  %v2512_v0 = vld [vmem:[#allocation10 + $0x160] sm:$0xff] }
 0x1d6   :  { %1184 = vmatpush.msrb.mxu0 %v2502_v8  ;;  %1209 = vmatpush.msrb.mxu1 %v2503_v29  ;;  %v2514_v8 = vld [vmem:[#allocation10 + $0x198] sm:$0xff]  ;;  %v2515_v29 = vld [vmem:[#allocation10 + $0x90] sm:$0xff] }
 0x1d7   :  { %1114 = vmatmul.f32.vlgmr.msra.gmra.mxu3 %v866_v48  ;;  %v2513_v48 = vld [vmem:[#allocation10 + $0xd8] sm:$0xff] }
 0x1d8   :  { %1185 = vmatpush.msrb.mxu0 %v2504_v30  ;;  %1246 = vmatpush.msrb.mxu3 %v2506_v14  ;;  %v2516_v30 = vld [vmem:[#allocation10 + $0x150] sm:$0xff]  ;;  %v2519_v14 = vld [vmem:[#allocation10 + $0x80] sm:$0xff] }
 0x1d9   :  { %1222 = vmatpush.msrb.mxu2 %v2505_v18  ;;  %1210 = vmatpush.msrb.mxu1 %v2507_v40  ;;  %v2517_v18 = vld [vmem:[#allocation10 + $0xc8] sm:$0xff]  ;;  %v2520_v40 = vld [vmem:[#allocation10 + $0x140] sm:$0xff] }
 0x1da   :  { %1094 = vmatmul.f32.vlgmr.msra.gmra.mxu2 %v781_v53  ;;  %1186 = vmatpush.msrb.mxu0 %v2508_v57  ;;  %v2518_v53 = vld [vmem:[#allocation10 + $0x188] sm:$0xff]  ;;  %v2521_v57 = vld [vmem:[#allocation10 + $0xb8] sm:$0xff] }
 0x1db   :  { %1223 = vmatpush.msrb.mxu2 %v2509_v27  ;;  %1247 = vmatpush.msrb.mxu3 %v2510_v39  ;;  %v2522_v27 = vld [vmem:[#allocation10 + $0x178] sm:$0xff]  ;;  %v2523_v39 = vld [vmem:[#allocation10 + $0x70] sm:$0xff] }
 0x1dc   :  { %1187 = vmatpush.msrb.mxu0 %v2511_v47  ;;  %1211 = vmatpush.msrb.mxu1 %v2512_v0  ;;  %v2524_v47 = vld [vmem:[#allocation10 + $0x130] sm:$0xff]  ;;  %v2525_v0 = vld [vmem:[#allocation10 + $0xa8] sm:$0xff] }
 0x1dd   :  { %1224 = vmatpush.msrb.mxu2 %v2513_v48  ;;  %1248 = vmatpush.msrb.mxu3 %v2514_v8  ;;  %v2526_v48 = vld [vmem:[#allocation10 + $0x168] sm:$0xff]  ;;  %v2527_v8 = vld [vmem:[#allocation10 + $0x60] sm:$0xff] }
 0x1de   :  { %1188 = vmatpush.msrb.mxu0 %v2515_v29  ;;  %1212 = vmatpush.msrb.mxu1 %v2516_v30  ;;  %v2528_v29 = vld [vmem:[#allocation10 + $0x120] sm:$0xff]  ;;  %v2529_v30 = vld [vmem:[#allocation10 + $0x98] sm:$0xff] }
 0x1df   :  { %1225 = vmatpush.msrb.mxu2 %v2517_v18  ;;  %1249 = vmatpush.msrb.mxu3 %v2518_v53  ;;  %v2530_v18 = vld [vmem:[#allocation10 + $0x158] sm:$0xff]  ;;  %v2531_v53 = vld [vmem:[#allocation10 + $0x50] sm:$0xff] }
 0x1e0   :  { %1189 = vmatpush.msrb.mxu0 %v2519_v14  ;;  %1213 = vmatpush.msrb.mxu1 %v2520_v40  ;;  %v2532_v14 = vld [vmem:[#allocation10 + $0x110] sm:$0xff]  ;;  %v2533_v40 = vld [vmem:[#allocation10 + $0x88] sm:$0xff] }
 0x1e1   :  { %1226 = vmatpush.msrb.mxu2 %v2521_v57  ;;  %1250 = vmatpush.msrb.mxu3 %v2522_v27  ;;  %v2534_v57 = vld [vmem:[#allocation10 + $0x148] sm:$0xff]  ;;  %v2535_v27 = vld [vmem:[#allocation10 + $0x40] sm:$0xff] }
 0x1e2   :  { %1190 = vmatpush.msrb.mxu0 %v2523_v39  ;;  %1214 = vmatpush.msrb.mxu1 %v2524_v47  ;;  %v2536_v39 = vld [vmem:[#allocation10 + $0x100] sm:$0xff]  ;;  %v2537_v47 = vld [vmem:[#allocation10 + $0x78] sm:$0xff] }
 0x1e3   :  { %1227 = vmatpush.msrb.mxu2 %v2525_v0  ;;  %1251 = vmatpush.msrb.mxu3 %v2526_v48  ;;  %v2538_v0 = vld [vmem:[#allocation10 + $0x138] sm:$0xff]  ;;  %v2539_v48 = vld [vmem:[#allocation10 + $0x30] sm:$0xff] }
 0x1e4   :  { %1191 = vmatpush.msrb.mxu0 %v2527_v8  ;;  %1215 = vmatpush.msrb.mxu1 %v2528_v29  ;;  %v2540_v8 = vld [vmem:[#allocation11 + $0x1f0] sm:$0xff]  ;;  %v2541_v29 = vld [vmem:[#allocation10 + $0x68] sm:$0xff] }
 0x1e5   :  { %1228 = vmatpush.msrb.mxu2 %v2529_v30  ;;  %1252 = vmatpush.msrb.mxu3 %v2530_v18  ;;  %v2542_v30 = vld [vmem:[#allocation10 + $0x128] sm:$0xff]  ;;  %v2543_v18 = vld [vmem:[#allocation10 + $0x20] sm:$0xff] }
 0x1e6   :  { %1192 = vmatpush.msrb.mxu0 %v2531_v53  ;;  %1216 = vmatpush.msrb.mxu1 %v2532_v14  ;;  %v2544_v53 = vld [vmem:[#allocation11 + $0x1e0] sm:$0xff]  ;;  %v2545_v14 = vld [vmem:[#allocation10 + $0x58] sm:$0xff] }
 0x1e7   :  { %1229 = vmatpush.msrb.mxu2 %v2533_v40  ;;  %1253 = vmatpush.msrb.mxu3 %v2534_v57  ;;  %v2546_v40 = vld [vmem:[#allocation10 + $0x118] sm:$0xff]  ;;  %v2547_v57 = vld [vmem:[#allocation10 + $0x10] sm:$0xff] }
 0x1e8   :  { %1193 = vmatpush.msrb.mxu0 %v2535_v27  ;;  %1217 = vmatpush.msrb.mxu1 %v2536_v39  ;;  %v2548_v27 = vld [vmem:[#allocation11 + $0x1d0] sm:$0xff]  ;;  %v2549_v39 = vld [vmem:[#allocation10 + $0x48] sm:$0xff] }
 0x1e9   :  { %1230 = vmatpush.msrb.mxu2 %v2537_v47  ;;  %1254 = vmatpush.msrb.mxu3 %v2538_v0  ;;  %v2550_v47 = vld [vmem:[#allocation10 + $0x108] sm:$0xff]  ;;  %v2551_v0 = vld [vmem:[#allocation10] sm:$0xff] }
 0x1ea   :  { %1218 = vmatmul.f32.vlgmr.msrb.gmra.mxu1 %v3447_v17  ;;  %1194 = vmatpush.msrb.mxu0 %v2539_v48  ;;  %v2552_v48 = vld [vmem:[#allocation11 + $0x1c0] sm:$0xff] }
 0x1eb   :  { %1282 = vmatpush.msra.mxu1 %v2540_v8  ;;  %1231 = vmatpush.msrb.mxu2 %v2541_v29  ;;  %v2553_v8 = vld [vmem:[#allocation11 + $0x1f8] sm:$0xff] }
 0x1ec   :  { %1255 = vmatpush.msrb.mxu3 %v2542_v30  ;;  %1195 = vmatpush.msrb.mxu0 %v2543_v18  ;;  %v2554_v29 = vld [vmem:[#allocation10 + $0x38] sm:$0xff]  ;;  %v2555_v30 = vld [vmem:[#allocation11 + $0x1b0] sm:$0xff] }
 0x1ed   :  { %1283 = vmatpush.msra.mxu1 %v2544_v53  ;;  %1232 = vmatpush.msrb.mxu2 %v2545_v14  ;;  %v2556_v18 = vld [vmem:[#allocation11 + $0xf0] sm:$0xff]  ;;  %v2557_v53 = vld [vmem:[#allocation11 + $0x1e8] sm:$0xff] }
 0x1ee   :  { %1256 = vmatpush.msrb.mxu3 %v2546_v40  ;;  %1196 = vmatpush.msrb.mxu0 %v2547_v57  ;;  %v2558_v14 = vld [vmem:[#allocation10 + $0x28] sm:$0xff]  ;;  %v2559_v40 = vld [vmem:[#allocation11 + $0x1a0] sm:$0xff] }
 0x1ef   :  { %1284 = vmatpush.msra.mxu1 %v2548_v27  ;;  %1233 = vmatpush.msrb.mxu2 %v2549_v39  ;;  %v2560_v57 = vld [vmem:[#allocation11 + $0xe0] sm:$0xff]  ;;  %v2561_v27 = vld [vmem:[#allocation11 + $0x1d8] sm:$0xff] }
 0x1f0   :  { %1257 = vmatpush.msrb.mxu3 %v2550_v47  ;;  %1197 = vmatpush.msrb.mxu0 %v2551_v0  ;;  %v2562_v39 = vld [vmem:[#allocation10 + $0x18] sm:$0xff]  ;;  %v2563_v47 = vld [vmem:[#allocation11 + $0x190] sm:$0xff] }
 0x1f1   :  { %1258 = vmatmul.f32.vlgmr.msrb.gmra.mxu3 %v3447_v17  ;;  %1285 = vmatpush.msra.mxu1 %v2552_v48  ;;  %v2564_v0 = vld [vmem:[#allocation11 + $0xd0] sm:$0xff]  ;;  %v2565_v48 = vld [vmem:[#allocation11 + $0x1c8] sm:$0xff] }
 0x1f2   :  { %1322 = vmatpush.msra.mxu3 %v2553_v8  ;;  %1234 = vmatpush.msrb.mxu2 %v2554_v29  ;;  %v2566_v8 = vld [vmem:[#allocation10 + $0x8] sm:$0xff]  ;;  %v2567_v29 = vld [vmem:[#allocation11 + $0x180] sm:$0xff] }
 0x1f3   :  { %1198 = vmatmul.f32.vlgmr.msrb.gmra.mxu0 %v3451_v26  ;;  %1286 = vmatpush.msra.mxu1 %v2555_v30  ;;  %v2568_v30 = vld [vmem:[#allocation11 + $0xc0] sm:$0xff] }
 0x1f4   :  { %1262 = vmatpush.msra.mxu0 %v2556_v18  ;;  %1323 = vmatpush.msra.mxu3 %v2557_v53  ;;  %v2569_v18 = vld [vmem:[#allocation11 + $0xf8] sm:$0xff] }
 0x1f5   :  { %1235 = vmatpush.msrb.mxu2 %v2558_v14  ;;  %1287 = vmatpush.msra.mxu1 %v2559_v40  ;;  %v2570_v53 = vld [vmem:[#allocation11 + $0x1b8] sm:$0xff]  ;;  %v2571_v14 = vld [vmem:[#allocation11 + $0xb0] sm:$0xff] }
 0x1f6   :  { %1263 = vmatpush.msra.mxu0 %v2560_v57  ;;  %1324 = vmatpush.msra.mxu3 %v2561_v27  ;;  %v2572_v40 = vld [vmem:[#allocation11 + $0x170] sm:$0xff]  ;;  %v2573_v57 = vld [vmem:[#allocation11 + $0xe8] sm:$0xff] }
 0x1f7   :  { %1236 = vmatpush.msrb.mxu2 %v2562_v39  ;;  %1288 = vmatpush.msra.mxu1 %v2563_v47  ;;  %v2574_v27 = vld [vmem:[#allocation11 + $0x1a8] sm:$0xff]  ;;  %v2575_v39 = vld [vmem:[#allocation11 + $0xa0] sm:$0xff] }
 0x1f8   :  { %1264 = vmatpush.msra.mxu0 %v2564_v0  ;;  %1325 = vmatpush.msra.mxu3 %v2565_v48  ;;  %v2576_v47 = vld [vmem:[#allocation11 + $0x160] sm:$0xff]  ;;  %v2577_v0 = vld [vmem:[#allocation11 + $0xd8] sm:$0xff] }
 0x1f9   :  { %1237 = vmatpush.msrb.mxu2 %v2566_v8  ;;  %1289 = vmatpush.msra.mxu1 %v2567_v29  ;;  %v2578_v48 = vld [vmem:[#allocation11 + $0x198] sm:$0xff]  ;;  %v2579_v8 = vld [vmem:[#allocation11 + $0x90] sm:$0xff] }
 0x1fa   :  { %1238 = vmatmul.f32.vlgmr.msrb.gmra.mxu2 %v3451_v26  ;;  %1265 = vmatpush.msra.mxu0 %v2568_v30  ;;  %v2580_v29 = vld [vmem:[#allocation11 + $0x150] sm:$0xff]  ;;  %v2581_v30 = vld [vmem:[#allocation11 + $0xc8] sm:$0xff] }
 0x1fb   :  { %1302 = vmatpush.msra.mxu2 %v2569_v18  ;;  %1326 = vmatpush.msra.mxu3 %v2570_v53  ;;  %v2582_v18 = vld [vmem:[#allocation11 + $0x188] sm:$0xff]  ;;  %v2583_v53 = vld [vmem:[#allocation11 + $0x80] sm:$0xff] }
 0x1fc   :  { %1266 = vmatpush.msra.mxu0 %v2571_v14  ;;  %1290 = vmatpush.msra.mxu1 %v2572_v40  ;;  %v2584_v14 = vld [vmem:[#allocation11 + $0x140] sm:$0xff]  ;;  %v2585_v40 = vld [vmem:[#allocation11 + $0xb8] sm:$0xff] }
 0x1fd   :  { %1303 = vmatpush.msra.mxu2 %v2573_v57  ;;  %1327 = vmatpush.msra.mxu3 %v2574_v27  ;;  %v2586_v57 = vld [vmem:[#allocation11 + $0x178] sm:$0xff]  ;;  %v2587_v27 = vld [vmem:[#allocation11 + $0x70] sm:$0xff] }
 0x1fe   :  { %1267 = vmatpush.msra.mxu0 %v2575_v39  ;;  %1291 = vmatpush.msra.mxu1 %v2576_v47  ;;  %v2588_v39 = vld [vmem:[#allocation11 + $0x130] sm:$0xff]  ;;  %v2589_v47 = vld [vmem:[#allocation11 + $0xa8] sm:$0xff] }
 0x1ff   :  { %1304 = vmatpush.msra.mxu2 %v2577_v0  ;;  %1328 = vmatpush.msra.mxu3 %v2578_v48  ;;  %v2590_v0 = vld [vmem:[#allocation11 + $0x168] sm:$0xff]  ;;  %v2591_v48 = vld [vmem:[#allocation11 + $0x60] sm:$0xff] }
 0x200   :  { %1268 = vmatpush.msra.mxu0 %v2579_v8  ;;  %1292 = vmatpush.msra.mxu1 %v2580_v29  ;;  %v2592_v8 = vld [vmem:[#allocation11 + $0x120] sm:$0xff]  ;;  %v2593_v29 = vld [vmem:[#allocation11 + $0x98] sm:$0xff] }
 0x201   :  { %1305 = vmatpush.msra.mxu2 %v2581_v30  ;;  %1329 = vmatpush.msra.mxu3 %v2582_v18  ;;  %v2594_v30 = vld [vmem:[#allocation11 + $0x158] sm:$0xff]  ;;  %v2595_v18 = vld [vmem:[#allocation11 + $0x50] sm:$0xff] }
 0x202   :  { %1269 = vmatpush.msra.mxu0 %v2583_v53  ;;  %1293 = vmatpush.msra.mxu1 %v2584_v14  ;;  %v2596_v53 = vld [vmem:[#allocation11 + $0x110] sm:$0xff]  ;;  %v2597_v14 = vld [vmem:[#allocation11 + $0x88] sm:$0xff] }
 0x203   :  { %1306 = vmatpush.msra.mxu2 %v2585_v40  ;;  %1330 = vmatpush.msra.mxu3 %v2586_v57  ;;  %v2598_v40 = vld [vmem:[#allocation11 + $0x148] sm:$0xff]  ;;  %v2599_v57 = vld [vmem:[#allocation11 + $0x40] sm:$0xff] }
 0x204   :  { %1270 = vmatpush.msra.mxu0 %v2587_v27  ;;  %1294 = vmatpush.msra.mxu1 %v2588_v39  ;;  %v2600_v27 = vld [vmem:[#allocation11 + $0x100] sm:$0xff]  ;;  %v2601_v39 = vld [vmem:[#allocation11 + $0x78] sm:$0xff] }
 0x205   :  { %1307 = vmatpush.msra.mxu2 %v2589_v47  ;;  %1331 = vmatpush.msra.mxu3 %v2590_v0  ;;  %v2602_v47 = vld [vmem:[#allocation11 + $0x138] sm:$0xff]  ;;  %v2603_v0 = vld [vmem:[#allocation11 + $0x30] sm:$0xff] }
 0x206   :  { %1271 = vmatpush.msra.mxu0 %v2591_v48  ;;  %1295 = vmatpush.msra.mxu1 %v2592_v8  ;;  %v2604_v48 = vld [vmem:[#allocation11 + $0x68] sm:$0xff] }
 0x207   :  { %1308 = vmatpush.msra.mxu2 %v2593_v29  ;;  %1332 = vmatpush.msra.mxu3 %v2594_v30  ;;  %v2605_v8 = vld [vmem:[#allocation11 + $0x128] sm:$0xff]  ;;  %v2606_v29 = vld [vmem:[#allocation11 + $0x20] sm:$0xff]  ;;  %v2607_v30 = vld [vmem:[#allocation11 + $0x58] sm:$0xff] }
 0x208   :  { %1272 = vmatpush.msra.mxu0 %v2595_v18  ;;  %1296 = vmatpush.msra.mxu1 %v2596_v53  ;;  %v2608_v18 = vld [vmem:[#allocation11 + $0x118] sm:$0xff]  ;;  %v2609_v53 = vld [vmem:[#allocation11 + $0x10] sm:$0xff] }
 0x209   :  { %1309 = vmatpush.msra.mxu2 %v2597_v14  ;;  %1333 = vmatpush.msra.mxu3 %v2598_v40  ;;  %v2610_v14 = vld [vmem:[#allocation11 + $0x48] sm:$0xff] }
 0x20a   :  { %1273 = vmatpush.msra.mxu0 %v2599_v57  ;;  %1297 = vmatpush.msra.mxu1 %v2600_v27  ;;  %v2611_v40 = vld [vmem:[#allocation11 + $0x108] sm:$0xff]  ;;  %v3792_v57 = vpop.f32.mrf.mxu0 }
 0x20b   :  { %1310 = vmatpush.msra.mxu2 %v2601_v39  ;;  %1334 = vmatpush.msra.mxu3 %v2602_v47  ;;  %v5016_v27 = vld [vmem:[#allocation67_spill] sm:$0xff]  ;;  %v5017_v39 = vld [vmem:[#allocation84_spill] sm:$0xff]  ;;  %v5018_v47 = vld [vmem:[#allocation58_spill] sm:$0xff] }
 0x20c   :  { %1298 = vmatmul.f32.vlgmr.msra.gmra.mxu1 %v3504_v9  ;;  %1274 = vmatpush.msra.mxu0 %v2603_v0  ;;  %v5019_v0 = vld [vmem:[#allocation74_spill] sm:$0xff] }
 0x20d   :  { %1362 = vmatpush.msrb.mxu1 %v3196_v34  ;;  %1311 = vmatpush.msra.mxu2 %v2604_v48  ;;  %v2612_v34 = vld [vmem:[#allocation11] sm:$0xff]  ;;  %v5020_v48 = vld [vmem:[#allocation71_spill] sm:$0xff] }
 0x20e   :  { %1335 = vmatpush.msra.mxu3 %v2605_v8  ;;  %1275 = vmatpush.msra.mxu0 %v2606_v29  ;;  %v5021_v8 = vld [vmem:[#allocation88_spill] sm:$0xff]  ;;  %v5023_v29 = vld [vmem:[#allocation78_spill] sm:$0xff] }
 0x20f   :  { %1363 = vmatpush.msrb.mxu1 %v3211_v43  ;;  %1312 = vmatpush.msra.mxu2 %v2607_v30  ;;  %v2613_v43 = vld [vmem:[#allocation11 + $0x38] sm:$0xff]  ;;  %v5024_v30 = vld [vmem:[#allocation75_spill] sm:$0xff] }
 0x210   :  { %1336 = vmatpush.msra.mxu3 %v2608_v18  ;;  %1276 = vmatpush.msra.mxu0 %v2609_v53  ;;  %v5025_v18 = vld [vmem:[#allocation92_spill] sm:$0xff]  ;;  %v5026_v53 = vld [vmem:[#allocation65_spill] sm:$0xff] }
 0x211   :  { %1364 = vmatpush.msrb.mxu1 %v3229_v15  ;;  %1313 = vmatpush.msra.mxu2 %v2610_v14  ;;  %v2614_v15 = vld [vmem:[#allocation11 + $0x28] sm:$0xff]  ;;  %v5027_v14 = vld [vmem:[#allocation82_spill] sm:$0xff] }
 0x212   :  { %1337 = vmatpush.msra.mxu3 %v2611_v40  ;;  %1277 = vmatpush.msra.mxu0 %v2612_v34  ;;  %v5028_v40 = vld [vmem:[#allocation79_spill] sm:$0xff]  ;;  %v5029_v34 = vld [vmem:[#allocation96_spill] sm:$0xff] }
 0x213   :  { %1338 = vmatmul.f32.vlgmr.msra.gmra.mxu3 %v3504_v9  ;;  %1365 = vmatpush.msrb.mxu1 %v3246_v60  ;;  %v2615_v60 = vld [vmem:[#allocation11 + $0x18] sm:$0xff] }
 0x214   :  { %1402 = vmatpush.msrb.mxu3 %v3202_v37  ;;  %1314 = vmatpush.msra.mxu2 %v2613_v43  ;;  %v2616_v37 = vld [vmem:[#allocation11 + $0x8] sm:$0xff]  ;;  %v5030_v43 = vld [vmem:[#allocation69_spill] sm:$0xff] }
 0x215   :  { %1278 = vmatmul.f32.vlgmr.msra.gmra.mxu0 %v3508_v51  ;;  %1366 = vmatpush.msrb.mxu1 %v3270_v2  ;;  %v4991_v2 = vld [vmem:[#allocation35_spill] sm:$0xff] }
 0x216   :  { %1342 = vmatpush.msrb.mxu0 %v3194_v33  ;;  %1403 = vmatpush.msrb.mxu3 %v3220_v50  ;;  %v4977_v33 = vld [vmem:[#allocation44_spill] sm:$0xff]  ;;  %v4982_v50 = vld [vmem:[#allocation31_spill] sm:$0xff] }
 0x217   :  { %1315 = vmatpush.msra.mxu2 %v2614_v15  ;;  %1367 = vmatpush.msrb.mxu1 %v3284_v11  ;;  %v4996_v11 = vld [vmem:[#allocation51_spill] sm:$0xff]  ;;  %v5031_v15 = vld [vmem:[#allocation86_spill] sm:$0xff] }
 0x218   :  { %1343 = vmatpush.msrb.mxu0 %v3209_v42  ;;  %1404 = vmatpush.msrb.mxu3 %v3235_v56  ;;  %v4979_v42 = vld [vmem:[#allocation36_spill] sm:$0xff]  ;;  %v4986_v56 = vld [vmem:[#allocation42_spill] sm:$0xff] }
 0x219   :  { %1316 = vmatpush.msra.mxu2 %v2615_v60  ;;  %1368 = vmatpush.msrb.mxu1 %v3299_v24  ;;  %v4999_v24 = vld [vmem:[#allocation45_spill] sm:$0xff]  ;;  %v3810_v60 = vpop.f32.mrf.mxu0 }
 0x21a   :  { %1344 = vmatpush.msrb.mxu0 %v3227_v55  ;;  %1405 = vmatpush.msrb.mxu3 %v3252_v62  ;;  %v4983_v55 = vld [vmem:[#allocation39_spill] sm:$0xff]  ;;  %v4989_v62 = vld [vmem:[#allocation46_spill] sm:$0xff] }
 0x21b   :  { %1317 = vmatpush.msra.mxu2 %v2616_v37  ;;  %1369 = vmatpush.msrb.mxu1 %v3314_v31  ;;  %v5002_v31 = vld [vmem:[#allocation59_spill] sm:$0xff] }
 0x21c   :  { %1318 = vmatmul.f32.vlgmr.msra.gmra.mxu2 %v3508_v51  ;;  %1345 = vmatpush.msrb.mxu0 %v3244_v59  ;;  %v4987_v59 = vld [vmem:[#allocation40_spill] sm:$0xff]  ;;  %v5032_v37 = vld [vmem:[#allocation83_spill] sm:$0xff] }
 0x21d   :  { %1382 = vmatpush.msrb.mxu2 %v3200_v36  ;;  %1406 = vmatpush.msrb.mxu3 %v3278_v5  ;;  %v4978_v36 = vld [vmem:[#allocation30_spill] sm:$0xff] }
 0x21e   :  { %1346 = vmatpush.msrb.mxu0 %v3268_v1  ;;  %1370 = vmatpush.msrb.mxu1 %v3327_v46  ;;  %v4990_v1 = vld [vmem:[#allocation43_spill] sm:$0xff]  ;;  %v4993_v5 = vld [vmem:[#allocation38_spill] sm:$0xff]  ;;  %v5005_v46 = vld [vmem:[#allocation57_spill] sm:$0xff] }
 0x21f   :  { %1383 = vmatpush.msrb.mxu2 %v3218_v49  ;;  %1407 = vmatpush.msrb.mxu3 %v3292_v22  ;;  %v4981_v49 = vld [vmem:[#allocation48_spill] sm:$0xff] }
 0x220   :  { %1347 = vmatpush.msrb.mxu0 %v3282_v10  ;;  %1371 = vmatpush.msrb.mxu1 %v3341_v6  ;;  %v4995_v10 = vld [vmem:[#allocation53_spill] sm:$0xff]  ;;  %v4997_v22 = vld [vmem:[#allocation64_spill] sm:$0xff] }
 0x221   :  { %1384 = vmatpush.msrb.mxu2 %v3233_v16  ;;  %1408 = vmatpush.msrb.mxu3 %v3306_v28  ;;  %v4985_v16 = vld [vmem:[#allocation32_spill] sm:$0xff] }
 0x222   :  { %1348 = vmatpush.msrb.mxu0 %v3297_v23  ;;  %1372 = vmatpush.msrb.mxu1 %v3356_v38  ;;  %v4980_v38 = vld [vmem:[#allocation34_spill] sm:$0xff]  ;;  %v4998_v23 = vld [vmem:[#allocation56_spill] sm:$0xff] }
 0x223   :  { %1385 = vmatpush.msrb.mxu2 %v3250_v61  ;;  %1409 = vmatpush.msrb.mxu3 %v3320_v41  ;;  %v4988_v61 = vld [vmem:[#allocation33_spill] sm:$0xff]  ;;  %v5000_v28 = vld [vmem:[#allocation68_spill] sm:$0xff] }
 0x224   :  { %1349 = vmatpush.msrb.mxu0 %v3312_v32  ;;  %1373 = vmatpush.msrb.mxu1 %v3370_v25  ;;  %v4984_v25 = vld [vmem:[#allocation37_spill] sm:$0xff]  ;;  %v5001_v32 = vld [vmem:[#allocation54_spill] sm:$0xff]  ;;  %v5008_v6 = vld [vmem:[#allocation76_spill] sm:$0xff] }
 0x225   :  { %1386 = vmatpush.msrb.mxu2 %v3276_v4  ;;  %1410 = vmatpush.msrb.mxu3 %v3335_v13  ;;  %v4992_v4 = vld [vmem:[#allocation47_spill] sm:$0xff]  ;;  %v5003_v41 = vld [vmem:[#allocation49_spill] sm:$0xff]  ;;  %v5007_v13 = vld [vmem:[#allocation50_spill] sm:$0xff] }
 0x226   :  { %1350 = vmatpush.msrb.mxu0 %v3325_v45  ;;  %1374 = vmatpush.msrb.mxu1 %v4977_v33  ;;  %v5004_v45 = vld [vmem:[#allocation72_spill] sm:$0xff] }
 0x227   :  { %1387 = vmatpush.msrb.mxu2 %v4978_v36  ;;  %1411 = vmatpush.msrb.mxu3 %v4979_v42  ;;  %v5033_v33 = vld [vmem:[#allocation100_spill] sm:$0xff]  ;;  %v5034_v36 = vld [vmem:[#allocation73_spill] sm:$0xff]  ;;  %v5035_v42 = vld [vmem:[#allocation90_spill] sm:$0xff] }
 0x228   :  { %1351 = vmatpush.msrb.mxu0 %v4980_v38  ;;  %1375 = vmatpush.msrb.mxu1 %v4981_v49  ;;  %v5036_v38 = vld [vmem:[#allocation87_spill] sm:$0xff]  ;;  %v5037_v49 = vld [vmem:[#allocation104_spill] sm:$0xff] }
 0x229   :  { %1388 = vmatpush.msrb.mxu2 %v4982_v50  ;;  %1412 = vmatpush.msrb.mxu3 %v4983_v55  ;;  %v5038_v50 = vld [vmem:[#allocation77_spill] sm:$0xff]  ;;  %v5039_v55 = vld [vmem:[#allocation94_spill] sm:$0xff] }
 0x22a   :  { %1352 = vmatpush.msrb.mxu0 %v4984_v25  ;;  %1376 = vmatpush.msrb.mxu1 %v3414_v58  ;;  %v5006_v58 = vld [vmem:[#allocation62_spill] sm:$0xff]  ;;  %v5040_v25 = vld [vmem:[#allocation91_spill] sm:$0xff] }
 0x22b   :  { %1389 = vmatpush.msrb.mxu2 %v4985_v16  ;;  %1413 = vmatpush.msrb.mxu3 %v4986_v56  ;;  %v5041_v16 = vld [vmem:[#allocation108_spill] sm:$0xff]  ;;  %v930_v56 = vpop.f32.mrf.mxu2 }
 0x22c   :  { %1353 = vmatpush.msrb.mxu0 %v4987_v59  ;;  %1377 = vmatpush.msrb.mxu1 %v3436_v44  ;;  %v4994_v44 = vld [vmem:[#allocation41_spill] sm:$0xff] }
 0x22d   :  { %1390 = vmatpush.msrb.mxu2 %v4988_v61  ;;  %1414 = vmatpush.msrb.mxu3 %v4989_v62  ;;  %v5042_v59 = vld [vmem:[#allocation81_spill] sm:$0xff]  ;;  %v5043_v61 = vld [vmem:[#allocation98_spill] sm:$0xff]  ;;  %v5044_v62 = vld [vmem:[#allocation95_spill] sm:$0xff] }
 0x22e   :  { %1378 = vmatmul.f32.vlgmr.msrb.gmra.mxu1 %v3447_v17  ;;  %1354 = vmatpush.msrb.mxu0 %v4990_v1  ;;  %v5045_v1 = vld [vmem:[#allocation112_spill] sm:$0xff] }
 0x22f   :  { %1442 = vmatpush.msra.mxu1 %v3466_v21  ;;  %1391 = vmatpush.msrb.mxu2 %v4991_v2  ;;  %v5014_v21 = vld [vmem:[#allocation55_spill] sm:$0xff]  ;;  %v5046_v2 = vld [vmem:[#allocation85_spill] sm:$0xff] }
 0x230   :  { %1415 = vmatpush.msrb.mxu3 %v3408_v52  ;;  %1355 = vmatpush.msrb.mxu0 %v4992_v4  ;;  %v5011_v52 = vld [vmem:[#allocation52_spill] sm:$0xff]  ;;  %v5047_v4 = vld [vmem:[#allocation102_spill] sm:$0xff] }
 0x231   :  { %1443 = vmatpush.msra.mxu1 %v3478_v7  ;;  %1392 = vmatpush.msrb.mxu2 %v4993_v5  ;;  %v5015_v7 = vld [vmem:[#allocation70_spill] sm:$0xff]  ;;  %v5048_v5 = vld [vmem:[#allocation99_spill] sm:$0xff] }
 0x232   :  { %1416 = vmatpush.msrb.mxu3 %v3420_v54  ;;  %1356 = vmatpush.msrb.mxu0 %v3412_v20  ;;  %v5010_v54 = vld [vmem:[#allocation66_spill] sm:$0xff]  ;;  %v5012_v20 = vld [vmem:[#allocation80_spill] sm:$0xff] }
 0x233   :  { %1444 = vmatpush.msra.mxu1 %v3494_v35  ;;  %1393 = vmatpush.msrb.mxu2 %v4994_v44  ;;  %v5009_v35 = vld [vmem:[#allocation60_spill] sm:$0xff] }
 0x234   :  { %1417 = vmatpush.msrb.mxu3 %v4995_v10  ;;  %1357 = vmatpush.msrb.mxu0 %v4996_v11  ;;  %v5049_v10 = vld [vmem:[#allocation89_spill] sm:$0xff]  ;;  %v5050_v11 = vld [vmem:[#allocation106_spill] sm:$0xff] }
 0x235   :  { %1418 = vmatmul.f32.vlgmr.msrb.gmra.mxu3 %v3447_v17  ;;  %1445 = vmatpush.msra.mxu1 %v4997_v22  ;;  %v5013_v17 = vld [vmem:[#allocation63_spill] sm:$0xff] }
 0x236   :  { %1482 = vmatpush.msra.mxu3 %v4998_v23  ;;  %1394 = vmatpush.msrb.mxu2 %v4999_v24  ;;  %v5051_v23 = vld [vmem:[#allocation103_spill] sm:$0xff]  ;;  %v5052_v24 = vld [vmem:[#allocation93_spill] sm:$0xff] }
 0x237   :  { %1358 = vmatmul.f32.vlgmr.msrb.gmra.mxu0 %v3451_v26  ;;  %1446 = vmatpush.msra.mxu1 %v5000_v28  ;;  %v5053_v28 = vld [vmem:[#allocation110_spill] sm:$0xff] }
 0x238   :  { %1422 = vmatpush.msra.mxu0 %v5001_v32  ;;  %1483 = vmatpush.msra.mxu3 %v5002_v31  ;;  %v5054_v32 = vld [vmem:[#allocation107_spill] sm:$0xff]  ;;  %v1015_v31 = vpop.f32.mrf.mxu2 }
 0x239   :  { %1395 = vmatpush.msrb.mxu2 %v5003_v41  ;;  %1447 = vmatpush.msra.mxu1 %v5004_v45  ;;  %v5055_v41 = vld [vmem:[#allocation97_spill] sm:$0xff]  ;;  %v5056_v45 = vld [vmem:[#allocation114_spill] sm:$0xff] }
 0x23a   :  { %1423 = vmatpush.msra.mxu0 %v5005_v46  ;;  %1484 = vmatpush.msra.mxu3 %v5006_v58  ;;  %v5057_v46 = vld [vmem:[#allocation111_spill] sm:$0xff]  ;;  %v5058_v58 = vld [vmem:[#allocation101_spill] sm:$0xff] }
 0x23b   :  { %1396 = vmatpush.msrb.mxu2 %v5007_v13  ;;  %1448 = vmatpush.msra.mxu1 %v5008_v6  ;;  %v5059_v13 = vld [vmem:[#allocation105_spill] sm:$0xff]  ;;  %v910_v6 = vpop.f32.mrf.mxu1 }
 0x23c   :  { %1424 = vmatpush.msra.mxu0 %v5009_v35  ;;  %1485 = vmatpush.msra.mxu3 %v5010_v54  ;;  %v5060_v35 = vld [vmem:[#allocation109_spill] sm:$0xff] }
 0x23d   :  { %1397 = vmatpush.msrb.mxu2 %v5011_v52  ;;  %1449 = vmatpush.msra.mxu1 %v5012_v20  ;;  %v5061_v54 = vld [vmem:[#allocation113_spill] sm:$0xff] }
 0x23e   :  { %1398 = vmatmul.f32.vlgmr.msrb.gmra.mxu2 %v3451_v26  ;;  %1425 = vmatpush.msra.mxu0 %v5013_v17  ;;  %v5022_v26 = vld [vmem:[#allocation61_spill] sm:$0xff]  ;;  %v950_v17 = vpop.f32.mrf.mxu3 }
 0x23f   :  { %1462 = vmatpush.msra.mxu2 %v5014_v21  ;;  %1486 = vmatpush.msra.mxu3 %v5015_v7  ;;  %v413_v21 = vld [vmem:[%s4675_s11] sm:$0x3] }
 0x240   :  { %1426 = vmatpush.msra.mxu0 %v5016_v27  ;;  %1450 = vmatpush.msra.mxu1 %v5017_v39  ;;  %v869_v27 = vperm.slane %v413_v21, 0 }
 0x241   :  { %1463 = vmatpush.msra.mxu2 %v5018_v47  ;;  %1487 = vmatpush.msra.mxu3 %v5019_v0 }
 0x242   :  { %1427 = vmatpush.msra.mxu0 %v5020_v48  ;;  %1451 = vmatpush.msra.mxu1 %v5021_v8  ;;  %v891_v47 = vadd.f32 %v3792_v57, %v869_v27  ;;  %v5062_v48 = vld [vmem:[#allocation115_spill] sm:$0xff] }
 0x243   :  { %1464 = vmatpush.msra.mxu2 %v5022_v26  ;;  %1488 = vmatpush.msra.mxu3 %v5023_v29  ;;  %v995_v20 = vpop.f32.mrf.mxu1  ;;  %v5063_v8 = vperm.slane %v5062_v48, 0 }
 0x244   :  { %1428 = vmatpush.msra.mxu0 %v5024_v30  ;;  %1452 = vmatpush.msra.mxu1 %v5025_v18  ;;  %v911_v30 = vadd.f32 %v910_v6, %v891_v47 }
 0x245   :  { %1465 = vmatpush.msra.mxu2 %v5026_v53  ;;  %1489 = vmatpush.msra.mxu3 %v5027_v14  ;;  %v870_v53 = vperm.slane %v413_v21, 1 }
 0x246   :  { %1429 = vmatpush.msra.mxu0 %v5028_v40  ;;  %1453 = vmatpush.msra.mxu1 %v5029_v34  ;;  %v1035_v39 = vpop.f32.mrf.mxu3 }
 0x247   :  { %1466 = vmatpush.msra.mxu2 %v5030_v43  ;;  %1490 = vmatpush.msra.mxu3 %v5031_v15  ;;  %v931_v14 = vadd.f32 %v930_v56, %v870_v53 }
 0x248   :  { %1430 = vmatpush.msra.mxu0 %v5032_v37  ;;  %1454 = vmatpush.msra.mxu1 %v5033_v33  ;;  %v3869_v37 = vld [vmem:[%s4677_s13] sm:$0x3] }
 0x249   :  { %1467 = vmatpush.msra.mxu2 %v5034_v36  ;;  %1491 = vmatpush.msra.mxu3 %v5035_v42  ;;  %v951_v57 = vadd.f32 %v950_v17, %v931_v14  ;;  %v4781_v33 = vperm.slane %v3869_v37, 0 }
 0x24a   :  { %1431 = vmatpush.msra.mxu0 %v5036_v38  ;;  %1455 = vmatpush.msra.mxu1 %v5037_v49 }
 0x24b   :  { %1468 = vmatpush.msra.mxu2 %v5038_v50  ;;  %1492 = vmatpush.msra.mxu3 %v5039_v55  ;;  %v976_v36 = vadd.f32 %v3810_v60, %v4781_v33  ;;  %v4780_v55 = vperm.slane %v3869_v37, 1 }
 0x24c   :  { %1432 = vmatpush.msra.mxu0 %v5040_v25  ;;  %1456 = vmatpush.msra.mxu1 %v5041_v16  ;;  %v3857_v7 = vpop.f32.mrf.mxu1 }
 0x24d   :  { %1469 = vmatpush.msra.mxu2 %v5042_v59  ;;  %1493 = vmatpush.msra.mxu3 %v5043_v61  ;;  %v996_v50 = vadd.f32 %v995_v20, %v976_v36  ;;  %v1016_v25 = vadd.f32 %v1015_v31, %v4780_v55  ;;  %v4083_v55 = vld [vmem:[#allocation16 + $0x190] sm:$0xff] }
 0x24e   :  { %1433 = vmatpush.msra.mxu0 %v5044_v62  ;;  %1457 = vmatpush.msra.mxu1 %v5045_v1  ;;  %v3830_v44 = vpop.f32.mrf.mxu0 }
 0x24f   :  { %1470 = vmatpush.msra.mxu2 %v5046_v2  ;;  %1494 = vmatpush.msra.mxu3 %v5047_v4  ;;  %v1583_v22 = vsel %vm1582_vm13, %v3830_v44, -inf  ;;  %v1036_v61 = vadd.f32 %v1035_v39, %v1016_v25 }
 0x250   :  { %1458 = vmatmul.f32.vlgmr.msra.gmra.mxu1 %v3504_v9  ;;  %1434 = vmatpush.msra.mxu0 %v5048_v5 }
 0x251   :  { %1471 = vmatpush.msra.mxu2 %v5049_v10  ;;  %1495 = vmatpush.msra.mxu3 %v5050_v11 }
 0x252   :  { %1435 = vmatpush.msra.mxu0 %v5051_v23  ;;  %1584 = vmax.xlane.f32.xlu2 %v1583_v22 }
 0x253   :  { %1472 = vmatpush.msra.mxu2 %v5052_v24  ;;  %1496 = vmatpush.msra.mxu3 %v5053_v28 }
 0x254   :  { %1436 = vmatpush.msra.mxu0 %v5054_v32 }
 0x255   :  { %1473 = vmatpush.msra.mxu2 %v5055_v41  ;;  %1497 = vmatpush.msra.mxu3 %v5056_v45 }
 0x256   :  { %1498 = vmatmul.f32.vlgmr.msra.gmra.mxu3 %v3504_v9  ;;  %1437 = vmatpush.msra.mxu0 %v5057_v46 }
 0x257   :  { %1474 = vmatpush.msra.mxu2 %v5058_v58  ;;  %1438 = vmatmul.f32.vlgmr.msra.gmra.mxu0 %v3508_v51 }
 0x259   :  { %1475 = vmatpush.msra.mxu2 %v5059_v13 }
 0x25a   :  { %v3862_v18 = vpop.f32.mrf.mxu3 }
 0x25b   :  { %1476 = vmatpush.msra.mxu2 %v5060_v35 }
 0x25d   :  { %1477 = vmatpush.msra.mxu2 %v5061_v54  ;;  %v3849_v52 = vpop.f32.mrf.mxu2 }
 0x25e   :  { %1478 = vmatmul.f32.vlgmr.msra.gmra.mxu2 %v3508_v51  ;;  %v1592_v9 = vsel %vm1582_vm13, %v3849_v52, -inf }
 0x25f   :  { %1593 = vmax.xlane.f32.xlu0 %v1592_v9 }
 0x267   :  { %v1219_v26 = vpop.f32.mrf.mxu1 }
 0x270   :  { %v1199_v0 = vpop.f32.mrf.mxu0 }
 0x271   :  { %v1200_v51 = vadd.f32 %v1199_v0, %v5063_v8 }
 0x273   :  { %v1220_v29 = vadd.f32 %v1219_v26, %v1200_v51 }
 0x274   :  { %v1259_v43 = vpop.f32.mrf.mxu3 }
 0x275   :  { %1537 = vmatpush.xpose.msrb.mxu1 %v1220_v29 }
 0x279   :  { %1719 = vmatpush.msra.mxu1 %v911_v30 }
 0x27d   :  { %v1239_v40 = vpop.f32.mrf.mxu2 }
 0x27e   :  { %v1240_v34 = vadd.f32 %v1239_v40, %v700_v3 }
 0x280   :  { %v1260_v15 = vadd.f32 %v1259_v43, %v1240_v34 }
 0x282   :  { %1577 = vmatpush.xpose.msrb.mxu3 %v1260_v15 }
 0x286   :  { %1821 = vmatpush.msra.mxu3 %v951_v57 }
 0x289   :  { %v1299_v38 = vpop.f32.mrf.mxu1 }
 0x292   :  { %v1279_v42 = vpop.f32.mrf.mxu0 }
 0x293   :  { %v1280_v3 = vadd.f32 %v1279_v42, %v784_v12 }
 0x295   :  { %v1300_v49 = vadd.f32 %v1299_v38, %v1280_v3 }
 0x296   :  { %v1339_v56 = vpop.f32.mrf.mxu3 }
 0x297   :  { %1517 = vmatpush.xpose.msrb.mxu0 %v1300_v49  ;;  %1538 = vmatmul.f32.vlgmr.msrb.gmra.mxu1 %v1300_v49 }
 0x29a   :  { %1518 = vmatmul.f32.vlgmr.msrb.gmra.mxu0 %v1220_v29 }
 0x29b   :  { %1696 = vmatpush.msra.mxu0 %v996_v50 }
 0x29f   :  { %v1319_v16 = vpop.f32.mrf.mxu2 }
 0x2a0   :  { %v1320_v60 = vadd.f32 %v1319_v16, %v785_v19 }
 0x2a2   :  { %v1340_v59 = vadd.f32 %v1339_v56, %v1320_v60 }
 0x2a4   :  { %1557 = vmatpush.xpose.msrb.mxu2 %v1340_v59  ;;  %1578 = vmatmul.f32.vlgmr.msrb.gmra.mxu3 %v1340_v59 }
 0x2a7   :  { %1558 = vmatmul.f32.vlgmr.msrb.gmra.mxu2 %v1260_v15 }
 0x2a8   :  { %1798 = vmatpush.msra.mxu2 %v1036_v61 }
 0x2ab   :  { %v1379_v1 = vpop.f32.mrf.mxu1 }
 0x2b4   :  { %v1359_v12 = vpop.f32.mrf.mxu0 }
 0x2b5   :  { %v1360_v62 = vadd.f32 %v1359_v12, %v869_v27 }
 0x2b7   :  { %v3882_v2 = vadd.f32 %v1379_v1, %v1360_v62 }
 0x2b8   :  { %v1419_v10 = vpop.f32.mrf.mxu3 }
 0x2c1   :  { %v1399_v4 = vpop.f32.mrf.mxu2 }
 0x2c2   :  { %v1400_v5 = vadd.f32 %v1399_v4, %v870_v53 }
 0x2c4   :  { %v3884_v11 = vadd.f32 %v1419_v10, %v1400_v5 }
 0x2c5   :  { %v1585_v31 = vpop.xlane.xlu2 %1584 }
 0x2c6   :  { %v1586_v46 = vrot.slane %v1585_v31, 4 }
 0x2c8   :  { %v1587_v6 = vmax.f32 %v1585_v31, %v1586_v46 }
 0x2ca   :  { %v1588_v9 = vrot.slane %v1587_v6, 2 }
 0x2cc   :  { %v1589_v21 = vmax.f32 %v1587_v6, %v1588_v9 }
 0x2cd   :  { %v3908_v31 = vpop.f32.mrf.mxu1 }
 0x2ce   :  { %v1590_v48 = vrot.slane %v1589_v21, 1 }
 0x2d0   :  { %v1591_v30 = vmax.f32 %v1589_v21, %v1590_v48 }
 0x2d2   :  { %v1594_v32 = vpop.xlane.xlu0 %1593 }
 0x2d3   :  { %v1595_v45 = vrot.slane %v1594_v32, 4 }
 0x2d4   :  { %v3886_v22 = vpop.f32.mrf.mxu0 }
 0x2d5   :  { %v1596_v13 = vmax.f32 %v1594_v32, %v1595_v45 }
 0x2d7   :  { %v1597_v54 = vrot.slane %v1596_v13, 2 }
 0x2d9   :  { %v1598_v17 = vmax.f32 %v1596_v13, %v1597_v54 }
 0x2db   :  { %v1599_v47 = vrot.slane %v1598_v17, 1 }
 0x2dd   :  { %v1600_v26 = vmax.f32 %v1598_v17, %v1599_v47 }
 0x2df   :  { %v1601_v40 = vmax.f32 %v1591_v30, %v1600_v26 }
 0x2e1   :  { %v3892_v23 = vpop.f32.mrf.mxu2 }
 0x314   :  { %v1539_v21 = vpop.f32.mrf.mxu1 }
 0x317   :  { %v3888_v19 = vpop.f32.mrf.mxu0 }
 0x318   :  { %v1602_v63 = vsel %vm1582_vm13, %v3888_v19, -inf }
 0x319   :  { %1603 = vmax.xlane.f32.xlu1 %v1602_v63 }
 0x32a   :  { %v3894_v24 = vpop.f32.mrf.mxu2 }
 0x32b   :  { %v1612_v28 = vsel %vm1582_vm13, %v3894_v24, -inf }
 0x32c   :  { %1613 = vmax.xlane.f32.xlu2 %v1612_v28 }
 0x38c   :  { %v1604_v41 = vpop.xlane.xlu1 %1603 }
 0x38d   :  { %v1605_v58 = vrot.slane %v1604_v41, 4 }
 0x38f   :  { %v1606_v35 = vmax.f32 %v1604_v41, %v1605_v58 }
 0x391   :  { %v1607_v20 = vrot.slane %v1606_v35, 2 }
 0x393   :  { %v1608_v27 = vmax.f32 %v1606_v35, %v1607_v20  ;;  %v3919_v35 = vpop.f32.mrf.mxu3 }
 0x395   :  { %v1609_v8 = vrot.slane %v1608_v27, 1 }
 0x397   :  { %v1610_v53 = vmax.f32 %v1608_v27, %v1609_v8 }
 0x399   :  { %v1611_v43 = vmax.f32 %v1601_v40, %v1610_v53 }
 0x39f   :  { %v1614_v39 = vpop.xlane.xlu2 %1613 }
 0x3a0   :  { %v1615_v0 = vrot.slane %v1614_v39, 4 }
 0x3a2   :  { %v1616_v51 = vmax.f32 %v1614_v39, %v1615_v0  ;;  %v1579_v0 = vpop.f32.mrf.mxu3 }
 0x3a4   :  { %v1617_v29 = vrot.slane %v1616_v51, 2 }
 0x3a6   :  { %v1618_v14 = vmax.f32 %v1616_v51, %v1617_v29 }
 0x3a8   :  { %v1619_v34 = vrot.slane %v1618_v14, 1 }
 0x3aa   :  { %v1620_v15 = vmax.f32 %v1618_v14, %v1619_v34  ;;  %v3952_v34 = vld [vmem:[#allocation16 + $0xf0] sm:$0xff] }
 0x3ab   :  { %1831 = vmatpush.msrb.mxu0 %v3952_v34 }
 0x3ac   :  { %v1621_v57 = vmax.f32 %v1611_v43, %v1620_v15  ;;  %v3954_v43 = vld [vmem:[#allocation16 + $0xf8] sm:$0xff]  ;;  %v3956_v15 = vld [vmem:[#allocation16 + $0xe0] sm:$0xff] }
 0x3ad   :  { %1871 = vmatpush.msrb.mxu2 %v3954_v43  ;;  %1832 = vmatpush.msrb.mxu0 %v3956_v15 }
 0x3ae   :  { %v1724_v36 = vsub.f32 %v3849_v52, %v1621_v57  ;;  %v1625_v42 = vsub.f32 %v3857_v7, %v1621_v57  ;;  %v1622_v3 = vsub.f32 %v3830_v44, %v1621_v57  ;;  %v1727_v56 = vsub.f32 %v3862_v18, %v1621_v57 }
 0x3af   :  { %v2102_v58 = vsub.f32 %v3894_v24, %v1621_v57  ;;  %v2000_v20 = vsub.f32 %v3888_v19, %v1621_v57  ;;  %v2003_v39 = vsub.f32 %v1539_v21, %v1621_v57  ;;  %v2105_v8 = vsub.f32 %v1579_v0, %v1621_v57  ;;  %v3961_v57 = vld [vmem:[#allocation16 + $0xe8] sm:$0xff] }
 0x3b0   :  { %v2417_v38 = vclamps-f32 %v1724_v36, 50000.0  ;;  %v2413_v49 = vclamps-f32 %v1625_v42, 50000.0  ;;  %v2412_v50 = vclamps-f32 %v1622_v3, 50000.0  ;;  %v2418_v59 = vclamps-f32 %v1727_v56, 50000.0  ;;  %v3963_v36 = vld [vmem:[#allocation16 + $0xd0] sm:$0xff]  ;;  %v3965_v42 = vld [vmem:[#allocation16 + $0xd8] sm:$0xff]  ;;  %1872 = vmatpush.msrb.mxu2 %v3961_v57 }
 0x3b1   :  { %v3924_v17 = vclamps-f32 %v2102_v58, 50000.0  ;;  %v3926_v24 = vclamps-f32 %v2000_v20, 50000.0  ;;  %v3936_v51 = vclamps-f32 %v2003_v39, 50000.0  ;;  %v3938_v26 = vclamps-f32 %v2105_v8, 50000.0  ;;  %v3969_v3 = vld [vmem:[#allocation16 + $0x1f0] sm:$0xff]  ;;  %1833 = vmatpush.msrb.mxu0 %v3963_v36  ;;  %v3986_v56 = vld [vmem:[#allocation16 + $0x1e8] sm:$0xff] }
 0x3b2   :  { %v1730_v25 = vsel %vm1582_vm13, %v2417_v38, -inf  ;;  %v1652_v16 = vsel %vm1582_vm13, %v2413_v49, -inf  ;;  %v1628_v60 = vsel %vm1582_vm13, %v2412_v50, -inf  ;;  %v1754_v52 = vsel %vm1582_vm13, %v2418_v59, -inf  ;;  %1851 = vmatpush.msrb.mxu1 %v3969_v3  ;;  %1873 = vmatpush.msrb.mxu2 %v3965_v42  ;;  %v4028_v20 = vld [vmem:[#allocation16 + $0x1c8] sm:$0xff] }
 0x3b3   :  { %1731 = vmax.xlane.f32.xlu1 %v1730_v25  ;;  %1653 = vmax.xlane.f32.xlu2 %v1652_v16  ;;  %v2108_v27 = vsel %vm1582_vm13, %v3924_v17, -inf  ;;  %v2006_v48 = vsel %vm1582_vm13, %v3926_v24, -inf  ;;  %v2030_v29 = vsel %vm1582_vm13, %v3936_v51, -inf  ;;  %v2132_v30 = vsel %vm1582_vm13, %v3938_v26, -inf  ;;  %v3977_v25 = vld [vmem:[#allocation16 + $0xc8] sm:$0xff]  ;;  %v3980_v16 = vld [vmem:[#allocation16 + $0x1e0] sm:$0xff] }
 0x3b4   :  { %1629 = vmax.xlane.f32.xlu0 %v1628_v60  ;;  %1852 = vmatpush.msrb.mxu1 %v3980_v16 }
 0x3b5   :  { %1874 = vmatpush.msrb.mxu2 %v3977_v25 }
 0x3bc   :  { %1755 = vmax.xlane.f32.xlu0 %v1754_v52 }
 0x426   :  { %v1732_v7 = vpop.xlane.xlu1 %1731  ;;  %v1654_v44 = vpop.xlane.xlu2 %1653 }
 0x427   :  { %v1733_v61 = vsub.f32 %v2417_v38, %v1732_v7  ;;  %v1655_v12 = vsub.f32 %v2413_v49, %v1654_v44  ;;  %v1630_v62 = vpop.xlane.xlu0 %1629  ;;  %v3971_v38 = vld [vmem:[#allocation16 + $0x1f8] sm:$0xff] }
 0x428   :  { %v1631_v1 = vsub.f32 %v2412_v50, %v1630_v62  ;;  %v3974_v50 = vld [vmem:[#allocation16 + $0xc0] sm:$0xff]  ;;  %1891 = vmatpush.msrb.mxu3 %v3971_v38  ;;  %v3999_v62 = vld [vmem:[#allocation16 + $0xb8] sm:$0xff] }
 0x429   :  { %v1734_v4 = vmul.f32 1.442695, %v1733_v61  ;;  %v2414_v5 = vclamps-f32 %v1655_v12, 50000.0  ;;  %v3996_v12 = vld [vmem:[#allocation16 + $0xb0] sm:$0xff]  ;;  %1834 = vmatpush.msrb.mxu0 %v3974_v50  ;;  %1875 = vmatpush.msrb.mxu2 %v3999_v62 }
 0x42a   :  { %v1632_v10 = vmul.f32 1.442695, %v1631_v1  ;;  %1892 = vmatpush.msrb.mxu3 %v3986_v56  ;;  %v4002_v1 = vld [vmem:[#allocation16 + $0x1d8] sm:$0xff] }
 0x42b   :  { %2457 = vpow2.f32 %v1734_v4  ;;  %v1658_v63 = vmul.f32 1.442695, %v2414_v5  ;;  %1835 = vmatpush.msrb.mxu0 %v3996_v12 }
 0x42c   :  { %2459 = vpow2.f32 %v1632_v10  ;;  %1893 = vmatpush.msrb.mxu3 %v4002_v1 }
 0x42d   :  { %2461 = vpow2.f32 %v1658_v63 }
 0x42e   :  { %1894 = vmatpush.msrb.mxu3 %v4028_v20 }
 0x42f   :  { %v1756_v28 = vpop.xlane.xlu0 %1755 }
 0x430   :  { %v1757_v18 = vsub.f32 %v2418_v59, %v1756_v28  ;;  %v3988_v59 = vld [vmem:[#allocation16 + $0x1d0] sm:$0xff]  ;;  %v4013_v28 = vld [vmem:[#allocation16 + $0x1c0] sm:$0xff] }
 0x431   :  { %v3906_v32 = vpop.eup %2457  ;;  %1853 = vmatpush.msrb.mxu1 %v3988_v59 }
 0x432   :  { %v3910_v41 = vpop.eup %2459  ;;  %v2419_v45 = vclamps-f32 %v1757_v18, 50000.0  ;;  %v1736_v46 = vsel %vm1582_vm13, %v3906_v32, 0.0 }
 0x433   :  { %v3915_v13 = vpop.eup %2461  ;;  %1737 = vadd.xlane.f32.xlu2 %v1736_v46  ;;  %v1634_v6 = vsel %vm1582_vm13, %v3910_v41, 0.0  ;;  %1854 = vmatpush.msrb.mxu1 %v4013_v28 }
 0x434   :  { %v1760_v54 = vmul.f32 1.442695, %v2419_v45  ;;  %1635 = vadd.xlane.f32.xlu1 %v1634_v6  ;;  %v1660_v9 = vsel %vm1582_vm13, %v3915_v13, 0.0  ;;  %v4121_v45 = vld [vmem:[#allocation16 + $0x180] sm:$0xff] }
 0x435   :  { %1661 = vadd.xlane.f32.xlu0 %v1660_v9  ;;  %v4025_v9 = vld [vmem:[#allocation16 + $0xa8] sm:$0xff] }
 0x436   :  { %2463 = vpow2.f32 %v1760_v54  ;;  %v4022_v54 = vld [vmem:[#allocation16 + $0xa0] sm:$0xff]  ;;  %1876 = vmatpush.msrb.mxu2 %v4025_v9 }
 0x437   :  { %1836 = vmatpush.msrb.mxu0 %v4022_v54 }
 0x43b   :  { %2109 = vmax.xlane.f32.xlu2 %v2108_v27 }
 0x43c   :  { %v3930_v47 = vpop.eup %2463 }
 0x43d   :  { %2007 = vmax.xlane.f32.xlu0 %v2006_v48  ;;  %v1762_v19 = vsel %vm1582_vm13, %v3930_v47, 0.0  ;;  %v4036_v48 = vld [vmem:[#allocation16 + $0x1b0] sm:$0xff] }
 0x43e   :  { %1763 = vadd.xlane.f32.xlu1 %v1762_v19  ;;  %5066 = vst [vmem:[#allocation44_spill] sm:$0xff] %v4036_v48  ;;  %1855 = vmatpush.msrb.mxu1 %v4036_v48  ;;  %v4102_v48 = vld [vmem:[#allocation16 + $0x78] sm:$0xff] }
 0x443   :  { %2031 = vmax.xlane.f32.xlu2 %v2030_v29  ;;  %v4041_v29 = vld [vmem:[#allocation16 + $0x90] sm:$0xff] }
 0x444   :  { %1837 = vmatpush.msrb.mxu0 %v4041_v29 }
 0x446   :  { %2133 = vmax.xlane.f32.xlu1 %v2132_v30  ;;  %v4044_v30 = vld [vmem:[#allocation16 + $0x98] sm:$0xff] }
 0x447   :  { %1877 = vmatpush.msrb.mxu2 %v4044_v30 }
 0x4a6   :  { %v3944_v53 = vpop.xlane.xlu2 %1737 }
 0x4a7   :  { %2465 = vrcp.f32 %v3944_v53  ;;  %v3947_v14 = vpop.xlane.xlu1 %1635  ;;  %v1748_v49 = vand.u32 2147483647, %v3944_v53  ;;  %vm1744_vm14 = vweird.f32 %v3944_v53  ;;  %v1750_v44 = vand.u32 2147483648, %v3944_v53 }
 0x4a8   :  { %2467 = vrcp.f32 %v3947_v14  ;;  %v3950_v40 = vpop.xlane.xlu0 %1661  ;;  %vm1642_vm15 = vweird.f32 %v3947_v14  ;;  %v1646_v10 = vand.u32 2147483647, %v3947_v14  ;;  %v1648_v46 = vand.u32 2147483648, %v3947_v14 }
 0x4a9   :  { %2469 = vrcp.f32 %v3950_v40  ;;  %vm4015_vm0 = vcmp.eq.f32.partialorder %v1748_v49, 8.507059e+37  ;;  %vm1668_vm6 = vweird.f32 %v3950_v40 }
 0x4aa   :  { %vm4076_vm5 = vcmp.eq.f32.partialorder %v1646_v10, 8.507059e+37 }
 0x4ad   :  { %v3982_v60 = vpop.eup %2465 }
 0x4ae   :  { %v3990_v52 = vpop.eup %2467  ;;  %v1740_v7 = vmul.f32 %v3982_v60, %v3944_v53  ;;  %v2110_v61 = vpop.xlane.xlu2 %2109  ;;  %vm1745_vm1 = vweird.f32 %v3982_v60  ;;  %v4085_v53 = vld [vmem:[#allocation16 + $0x198] sm:$0xff] }
 0x4af   :  { %v4004_v4 = vpop.eup %2469  ;;  %v1638_v5 = vmul.f32 %v3990_v52, %v3947_v14  ;;  %v2111_v63 = vsub.f32 %v3924_v17, %v2110_v61  ;;  %vm1643_vm2 = vweird.f32 %v3990_v52  ;;  %v4054_v61 = vld [vmem:[#allocation16 + $0x1a0] sm:$0xff]  ;;  %vm4071_vm4 = vmor %vm1744_vm14, %vm1745_vm1 }
 0x4b0   :  { %v1741_v18 = vsub.f32 1.0, %v1740_v7  ;;  %v1664_v58 = vmul.f32 %v4004_v4, %v3950_v40  ;;  %v2008_v6 = vpop.xlane.xlu0 %2007  ;;  %v1674_v7 = vand.u32 2147483648, %v3950_v40  ;;  %vm1669_vm3 = vweird.f32 %v4004_v4  ;;  %vm4094_vm7 = vmor %vm1642_vm15, %vm1643_vm2  ;;  %1856 = vmatpush.msrb.mxu1 %v4054_v61 }
 0x4b1   :  { %v1639_v17 = vsub.f32 1.0, %v1638_v5  ;;  %v2112_v27 = vmul.f32 1.442695, %v2111_v63  ;;  %v4031_v39 = vpop.xlane.xlu1 %1763  ;;  %v2009_v0 = vsub.f32 %v3926_v24, %v2008_v6  ;;  %v4047_v24 = vld [vmem:[#allocation16 + $0x1b8] sm:$0xff]  ;;  %v4056_v5 = vld [vmem:[#allocation16 + $0x1a8] sm:$0xff]  ;;  %v4061_v6 = vld [vmem:[#allocation16 + $0x80] sm:$0xff] }
 0x4b2   :  { %v1742_v19 = vmul.f32 %v3982_v60, %v1741_v18  ;;  %v1665_v8 = vsub.f32 1.0, %v1664_v58  ;;  %2471 = vrcp.f32 %v4031_v39  ;;  %5067 = vst [vmem:[#allocation30_spill] sm:$0xff] %v4047_v24  ;;  %1895 = vmatpush.msrb.mxu3 %v4047_v24  ;;  %v4099_v24 = vld [vmem:[#allocation16 + $0x70] sm:$0xff]  ;;  %vm4114_vm8 = vmor %vm1668_vm6, %vm1669_vm3  ;;  %1838 = vmatpush.msrb.mxu0 %v4061_v6  ;;  %vm1770_vm11 = vweird.f32 %v4031_v39 }
 0x4b3   :  { %v1640_v49 = vmul.f32 %v3990_v52, %v1639_v17  ;;  %2473 = vpow2.f32 %v2112_v27  ;;  %v2010_v58 = vmul.f32 1.442695, %v2009_v0  ;;  %v4064_v17 = vld [vmem:[#allocation16 + $0x88] sm:$0xff]  ;;  %1857 = vmatpush.msrb.mxu1 %v4083_v55 }
 0x4b4   :  { %v1743_v63 = vadd.f32 %v3982_v60, %v1742_v19  ;;  %v1666_v18 = vmul.f32 %v4004_v4, %v1665_v8  ;;  %v1751_v19 = vor.u32 1.1754944e-38, %v1750_v44  ;;  %1896 = vmatpush.msrb.mxu3 %v4056_v5  ;;  %1878 = vmatpush.msrb.mxu2 %v4064_v17 }
 0x4b5   :  { %v1641_v8 = vadd.f32 %v3990_v52, %v1640_v49  ;;  %v1649_v49 = vor.u32 1.1754944e-38, %v1648_v46  ;;  %2475 = vpow2.f32 %v2010_v58  ;;  %1839 = vmatpush.msrb.mxu0 %v4099_v24  ;;  %1858 = vmatpush.msrb.mxu1 %v4121_v45 }
 0x4b6   :  { %v1747_v44 = vsel %vm4071_vm4, %v3982_v60, %v1743_v63  ;;  %v1667_v33 = vadd.f32 %v4004_v4, %v1666_v18  ;;  %v2032_v21 = vpop.xlane.xlu2 %2031  ;;  %v1675_v63 = vor.u32 1.1754944e-38, %v1674_v7  ;;  %1897 = vmatpush.msrb.mxu3 %v4085_v53  ;;  %1879 = vmatpush.msrb.mxu2 %v4102_v48 }
 0x4b7   :  { %v1752_v14 = vsel %vm4015_vm0, %v1751_v19, %v1747_v44  ;;  %v1645_v60 = vsel %vm4094_vm7, %v3990_v52, %v1641_v8  ;;  %v2033_v18 = vsub.f32 %v3936_v51, %v2032_v21  ;;  %v5076_v19 = vand.u32 2147483647, %v3950_v40  ;;  %v4133_v21 = vld [vmem:[#allocation16 + $0x60] sm:$0xff] }
 0x4b8   :  { %v4123_v58 = vpop.eup %2471  ;;  %v1650_v52 = vsel %vm4076_vm5, %v1649_v49, %v1645_v60  ;;  %v1671_v27 = vsel %vm4114_vm8, %v4004_v4, %v1667_v33  ;;  %v1753_v51 = vmul.f32 %v3906_v32, %v1752_v14  ;;  %v4149_v49 = vld [vmem:[#allocation16 + $0x68] sm:$0xff]  ;;  %v4151_v14 = vld [vmem:[#allocation16 + $0x50] sm:$0xff]  ;;  %1840 = vmatpush.msrb.mxu0 %v4133_v21 }
 0x4b9   :  { %vm1673_vm9 = vcmp.eq.f32.partialorder %v5076_v19, 8.507059e+37  ;;  %v4137_v7 = vpop.eup %2473  ;;  %v1766_v0 = vmul.f32 %v4123_v58, %v4031_v39  ;;  %v2424_v44 = vclamps-f32 %v2033_v18, 50000.0  ;;  %v2134_v10 = vpop.xlane.xlu1 %2133  ;;  %v1651_v32 = vmul.f32 %v3910_v41, %v1650_v52  ;;  %v4163_v52 = vld [vmem:[#allocation16 + $0x58] sm:$0xff]  ;;  %1880 = vmatpush.msrb.mxu2 %v4149_v49 }
 0x4ba   :  { %v1676_v8 = vsel %vm1673_vm9, %v1675_v63, %v1671_v27  ;;  %v2135_v33 = vsub.f32 %v3938_v26, %v2134_v10  ;;  %2420 = vmatmul.msk.f32.vlgmr.msra.gmra.mxu2 %vm1582_vm13, %v1753_v51  ;;  %v2114_v40 = vsel %vm1582_vm13, %v4137_v7, 0.0  ;;  %v4155_v26 = vld [vmem:[#allocation16 + $0x188] sm:$0xff]  ;;  %v1774_v63 = vand.u32 2147483647, %v4031_v39  ;;  %v4165_v27 = vld [vmem:[#allocation16 + $0x40] sm:$0xff]  ;;  %1841 = vmatpush.msrb.mxu0 %v4151_v14 }
 0x4bb   :  { %v1677_v4 = vmul.f32 %v3915_v13, %v1676_v8  ;;  %v1767_v60 = vsub.f32 1.0, %v1766_v0  ;;  %v2036_v46 = vmul.f32 1.442695, %v2424_v44  ;;  %2115 = vadd.xlane.f32.xlu0 %v2114_v40  ;;  %v4157_v41 = vpop.eup %2475  ;;  %v1776_v18 = vand.u32 2147483648, %v4031_v39  ;;  %2415 = vmatmul.msk.f32.vlgmr.msra.gmra.mxu0 %vm1582_vm13, %v1651_v32  ;;  %v4173_v8 = vld [vmem:[#allocation16 + $0x170] sm:$0xff]  ;;  %v4175_v0 = vld [vmem:[#allocation16 + $0x178] sm:$0xff] }
 0x4bc   :  { %v2429_v13 = vclamps-f32 %v2135_v33, 50000.0  ;;  %vm1771_vm10 = vweird.f32 %v4123_v58  ;;  %v2012_v51 = vsel %vm1582_vm13, %v4157_v41, 0.0  ;;  %5077 = vst [vmem:[#allocation36_spill] sm:$0xff] %v4173_v8  ;;  %1898 = vmatpush.msrb.mxu3 %v4155_v26  ;;  %v4178_v10 = vld [vmem:[#allocation16 + $0x48] sm:$0xff]  ;;  %v4180_v33 = vld [vmem:[#allocation16 + $0x30] sm:$0xff]  ;;  %1881 = vmatpush.msrb.mxu2 %v4163_v52  ;;  %v4186_v40 = vld [vmem:[#allocation16 + $0x160] sm:$0xff] }
 0x4bd   :  { %2416 = vmatmul.msk.f32.vlgmr.msra.gmra.mxu1 %vm1582_vm13, %v1677_v4  ;;  %v1768_v19 = vmul.f32 %v4123_v58, %v1767_v60  ;;  %2477 = vpow2.f32 %v2036_v46  ;;  %5078 = vst [vmem:[#allocation34_spill] sm:$0xff] %v4175_v0  ;;  %2013 = vadd.xlane.f32.xlu1 %v2012_v51  ;;  %v4188_v4 = vld [vmem:[#allocation16 + $0x168] sm:$0xff]  ;;  %vm1772_vm12 = vmor %vm1770_vm11, %vm1771_vm10  ;;  %v1777_v60 = vor.u32 1.1754944e-38, %v1776_v18  ;;  %v4194_v46 = vld [vmem:[#allocation16 + $0x38] sm:$0xff]  ;;  %vm1775_vm14 = vcmp.eq.f32.partialorder %v1774_v63, 8.507059e+37 }
 0x4be   :  { %v2138_v44 = vmul.f32 1.442695, %v2429_v13  ;;  %5079 = vst [vmem:[#allocation48_spill] sm:$0xff] %v4178_v10  ;;  %1842 = vmatpush.msrb.mxu0 %v4165_v27  ;;  %1859 = vmatpush.msrb.mxu1 %v4173_v8  ;;  %v4196_v39 = vld [vmem:[#allocation16 + $0x20] sm:$0xff]  ;;  %v4203_v51 = vld [vmem:[#allocation16 + $0x158] sm:$0xff]  ;;  %v4214_v63 = vld [vmem:[#allocation16 + $0x10] sm:$0xff] }
 0x4bf   :  { %5080 = vst [vmem:[#allocation31_spill] sm:$0xff] %v4180_v33  ;;  %v1769_v32 = vadd.f32 %v4123_v58, %v1768_v19  ;;  %1899 = vmatpush.msrb.mxu3 %v4175_v0  ;;  %1882 = vmatpush.msrb.mxu2 %v4178_v10  ;;  %v4201_v19 = vld [vmem:[#allocation16 + $0x150] sm:$0xff] }
 0x4c0   :  { %5081 = vst [vmem:[#allocation39_spill] sm:$0xff] %v4186_v40  ;;  %2479 = vpow2.f32 %v2138_v44  ;;  %1843 = vmatpush.msrb.mxu0 %v4180_v33  ;;  %1860 = vmatpush.msrb.mxu1 %v4186_v40 }
 0x4c1   :  { %5082 = vst [vmem:[#allocation37_spill] sm:$0xff] %v4188_v4  ;;  %v1773_v13 = vsel %vm1772_vm12, %v4123_v58, %v1769_v32  ;;  %1900 = vmatpush.msrb.mxu3 %v4188_v4  ;;  %1883 = vmatpush.msrb.mxu2 %v4194_v46  ;;  %v4212_v58 = vld [vmem:[#allocation16 + $0x28] sm:$0xff]  ;;  %v4250_v4 = vld [vmem:[#allocation16 + $0x120] sm:$0xff] }
 0x4c2   :  { %5083 = vst [vmem:[#allocation32_spill] sm:$0xff] %v4194_v46  ;;  %v1778_v18 = vsel %vm1775_vm14, %v1777_v60, %v1773_v13  ;;  %1844 = vmatpush.msrb.mxu0 %v4196_v39  ;;  %1861 = vmatpush.msrb.mxu1 %v4201_v19  ;;  %v4220_v60 = vld [vmem:[#allocation16 + $0x140] sm:$0xff]  ;;  %v4222_v13 = vld [vmem:[#allocation16 + $0x148] sm:$0xff] }
 0x4c3   :  { %5084 = vst [vmem:[#allocation42_spill] sm:$0xff] %v4196_v39  ;;  %v4207_v44 = vpop.eup %2477  ;;  %v1779_v0 = vmul.f32 %v3930_v47, %v1778_v18  ;;  %1901 = vmatpush.msrb.mxu3 %v4203_v51  ;;  %v4225_v47 = vld [vmem:[#allocation16 + $0x18] sm:$0xff]  ;;  %1884 = vmatpush.msrb.mxu2 %v4212_v58  ;;  %v4231_v39 = vld [vmem:[#allocation16] sm:$0xff] }
 0x4c4   :  { %5085 = vst [vmem:[#allocation40_spill] sm:$0xff] %v4201_v19  ;;  %v2038_v32 = vsel %vm1582_vm13, %v4207_v44, 0.0  ;;  %1845 = vmatpush.msrb.mxu0 %v4214_v63  ;;  %v4233_v19 = vld [vmem:[#allocation16 + $0x130] sm:$0xff]  ;;  %1862 = vmatpush.msrb.mxu1 %v4220_v60 }
 0x4c5   :  { %5086 = vst [vmem:[#allocation33_spill] sm:$0xff] %v4203_v51  ;;  %2421 = vmatmul.msk.f32.vlgmr.msra.gmra.mxu3 %vm1582_vm13, %v1779_v0  ;;  %2039 = vadd.xlane.f32.xlu0 %v2038_v32  ;;  %v4239_v0 = vld [vmem:[#allocation16 + $0x8] sm:$0xff]  ;;  %v4241_v32 = vld [vmem:[#allocation16 + $0x138] sm:$0xff] }
 0x4c6   :  { %5087 = vst [vmem:[#allocation46_spill] sm:$0xff] %v4212_v58  ;;  %v4227_v18 = vpop.eup %2479  ;;  %1902 = vmatpush.msrb.mxu3 %v4222_v13  ;;  %1885 = vmatpush.msrb.mxu2 %v4225_v47  ;;  %v4244_v58 = vld [vmem:[#allocation17 + $0xf0] sm:$0xff] }
 0x4c7   :  { %5088 = vst [vmem:[#allocation43_spill] sm:$0xff] %v4214_v63  ;;  %v2140_v51 = vsel %vm1582_vm13, %v4227_v18, 0.0  ;;  %v4246_v63 = vld [vmem:[#allocation17 + $0xf8] sm:$0xff]  ;;  %1846 = vmatpush.msrb.mxu0 %v4231_v39  ;;  %1863 = vmatpush.msrb.mxu1 %v4233_v19 }
 0x4c8   :  { %5089 = vst [vmem:[#allocation35_spill] sm:$0xff] %v4220_v60  ;;  %2141 = vadd.xlane.f32.xlu2 %v2140_v51  ;;  %v4252_v60 = vld [vmem:[#allocation16 + $0x128] sm:$0xff]  ;;  %1886 = vmatpush.msrb.mxu2 %v4239_v0 }
 0x4c9   :  { %5090 = vst [vmem:[#allocation47_spill] sm:$0xff] %v4222_v13  ;;  %1903 = vmatpush.msrb.mxu3 %v4241_v32  ;;  %v4256_v13 = vld [vmem:[#allocation17 + $0xe0] sm:$0xff]  ;;  %v4258_v51 = vld [vmem:[#allocation17 + $0xe8] sm:$0xff]  ;;  %1918 = vmatpush.msra.mxu0 %v4244_v58 }
 0x4ca   :  { %5091 = vst [vmem:[#allocation38_spill] sm:$0xff] %v4225_v47  ;;  %1958 = vmatpush.msra.mxu2 %v4246_v63  ;;  %v4262_v47 = vld [vmem:[#allocation16 + $0x110] sm:$0xff]  ;;  %1864 = vmatpush.msrb.mxu1 %v4250_v4 }
 0x4cb   :  { %5092 = vst [vmem:[#allocation41_spill] sm:$0xff] %v4231_v39  ;;  %v4264_v39 = vld [vmem:[#allocation16 + $0x118] sm:$0xff]  ;;  %1904 = vmatpush.msrb.mxu3 %v4252_v60  ;;  %1919 = vmatpush.msra.mxu0 %v4256_v13 }
 0x4cc   :  { %5093 = vst [vmem:[#allocation53_spill] sm:$0xff] %v4233_v19  ;;  %v4268_v19 = vld [vmem:[#allocation17 + $0xd0] sm:$0xff]  ;;  %1959 = vmatpush.msra.mxu2 %v4258_v51  ;;  %1865 = vmatpush.msrb.mxu1 %v4262_v47 }
 0x4cd   :  { %5094 = vst [vmem:[#allocation51_spill] sm:$0xff] %v4239_v0  ;;  %v4270_v0 = vld [vmem:[#allocation17 + $0xd8] sm:$0xff]  ;;  %1905 = vmatpush.msrb.mxu3 %v4264_v39  ;;  %1920 = vmatpush.msra.mxu0 %v4268_v19 }
 0x4ce   :  { %5095 = vst [vmem:[#allocation64_spill] sm:$0xff] %v4241_v32  ;;  %v4274_v32 = vld [vmem:[#allocation16 + $0x100] sm:$0xff]  ;;  %1960 = vmatpush.msra.mxu2 %v4270_v0 }
 0x4cf   :  { %5096 = vst [vmem:[#allocation56_spill] sm:$0xff] %v4244_v58  ;;  %v4276_v58 = vld [vmem:[#allocation16 + $0x108] sm:$0xff]  ;;  %1866 = vmatpush.msrb.mxu1 %v4274_v32 }
 0x4d0   :  { %5097 = vst [vmem:[#allocation45_spill] sm:$0xff] %v4246_v63  ;;  %v4280_v63 = vld [vmem:[#allocation17 + $0xc0] sm:$0xff]  ;;  %1906 = vmatpush.msrb.mxu3 %v4276_v58 }
 0x4d1   :  { %5098 = vst [vmem:[#allocation68_spill] sm:$0xff] %v4250_v4  ;;  %v4282_v4 = vld [vmem:[#allocation17 + $0x1f0] sm:$0xff]  ;;  %1921 = vmatpush.msra.mxu0 %v4280_v63 }
 0x4d2   :  { %5099 = vst [vmem:[#allocation54_spill] sm:$0xff] %v4252_v60  ;;  %v4286_v60 = vld [vmem:[#allocation17 + $0xc8] sm:$0xff]  ;;  %1938 = vmatpush.msra.mxu1 %v4282_v4 }
 0x4d3   :  { %5100 = vst [vmem:[#allocation59_spill] sm:$0xff] %v4256_v13  ;;  %v4288_v13 = vld [vmem:[#allocation17 + $0x1f8] sm:$0xff]  ;;  %1961 = vmatpush.msra.mxu2 %v4286_v60 }
 0x4d4   :  { %5101 = vst [vmem:[#allocation49_spill] sm:$0xff] %v4258_v51  ;;  %v4292_v51 = vld [vmem:[#allocation17 + $0xb0] sm:$0xff]  ;;  %1978 = vmatpush.msra.mxu3 %v4288_v13 }
 0x4d5   :  { %5102 = vst [vmem:[#allocation72_spill] sm:$0xff] %v4262_v47  ;;  %v4294_v47 = vld [vmem:[#allocation17 + $0x1e0] sm:$0xff]  ;;  %1922 = vmatpush.msra.mxu0 %v4292_v51 }
 0x4d6   :  { %5103 = vst [vmem:[#allocation57_spill] sm:$0xff] %v4264_v39  ;;  %v4298_v39 = vld [vmem:[#allocation17 + $0xb8] sm:$0xff]  ;;  %1939 = vmatpush.msra.mxu1 %v4294_v47 }
 0x4d7   :  { %5104 = vst [vmem:[#allocation62_spill] sm:$0xff] %v4268_v19  ;;  %v4300_v19 = vld [vmem:[#allocation17 + $0x1e8] sm:$0xff]  ;;  %1962 = vmatpush.msra.mxu2 %v4298_v39 }
 0x4d8   :  { %5105 = vst [vmem:[#allocation50_spill] sm:$0xff] %v4270_v0  ;;  %v4304_v0 = vld [vmem:[#allocation17 + $0xa0] sm:$0xff]  ;;  %1979 = vmatpush.msra.mxu3 %v4300_v19 }
 0x4d9   :  { %5106 = vst [vmem:[#allocation76_spill] sm:$0xff] %v4274_v32  ;;  %v4306_v32 = vld [vmem:[#allocation17 + $0x1d0] sm:$0xff]  ;;  %1923 = vmatpush.msra.mxu0 %v4304_v0 }
 0x4da   :  { %5107 = vst [vmem:[#allocation60_spill] sm:$0xff] %v4276_v58  ;;  %v4310_v58 = vld [vmem:[#allocation17 + $0xa8] sm:$0xff]  ;;  %1940 = vmatpush.msra.mxu1 %v4306_v32 }
 0x4db   :  { %5108 = vst [vmem:[#allocation66_spill] sm:$0xff] %v4280_v63  ;;  %v4312_v63 = vld [vmem:[#allocation17 + $0x1d8] sm:$0xff]  ;;  %1963 = vmatpush.msra.mxu2 %v4310_v58 }
 0x4dc   :  { %5109 = vst [vmem:[#allocation52_spill] sm:$0xff] %v4282_v4  ;;  %v4316_v4 = vld [vmem:[#allocation17 + $0x90] sm:$0xff]  ;;  %1980 = vmatpush.msra.mxu3 %v4312_v63 }
 0x4dd   :  { %5110 = vst [vmem:[#allocation80_spill] sm:$0xff] %v4286_v60  ;;  %v4318_v60 = vld [vmem:[#allocation17 + $0x1c0] sm:$0xff]  ;;  %1924 = vmatpush.msra.mxu0 %v4316_v4 }
 0x4de   :  { %5111 = vst [vmem:[#allocation63_spill] sm:$0xff] %v4288_v13  ;;  %v4322_v13 = vld [vmem:[#allocation17 + $0x98] sm:$0xff]  ;;  %1941 = vmatpush.msra.mxu1 %v4318_v60 }
 0x4df   :  { %5112 = vst [vmem:[#allocation55_spill] sm:$0xff] %v4292_v51  ;;  %v4324_v51 = vld [vmem:[#allocation17 + $0x1c8] sm:$0xff]  ;;  %1964 = vmatpush.msra.mxu2 %v4322_v13 }
 0x4e0   :  { %5113 = vst [vmem:[#allocation70_spill] sm:$0xff] %v4294_v47  ;;  %v4328_v47 = vld [vmem:[#allocation17 + $0x80] sm:$0xff]  ;;  %1981 = vmatpush.msra.mxu3 %v4324_v51 }
 0x4e1   :  { %5114 = vst [vmem:[#allocation67_spill] sm:$0xff] %v4298_v39  ;;  %v4330_v39 = vld [vmem:[#allocation17 + $0x1b0] sm:$0xff]  ;;  %1925 = vmatpush.msra.mxu0 %v4328_v47 }
 0x4e2   :  { %5115 = vst [vmem:[#allocation84_spill] sm:$0xff] %v4300_v19  ;;  %v4334_v19 = vld [vmem:[#allocation17 + $0x88] sm:$0xff]  ;;  %1942 = vmatpush.msra.mxu1 %v4330_v39 }
 0x4e3   :  { %5116 = vst [vmem:[#allocation58_spill] sm:$0xff] %v4304_v0  ;;  %v4336_v0 = vld [vmem:[#allocation17 + $0x1b8] sm:$0xff]  ;;  %1965 = vmatpush.msra.mxu2 %v4334_v19 }
 0x4e4   :  { %5117 = vst [vmem:[#allocation74_spill] sm:$0xff] %v4306_v32  ;;  %v4340_v32 = vld [vmem:[#allocation17 + $0x70] sm:$0xff]  ;;  %1982 = vmatpush.msra.mxu3 %v4336_v0 }
 0x4e5   :  { %5118 = vst [vmem:[#allocation71_spill] sm:$0xff] %v4310_v58  ;;  %v4342_v58 = vld [vmem:[#allocation17 + $0x1a0] sm:$0xff]  ;;  %1926 = vmatpush.msra.mxu0 %v4340_v32 }
 0x4e6   :  { %5119 = vst [vmem:[#allocation88_spill] sm:$0xff] %v4312_v63  ;;  %v4346_v63 = vld [vmem:[#allocation17 + $0x78] sm:$0xff]  ;;  %1943 = vmatpush.msra.mxu1 %v4342_v58 }
 0x4e7   :  { %5120 = vst [vmem:[#allocation61_spill] sm:$0xff] %v4316_v4  ;;  %v4348_v4 = vld [vmem:[#allocation17 + $0x1a8] sm:$0xff]  ;;  %1966 = vmatpush.msra.mxu2 %v4346_v63 }
 0x4e8   :  { %5121 = vst [vmem:[#allocation78_spill] sm:$0xff] %v4318_v60  ;;  %v4352_v60 = vld [vmem:[#allocation17 + $0x60] sm:$0xff]  ;;  %1983 = vmatpush.msra.mxu3 %v4348_v4 }
 0x4e9   :  { %5122 = vst [vmem:[#allocation75_spill] sm:$0xff] %v4322_v13  ;;  %v4354_v13 = vld [vmem:[#allocation17 + $0x190] sm:$0xff]  ;;  %1927 = vmatpush.msra.mxu0 %v4352_v60 }
 0x4ea   :  { %5123 = vst [vmem:[#allocation92_spill] sm:$0xff] %v4324_v51  ;;  %v4358_v51 = vld [vmem:[#allocation17 + $0x68] sm:$0xff]  ;;  %1944 = vmatpush.msra.mxu1 %v4354_v13 }
 0x4eb   :  { %5124 = vst [vmem:[#allocation65_spill] sm:$0xff] %v4328_v47  ;;  %v4360_v47 = vld [vmem:[#allocation17 + $0x198] sm:$0xff]  ;;  %1967 = vmatpush.msra.mxu2 %v4358_v51 }
 0x4ec   :  { %5125 = vst [vmem:[#allocation82_spill] sm:$0xff] %v4330_v39  ;;  %v4364_v39 = vld [vmem:[#allocation17 + $0x50] sm:$0xff]  ;;  %1984 = vmatpush.msra.mxu3 %v4360_v47 }
 0x4ed   :  { %5126 = vst [vmem:[#allocation79_spill] sm:$0xff] %v4334_v19  ;;  %v4366_v19 = vld [vmem:[#allocation17 + $0x180] sm:$0xff]  ;;  %1928 = vmatpush.msra.mxu0 %v4364_v39 }
 0x4ee   :  { %5127 = vst [vmem:[#allocation96_spill] sm:$0xff] %v4336_v0  ;;  %v4370_v0 = vld [vmem:[#allocation17 + $0x58] sm:$0xff]  ;;  %1945 = vmatpush.msra.mxu1 %v4366_v19 }
 0x4ef   :  { %5128 = vst [vmem:[#allocation69_spill] sm:$0xff] %v4340_v32  ;;  %v4372_v32 = vld [vmem:[#allocation17 + $0x188] sm:$0xff]  ;;  %1968 = vmatpush.msra.mxu2 %v4370_v0 }
 0x4f0   :  { %5129 = vst [vmem:[#allocation86_spill] sm:$0xff] %v4342_v58  ;;  %1985 = vmatpush.msra.mxu3 %v4372_v32 }
 0x4f1   :  { %5130 = vst [vmem:[#allocation83_spill] sm:$0xff] %v4346_v63 }
 0x4f2   :  { %5131 = vst [vmem:[#allocation100_spill] sm:$0xff] %v4348_v4  ;;  %v4380_v4 = vld [vmem:[#allocation17 + $0x40] sm:$0xff] }
 0x4f3   :  { %5132 = vst [vmem:[#allocation73_spill] sm:$0xff] %v4352_v60  ;;  %v4382_v60 = vld [vmem:[#allocation17 + $0x170] sm:$0xff]  ;;  %1929 = vmatpush.msra.mxu0 %v4380_v4 }
 0x4f4   :  { %5133 = vst [vmem:[#allocation90_spill] sm:$0xff] %v4354_v13  ;;  %v4384_v13 = vld [vmem:[#allocation17 + $0x48] sm:$0xff]  ;;  %1946 = vmatpush.msra.mxu1 %v4382_v60 }
 0x4f5   :  { %5134 = vst [vmem:[#allocation87_spill] sm:$0xff] %v4358_v51  ;;  %v4388_v51 = vld [vmem:[#allocation17 + $0x178] sm:$0xff]  ;;  %1969 = vmatpush.msra.mxu2 %v4384_v13 }
 0x4f6   :  { %5135 = vst [vmem:[#allocation104_spill] sm:$0xff] %v4360_v47  ;;  %1986 = vmatpush.msra.mxu3 %v4388_v51 }
 0x4f7   :  { %5136 = vst [vmem:[#allocation77_spill] sm:$0xff] %v4364_v39  ;;  %v4400_v39 = vld [vmem:[#allocation17 + $0x168] sm:$0xff] }
 0x4f8   :  { %5137 = vst [vmem:[#allocation94_spill] sm:$0xff] %v4366_v19  ;;  %v4392_v19 = vld [vmem:[#allocation17 + $0x30] sm:$0xff]  ;;  %1987 = vmatpush.msra.mxu3 %v4400_v39 }
 0x4f9   :  { %5138 = vst [vmem:[#allocation91_spill] sm:$0xff] %v4370_v0  ;;  %v4394_v0 = vld [vmem:[#allocation17 + $0x160] sm:$0xff]  ;;  %1930 = vmatpush.msra.mxu0 %v4392_v19 }
 0x4fa   :  { %5139 = vst [vmem:[#allocation108_spill] sm:$0xff] %v4372_v32  ;;  %v4396_v32 = vld [vmem:[#allocation17 + $0x38] sm:$0xff]  ;;  %1947 = vmatpush.msra.mxu1 %v4394_v0 }
 0x4fb   :  { %5140 = vst [vmem:[#allocation81_spill] sm:$0xff] %v4380_v4  ;;  %1970 = vmatpush.msra.mxu2 %v4396_v32  ;;  %v4412_v4 = vld [vmem:[#allocation17 + $0x158] sm:$0xff] }
 0x4fc   :  { %5141 = vst [vmem:[#allocation98_spill] sm:$0xff] %v4382_v60  ;;  %v4404_v60 = vld [vmem:[#allocation17 + $0x20] sm:$0xff]  ;;  %1988 = vmatpush.msra.mxu3 %v4412_v4 }
 0x4fd   :  { %5142 = vst [vmem:[#allocation95_spill] sm:$0xff] %v4384_v13  ;;  %v4406_v13 = vld [vmem:[#allocation17 + $0x150] sm:$0xff]  ;;  %1931 = vmatpush.msra.mxu0 %v4404_v60 }
 0x4fe   :  { %5143 = vst [vmem:[#allocation112_spill] sm:$0xff] %v4388_v51  ;;  %v4408_v51 = vld [vmem:[#allocation17 + $0x28] sm:$0xff]  ;;  %1948 = vmatpush.msra.mxu1 %v4406_v13 }
 0x4ff   :  { %5144 = vst [vmem:[#allocation85_spill] sm:$0xff] %v4392_v19  ;;  %1971 = vmatpush.msra.mxu2 %v4408_v51  ;;  %v4424_v19 = vld [vmem:[#allocation17 + $0x148] sm:$0xff] }
 0x500   :  { %5145 = vst [vmem:[#allocation102_spill] sm:$0xff] %v4394_v0  ;;  %v4416_v0 = vld [vmem:[#allocation17 + $0x10] sm:$0xff]  ;;  %1989 = vmatpush.msra.mxu3 %v4424_v19 }
 0x501   :  { %5146 = vst [vmem:[#allocation99_spill] sm:$0xff] %v4396_v32  ;;  %v4418_v32 = vld [vmem:[#allocation17 + $0x140] sm:$0xff]  ;;  %1932 = vmatpush.msra.mxu0 %v4416_v0 }
 0x502   :  { %5147 = vst [vmem:[#allocation89_spill] sm:$0xff] %v4400_v39  ;;  %v4420_v39 = vld [vmem:[#allocation17 + $0x18] sm:$0xff]  ;;  %1949 = vmatpush.msra.mxu1 %v4418_v32 }
 0x503   :  { %5148 = vst [vmem:[#allocation106_spill] sm:$0xff] %v4404_v60  ;;  %1972 = vmatpush.msra.mxu2 %v4420_v39  ;;  %v4436_v60 = vld [vmem:[#allocation17 + $0x138] sm:$0xff] }
 0x504   :  { %5149 = vst [vmem:[#allocation103_spill] sm:$0xff] %v4406_v13  ;;  %v4428_v13 = vld [vmem:[#allocation17] sm:$0xff]  ;;  %1990 = vmatpush.msra.mxu3 %v4436_v60 }
 0x505   :  { %5150 = vst [vmem:[#allocation93_spill] sm:$0xff] %v4408_v51  ;;  %v4430_v51 = vld [vmem:[#allocation17 + $0x130] sm:$0xff]  ;;  %1933 = vmatpush.msra.mxu0 %v4428_v13 }
 0x506   :  { %5151 = vst [vmem:[#allocation110_spill] sm:$0xff] %v4412_v4  ;;  %v4432_v4 = vld [vmem:[#allocation17 + $0x8] sm:$0xff]  ;;  %1950 = vmatpush.msra.mxu1 %v4430_v51 }
 0x507   :  { %5152 = vst [vmem:[#allocation107_spill] sm:$0xff] %v4416_v0  ;;  %1973 = vmatpush.msra.mxu2 %v4432_v4  ;;  %v4448_v0 = vld [vmem:[#allocation17 + $0x118] sm:$0xff] }
 0x508   :  { %5153 = vst [vmem:[#allocation97_spill] sm:$0xff] %v4418_v32  ;;  %v4440_v32 = vld [vmem:[#allocation17 + $0x120] sm:$0xff] }
 0x509   :  { %5154 = vst [vmem:[#allocation114_spill] sm:$0xff] %v4420_v39  ;;  %v4442_v39 = vld [vmem:[#allocation17 + $0x128] sm:$0xff]  ;;  %1951 = vmatpush.msra.mxu1 %v4440_v32 }
 0x50a   :  { %5155 = vst [vmem:[#allocation111_spill] sm:$0xff] %v4424_v19  ;;  %1991 = vmatpush.msra.mxu3 %v4442_v39  ;;  %v4446_v19 = vld [vmem:[#allocation17 + $0x110] sm:$0xff] }
 0x50b   :  { %5156 = vst [vmem:[#allocation101_spill] sm:$0xff] %v4428_v13  ;;  %1952 = vmatpush.msra.mxu1 %v4446_v19  ;;  %v5166_v13 = vperm.slane %v3869_v37, 0 }
 0x50c   :  { %5157 = vst [vmem:[#allocation105_spill] sm:$0xff] %v4430_v51  ;;  %1992 = vmatpush.msra.mxu3 %v4448_v0  ;;  %v4452_v51 = vld [vmem:[#allocation17 + $0x100] sm:$0xff] }
 0x50d   :  { %5158 = vst [vmem:[#allocation109_spill] sm:$0xff] %v4432_v4  ;;  %v4454_v4 = vld [vmem:[#allocation17 + $0x108] sm:$0xff]  ;;  %1953 = vmatpush.msra.mxu1 %v4452_v51  ;;  %v1440_v47 = vadd.f32 %v3886_v22, %v5166_v13 }
 0x50e   :  { %5159 = vst [vmem:[#allocation113_spill] sm:$0xff] %v4436_v60  ;;  %1993 = vmatpush.msra.mxu3 %v4454_v4 }
 0x50f   :  { %5160 = vst [vmem:[#allocation115_spill] sm:$0xff] %v4440_v32 }
 0x510   :  { %5161 = vst [vmem:[#allocation116_spill] sm:$0xff] %v4442_v39 }
 0x511   :  { %5162 = vst [vmem:[#allocation117_spill] sm:$0xff] %v4446_v19  ;;  %v5167_v19 = vperm.slane %v3869_v37, 1 }
 0x512   :  { %5163 = vst [vmem:[#allocation118_spill] sm:$0xff] %v4448_v0 }
 0x513   :  { %5164 = vst [vmem:[#allocation119_spill] sm:$0xff] %v4452_v51  ;;  %v1480_v0 = vadd.f32 %v3892_v23, %v5167_v19 }
 0x514   :  { %5165 = vst [vmem:[#allocation120_spill] sm:$0xff] %v4454_v4  ;;  %v1460_v4 = vadd.f32 %v3908_v31, %v1440_v47  ;;  %v5206_v47 = vld [vmem:[#allocation60_spill] sm:$0xff] }
 0x515   :  { %v1500_v51 = vadd.f32 %v3919_v35, %v1480_v0 }
 0x52e   :  { %v2116_v60 = vpop.xlane.xlu0 %2115 }
 0x52f   :  { %2481 = vrcp.f32 %v2116_v60  ;;  %vm2122_vm1 = vweird.f32 %v2116_v60 }
 0x530   :  { %v2014_v32 = vpop.xlane.xlu1 %2013 }
 0x531   :  { %2483 = vrcp.f32 %v2014_v32  ;;  %vm2020_vm3 = vweird.f32 %v2014_v32 }
 0x535   :  { %v2482_v39 = vpop.eup %2481 }
 0x536   :  { %v2118_v63 = vmul.f32 %v2482_v39, %v2116_v60  ;;  %vm2123_vm15 = vweird.f32 %v2482_v39 }
 0x537   :  { %v2484_v58 = vpop.eup %2483  ;;  %vm4476_vm2 = vmor %vm2122_vm1, %vm2123_vm15 }
 0x538   :  { %v2119_v46 = vsub.f32 1.0, %v2118_v63  ;;  %v4464_v40 = vpop.xlane.xlu0 %2039  ;;  %v2016_v33 = vmul.f32 %v2484_v58, %v2014_v32  ;;  %v1698_v10 = vpop.f32.mrf.mxu0  ;;  %vm2021_vm0 = vweird.f32 %v2484_v58 }
 0x539   :  { %2485 = vrcp.f32 %v4464_v40  ;;  %1847 = vmatmul.f32.vlgmr.msrb.gmra.mxu0 %v1698_v10  ;;  %1887 = vmatmul.f32.vlgmr.msrb.gmra.mxu2 %v1698_v10  ;;  %v2026_v10 = vand.u32 2147483648, %v2014_v32  ;;  %vm4483_vm4 = vmor %vm2020_vm3, %vm2021_vm0  ;;  %vm2046_vm8 = vweird.f32 %v4464_v40 }
 0x53a   :  { %v2120_v8 = vmul.f32 %v2482_v39, %v2119_v46  ;;  %v2017_v22 = vsub.f32 1.0, %v2016_v33  ;;  %2074 = vmatpush.msrb.mxu0 %v1460_v4  ;;  %2176 = vmatpush.msrb.mxu2 %v1500_v51  ;;  %v2128_v46 = vand.u32 2147483648, %v2116_v60  ;;  %v2126_v4 = vand.u32 2147483647, %v2116_v60  ;;  %v1721_v0 = vpop.f32.mrf.mxu1 }
 0x53b   :  { %v4469_v37 = vpop.xlane.xlu2 %2141 }
 0x53c   :  { %2487 = vrcp.f32 %v4469_v37  ;;  %v2018_v23 = vmul.f32 %v2484_v58, %v2017_v22  ;;  %v2121_v31 = vadd.f32 %v2482_v39, %v2120_v8  ;;  %v2024_v8 = vand.u32 2147483647, %v2014_v32 }
 0x53d   :  { %v1800_v19 = vpop.f32.mrf.mxu2  ;;  %v2129_v60 = vor.u32 1.1754944e-38, %v2128_v46  ;;  %v2027_v32 = vor.u32 1.1754944e-38, %v2026_v10  ;;  %vm2127_vm5 = vcmp.eq.f32.partialorder %v2126_v4, 8.507059e+37  ;;  %v2050_v46 = vand.u32 2147483647, %v4464_v40 }
 0x53e   :  { %1867 = vmatmul.f32.vlgmr.msrb.gmra.mxu1 %v1800_v19  ;;  %1907 = vmatmul.f32.vlgmr.msrb.gmra.mxu3 %v1800_v19  ;;  %v2019_v63 = vadd.f32 %v2484_v58, %v2018_v23  ;;  %vm2025_vm6 = vcmp.eq.f32.partialorder %v2024_v8, 8.507059e+37  ;;  %v2152_v10 = vand.u32 2147483647, %v4469_v37  ;;  %vm2148_vm11 = vweird.f32 %v4469_v37 }
 0x53f   :  { %v4472_v35 = vpop.eup %2485  ;;  %2097 = vmatpush.msrb.mxu1 %v3882_v2  ;;  %2199 = vmatpush.msrb.mxu3 %v3884_v11  ;;  %v2125_v2 = vsel %vm4476_vm2, %v2482_v39, %v2121_v31  ;;  %vm2051_vm14 = vcmp.eq.f32.partialorder %v2050_v46, 8.507059e+37  ;;  %v5222_v46 = vld [vmem:[#allocation92_spill] sm:$0xff] }
 0x540   :  { %v2042_v13 = vmul.f32 %v4472_v35, %v4464_v40  ;;  %v2023_v11 = vsel %vm4483_vm4, %v2484_v58, %v2019_v63  ;;  %v2130_v33 = vsel %vm2127_vm5, %v2129_v60, %v2125_v2  ;;  %vm2047_vm7 = vweird.f32 %v4472_v35  ;;  %v5209_v2 = vld [vmem:[#allocation80_spill] sm:$0xff]  ;;  %v5212_v60 = vld [vmem:[#allocation70_spill] sm:$0xff] }
 0x541   :  { %1934 = vmatmul.f32.vlgmr.msra.gmra.mxu0 %v1721_v0  ;;  %1974 = vmatmul.f32.vlgmr.msra.gmra.mxu2 %v1721_v0  ;;  %v2028_v39 = vsel %vm2025_vm6, %v2027_v32, %v2023_v11  ;;  %vm4509_vm10 = vmor %vm2046_vm8, %vm2047_vm7  ;;  %v2131_v8 = vmul.f32 %v4137_v7, %v2130_v33  ;;  %vm2153_vm15 = vcmp.eq.f32.partialorder %v2152_v10, 8.507059e+37  ;;  %v5207_v0 = vld [vmem:[#allocation66_spill] sm:$0xff]  ;;  %v5210_v11 = vld [vmem:[#allocation63_spill] sm:$0xff] }
 0x542   :  { %v2488_v51 = vpop.eup %2487  ;;  %v2043_v22 = vsub.f32 1.0, %v2042_v13  ;;  %2204 = vmatpush.msra.mxu0 %v3952_v34  ;;  %2244 = vmatpush.msra.mxu2 %v3954_v43  ;;  %v2052_v34 = vand.u32 2147483648, %v4464_v40  ;;  %v2154_v43 = vand.u32 2147483648, %v4469_v37  ;;  %v5213_v32 = vld [vmem:[#allocation67_spill] sm:$0xff]  ;;  %v5216_v33 = vld [vmem:[#allocation74_spill] sm:$0xff] }
 0x543   :  { %v2144_v23 = vmul.f32 %v2488_v51, %v4469_v37  ;;  %vm2149_vm9 = vweird.f32 %v2488_v51  ;;  %v5224_v10 = vld [vmem:[#allocation82_spill] sm:$0xff] }
 0x544   :  { %v2044_v19 = vmul.f32 %v4472_v35, %v2043_v22  ;;  %2205 = vmatpush.msra.mxu0 %v3956_v15  ;;  %2245 = vmatpush.msra.mxu2 %v3961_v57  ;;  %v2029_v15 = vmul.f32 %v4157_v41, %v2028_v39  ;;  %vm2150_vm12 = vmor %vm2148_vm11, %vm2149_vm9  ;;  %v5211_v22 = vld [vmem:[#allocation55_spill] sm:$0xff]  ;;  %v5226_v57 = vld [vmem:[#allocation96_spill] sm:$0xff] }
 0x545   :  { %v2145_v58 = vsub.f32 1.0, %v2144_v23  ;;  %v5214_v23 = vld [vmem:[#allocation84_spill] sm:$0xff]  ;;  %v5217_v39 = vld [vmem:[#allocation71_spill] sm:$0xff] }
 0x546   :  { %v2045_v31 = vadd.f32 %v4472_v35, %v2044_v19  ;;  %2206 = vmatpush.msra.mxu0 %v3963_v36  ;;  %2246 = vmatpush.msra.mxu2 %v3965_v42  ;;  %v2053_v36 = vor.u32 1.1754944e-38, %v2052_v34  ;;  %v2155_v42 = vor.u32 1.1754944e-38, %v2154_v43  ;;  %v5215_v19 = vld [vmem:[#allocation58_spill] sm:$0xff]  ;;  %v5221_v43 = vld [vmem:[#allocation75_spill] sm:$0xff] }
 0x547   :  { %v2146_v63 = vmul.f32 %v2488_v51, %v2145_v58  ;;  %v5218_v58 = vld [vmem:[#allocation88_spill] sm:$0xff]  ;;  %v5220_v34 = vld [vmem:[#allocation78_spill] sm:$0xff] }
 0x548   :  { %v1823_v4 = vpop.f32.mrf.mxu3  ;;  %v2049_v40 = vsel %vm4509_vm10, %v4472_v35, %v2045_v31  ;;  %2207 = vmatpush.msra.mxu0 %v3974_v50  ;;  %2247 = vmatpush.msra.mxu2 %v3977_v25  ;;  %v5176_v25 = vld [vmem:[#allocation36_spill] sm:$0xff]  ;;  %v5219_v31 = vld [vmem:[#allocation61_spill] sm:$0xff] }
 0x549   :  { %v2147_v13 = vadd.f32 %v2488_v51, %v2146_v63  ;;  %1954 = vmatmul.f32.vlgmr.msra.gmra.mxu1 %v1823_v4  ;;  %1994 = vmatmul.f32.vlgmr.msra.gmra.mxu3 %v1823_v4  ;;  %v2054_v7 = vsel %vm2051_vm14, %v2053_v36, %v2049_v40  ;;  %v5223_v63 = vld [vmem:[#allocation65_spill] sm:$0xff]  ;;  %v5229_v40 = vld [vmem:[#allocation83_spill] sm:$0xff] }
 0x54a   :  { %2425 = vmatmul.msk.f32.vlgmr.msrb.gmra.mxu0 %vm1582_vm13, %v2029_v15  ;;  %2430 = vmatmul.msk.f32.vlgmr.msrb.gmra.mxu2 %vm1582_vm13, %v2131_v8  ;;  %v2055_v37 = vmul.f32 %v4207_v44, %v2054_v7  ;;  %v5204_v44 = vld [vmem:[#allocation50_spill] sm:$0xff]  ;;  %v5225_v15 = vld [vmem:[#allocation79_spill] sm:$0xff]  ;;  %v5227_v4 = vld [vmem:[#allocation69_spill] sm:$0xff] }
 0x54b   :  { %v2151_v41 = vsel %vm2150_vm12, %v2488_v51, %v2147_v13  ;;  %2224 = vmatpush.msra.mxu1 %v3969_v3  ;;  %2264 = vmatpush.msra.mxu3 %v3971_v38  ;;  %v5174_v3 = vld [vmem:[#allocation44_spill] sm:$0xff]  ;;  %v5175_v38 = vld [vmem:[#allocation30_spill] sm:$0xff]  ;;  %v5231_v36 = vld [vmem:[#allocation73_spill] sm:$0xff] }
 0x54c   :  { %v2156_v35 = vsel %vm2153_vm15, %v2155_v42, %v2151_v41  ;;  %2208 = vmatpush.msra.mxu0 %v3996_v12  ;;  %2248 = vmatpush.msra.mxu2 %v3999_v62  ;;  %v5181_v12 = vld [vmem:[#allocation32_spill] sm:$0xff]  ;;  %v5182_v62 = vld [vmem:[#allocation37_spill] sm:$0xff]  ;;  %v5228_v8 = vld [vmem:[#allocation86_spill] sm:$0xff] }
 0x54d   :  { %2225 = vmatpush.msra.mxu1 %v3980_v16  ;;  %2265 = vmatpush.msra.mxu3 %v3986_v56  ;;  %v2157_v50 = vmul.f32 %v4227_v18, %v2156_v35  ;;  %v5177_v16 = vld [vmem:[#allocation48_spill] sm:$0xff]  ;;  %v5178_v56 = vld [vmem:[#allocation34_spill] sm:$0xff]  ;;  %v5233_v41 = vld [vmem:[#allocation87_spill] sm:$0xff] }
 0x54e   :  { %2209 = vmatpush.msra.mxu0 %v4022_v54  ;;  %2249 = vmatpush.msra.mxu2 %v4025_v9  ;;  %v5185_v54 = vld [vmem:[#allocation46_spill] sm:$0xff]  ;;  %v5186_v9 = vld [vmem:[#allocation33_spill] sm:$0xff]  ;;  %v5205_v18 = vld [vmem:[#allocation76_spill] sm:$0xff] }
 0x54f   :  { %2226 = vmatpush.msra.mxu1 %v3988_v59  ;;  %2266 = vmatpush.msra.mxu3 %v4002_v1  ;;  %v5180_v59 = vld [vmem:[#allocation39_spill] sm:$0xff]  ;;  %v5183_v1 = vld [vmem:[#allocation42_spill] sm:$0xff]  ;;  %v5208_v51 = vld [vmem:[#allocation52_spill] sm:$0xff] }
 0x550   :  { %2210 = vmatpush.msra.mxu0 %v4041_v29  ;;  %2250 = vmatpush.msra.mxu2 %v4044_v30  ;;  %v5189_v29 = vld [vmem:[#allocation38_spill] sm:$0xff]  ;;  %v5190_v30 = vld [vmem:[#allocation47_spill] sm:$0xff]  ;;  %v5230_v13 = vld [vmem:[#allocation100_spill] sm:$0xff] }
 0x551   :  { %2426 = vmatmul.msk.f32.vlgmr.msrb.gmra.mxu1 %vm1582_vm13, %v2055_v37  ;;  %2431 = vmatmul.msk.f32.vlgmr.msrb.gmra.mxu3 %vm1582_vm13, %v2157_v50  ;;  %v5232_v42 = vld [vmem:[#allocation90_spill] sm:$0xff]  ;;  %v5234_v7 = vld [vmem:[#allocation104_spill] sm:$0xff]  ;;  %v5235_v35 = vld [vmem:[#allocation77_spill] sm:$0xff] }
 0x552   :  { %2227 = vmatpush.msra.mxu1 %v4013_v28  ;;  %2267 = vmatpush.msra.mxu3 %v4028_v20  ;;  %v5184_v28 = vld [vmem:[#allocation40_spill] sm:$0xff]  ;;  %v5187_v20 = vld [vmem:[#allocation43_spill] sm:$0xff]  ;;  %v5236_v37 = vld [vmem:[#allocation94_spill] sm:$0xff] }
 0x553   :  { %2211 = vmatpush.msra.mxu0 %v4061_v6  ;;  %2251 = vmatpush.msra.mxu2 %v4064_v17  ;;  %v5194_v6 = vld [vmem:[#allocation64_spill] sm:$0xff]  ;;  %v5237_v50 = vld [vmem:[#allocation91_spill] sm:$0xff] }
 0x554   :  { %2228 = vmatpush.msra.mxu1 %v5174_v3  ;;  %2268 = vmatpush.msra.mxu3 %v5175_v38  ;;  %v5195_v17 = vld [vmem:[#allocation56_spill] sm:$0xff]  ;;  %v5239_v38 = vld [vmem:[#allocation81_spill] sm:$0xff] }
 0x555   :  { %2212 = vmatpush.msra.mxu0 %v4099_v24  ;;  %2252 = vmatpush.msra.mxu2 %v4102_v48  ;;  %v5188_v48 = vld [vmem:[#allocation35_spill] sm:$0xff]  ;;  %v5191_v24 = vld [vmem:[#allocation41_spill] sm:$0xff]  ;;  %v5238_v3 = vld [vmem:[#allocation108_spill] sm:$0xff] }
 0x556   :  { %2229 = vmatpush.msra.mxu1 %v4054_v61  ;;  %2269 = vmatpush.msra.mxu3 %v4056_v5  ;;  %v5192_v61 = vld [vmem:[#allocation53_spill] sm:$0xff]  ;;  %v5193_v5 = vld [vmem:[#allocation51_spill] sm:$0xff] }
 0x557   :  { %2213 = vmatpush.msra.mxu0 %v4133_v21  ;;  %2253 = vmatpush.msra.mxu2 %v4149_v49  ;;  %v5198_v21 = vld [vmem:[#allocation54_spill] sm:$0xff]  ;;  %v5199_v49 = vld [vmem:[#allocation59_spill] sm:$0xff] }
 0x558   :  { %2230 = vmatpush.msra.mxu1 %v4083_v55  ;;  %2270 = vmatpush.msra.mxu3 %v4085_v53  ;;  %v5179_v55 = vld [vmem:[#allocation31_spill] sm:$0xff]  ;;  %v5196_v53 = vld [vmem:[#allocation45_spill] sm:$0xff] }
 0x559   :  { %2214 = vmatpush.msra.mxu0 %v4151_v14  ;;  %2254 = vmatpush.msra.mxu2 %v4163_v52  ;;  %v5200_v14 = vld [vmem:[#allocation49_spill] sm:$0xff] }
 0x55a   :  { %2231 = vmatpush.msra.mxu1 %v4121_v45  ;;  %2271 = vmatpush.msra.mxu3 %v4155_v26  ;;  %v5197_v45 = vld [vmem:[#allocation68_spill] sm:$0xff]  ;;  %v5202_v52 = vld [vmem:[#allocation57_spill] sm:$0xff] }
 0x55b   :  { %2215 = vmatpush.msra.mxu0 %v4165_v27  ;;  %2255 = vmatpush.msra.mxu2 %v5177_v16  ;;  %v5201_v26 = vld [vmem:[#allocation72_spill] sm:$0xff]  ;;  %v5203_v27 = vld [vmem:[#allocation62_spill] sm:$0xff]  ;;  %v5241_v16 = vld [vmem:[#allocation95_spill] sm:$0xff] }
 0x55c   :  { %2232 = vmatpush.msra.mxu1 %v5176_v25  ;;  %2272 = vmatpush.msra.mxu3 %v5178_v56  ;;  %v5240_v25 = vld [vmem:[#allocation98_spill] sm:$0xff]  ;;  %v5242_v56 = vld [vmem:[#allocation112_spill] sm:$0xff] }
 0x55d   :  { %2216 = vmatpush.msra.mxu0 %v5179_v55  ;;  %2256 = vmatpush.msra.mxu2 %v5181_v12  ;;  %v5243_v55 = vld [vmem:[#allocation85_spill] sm:$0xff]  ;;  %v5245_v12 = vld [vmem:[#allocation99_spill] sm:$0xff] }
 0x55e   :  { %2233 = vmatpush.msra.mxu1 %v5180_v59  ;;  %2273 = vmatpush.msra.mxu3 %v5182_v62  ;;  %v5244_v59 = vld [vmem:[#allocation102_spill] sm:$0xff]  ;;  %v5246_v62 = vld [vmem:[#allocation89_spill] sm:$0xff] }
 0x55f   :  { %2217 = vmatpush.msra.mxu0 %v5183_v1  ;;  %2257 = vmatpush.msra.mxu2 %v5185_v54  ;;  %v5247_v1 = vld [vmem:[#allocation106_spill] sm:$0xff]  ;;  %v5249_v54 = vld [vmem:[#allocation93_spill] sm:$0xff] }
 0x560   :  { %2234 = vmatpush.msra.mxu1 %v5184_v28  ;;  %2274 = vmatpush.msra.mxu3 %v5186_v9  ;;  %v5248_v28 = vld [vmem:[#allocation103_spill] sm:$0xff]  ;;  %v5250_v9 = vld [vmem:[#allocation110_spill] sm:$0xff] }
 0x561   :  { %2218 = vmatpush.msra.mxu0 %v5187_v20  ;;  %2258 = vmatpush.msra.mxu2 %v5189_v29  ;;  %v5251_v20 = vld [vmem:[#allocation107_spill] sm:$0xff]  ;;  %v5253_v29 = vld [vmem:[#allocation114_spill] sm:$0xff] }
 0x562   :  { %2235 = vmatpush.msra.mxu1 %v5188_v48  ;;  %2275 = vmatpush.msra.mxu3 %v5190_v30  ;;  %v5252_v48 = vld [vmem:[#allocation97_spill] sm:$0xff]  ;;  %v5254_v30 = vld [vmem:[#allocation111_spill] sm:$0xff] }
 0x563   :  { %2219 = vmatpush.msra.mxu0 %v5191_v24  ;;  %2259 = vmatpush.msra.mxu2 %v5193_v5  ;;  %v5255_v24 = vld [vmem:[#allocation101_spill] sm:$0xff] }
 0x564   :  { %2236 = vmatpush.msra.mxu1 %v5192_v61  ;;  %2276 = vmatpush.msra.mxu3 %v5194_v6  ;;  %v5256_v61 = vld [vmem:[#allocation105_spill] sm:$0xff] }
 0x565   :  { %2287 = vmatpush.msrb.mxu0 %v5195_v17  ;;  %2327 = vmatpush.msrb.mxu2 %v5196_v53  ;;  %v5257_v5 = vld [vmem:[#allocation109_spill] sm:$0xff]  ;;  %v5259_v17 = vld [vmem:[#allocation115_spill] sm:$0xff]  ;;  %v5260_v53 = vld [vmem:[#allocation116_spill] sm:$0xff] }
 0x566   :  { %2237 = vmatpush.msra.mxu1 %v5197_v45  ;;  %2277 = vmatpush.msra.mxu3 %v5198_v21  ;;  %v5258_v6 = vld [vmem:[#allocation113_spill] sm:$0xff]  ;;  %v5262_v21 = vld [vmem:[#allocation118_spill] sm:$0xff] }
 0x567   :  { %2288 = vmatpush.msrb.mxu0 %v5199_v49  ;;  %2328 = vmatpush.msrb.mxu2 %v5200_v14  ;;  %v5261_v45 = vld [vmem:[#allocation117_spill] sm:$0xff]  ;;  %v5263_v49 = vld [vmem:[#allocation119_spill] sm:$0xff]  ;;  %v5264_v14 = vld [vmem:[#allocation120_spill] sm:$0xff] }
 0x568   :  { %2238 = vmatpush.msra.mxu1 %v5201_v26  ;;  %2278 = vmatpush.msra.mxu3 %v5202_v52  ;;  %v543_v26 = vld [vmem:[%s4679_s15] sm:$0x3]  ;;  %s2934_s15 = smov [#allocation19]  }
 0x569   :  { %2289 = vmatpush.msrb.mxu0 %v5203_v27  ;;  %2329 = vmatpush.msrb.mxu2 %v5204_v44  ;;  %v1827_v52 = vperm.slane %v543_v26, 0 }
 0x56a   :  { %2239 = vmatpush.msra.mxu1 %v5205_v18  ;;  %2279 = vmatpush.msra.mxu3 %v5206_v47 }
 0x56b   :  { %2290 = vmatpush.msrb.mxu0 %v5207_v0  ;;  %2330 = vmatpush.msrb.mxu2 %v5209_v2  ;;  %v1828_v0 = vperm.slane %v543_v26, 1  ;;  %v608_v2 = vld [vmem:[%s4681_s17] sm:$0x3]  ;;  %s2374_s17 = sshll.u32 %s2934_s15, 4  ;;  %s2375_s17 = int_to_ptr.vmem [resolvable:$true] %s2374_s17 }
 0x56c   :  { %2307 = vmatpush.msrb.mxu1 %v5208_v51  ;;  %2347 = vmatpush.msrb.mxu3 %v5210_v11 }
 0x56d   :  { %2291 = vmatpush.msrb.mxu0 %v5211_v22  ;;  %2331 = vmatpush.msrb.mxu2 %v5213_v32 }
 0x56e   :  { %2308 = vmatpush.msrb.mxu1 %v5212_v60  ;;  %2348 = vmatpush.msrb.mxu3 %v5214_v23  ;;  %v1914_v60 = vperm.slane %v608_v2, 0 }
 0x56f   :  { %2292 = vmatpush.msrb.mxu0 %v5215_v19  ;;  %2332 = vmatpush.msrb.mxu2 %v5217_v39 }
 0x570   :  { %2309 = vmatpush.msrb.mxu1 %v5216_v33  ;;  %2349 = vmatpush.msrb.mxu3 %v5218_v58  ;;  %v1915_v58 = vperm.slane %v608_v2, 1 }
 0x571   :  { %2293 = vmatpush.msrb.mxu0 %v5219_v31  ;;  %2333 = vmatpush.msrb.mxu2 %v5221_v43 }
 0x572   :  { %2310 = vmatpush.msrb.mxu1 %v5220_v34  ;;  %2350 = vmatpush.msrb.mxu3 %v5222_v46 }
 0x573   :  { %2294 = vmatpush.msrb.mxu0 %v5223_v63  ;;  %2334 = vmatpush.msrb.mxu2 %v5225_v15 }
 0x574   :  { %2311 = vmatpush.msrb.mxu1 %v5224_v10  ;;  %2351 = vmatpush.msrb.mxu3 %v5226_v57 }
 0x575   :  { %2295 = vmatpush.msrb.mxu0 %v5227_v4  ;;  %2335 = vmatpush.msrb.mxu2 %v5229_v40 }
 0x576   :  { %2312 = vmatpush.msrb.mxu1 %v5228_v8  ;;  %2352 = vmatpush.msrb.mxu3 %v5230_v13 }
 0x577   :  { %2296 = vmatpush.msrb.mxu0 %v5231_v36  ;;  %2336 = vmatpush.msrb.mxu2 %v5233_v41 }
 0x578   :  { %2313 = vmatpush.msrb.mxu1 %v5232_v42  ;;  %2353 = vmatpush.msrb.mxu3 %v5234_v7 }
 0x579   :  { %2297 = vmatpush.msrb.mxu0 %v5235_v35  ;;  %2337 = vmatpush.msrb.mxu2 %v5237_v50 }
 0x57a   :  { %2314 = vmatpush.msrb.mxu1 %v5236_v37  ;;  %2354 = vmatpush.msrb.mxu3 %v5238_v3 }
 0x57b   :  { %2298 = vmatpush.msrb.mxu0 %v5239_v38  ;;  %2338 = vmatpush.msrb.mxu2 %v5241_v16 }
 0x57c   :  { %2315 = vmatpush.msrb.mxu1 %v5240_v25  ;;  %2355 = vmatpush.msrb.mxu3 %v5242_v56 }
 0x57d   :  { %2299 = vmatpush.msrb.mxu0 %v5243_v55  ;;  %2339 = vmatpush.msrb.mxu2 %v5245_v12 }
 0x57e   :  { %2316 = vmatpush.msrb.mxu1 %v5244_v59  ;;  %2356 = vmatpush.msrb.mxu3 %v5246_v62 }
 0x57f   :  { %2300 = vmatpush.msrb.mxu0 %v5247_v1  ;;  %2340 = vmatpush.msrb.mxu2 %v5249_v54 }
 0x580   :  { %2317 = vmatpush.msrb.mxu1 %v5248_v28  ;;  %2357 = vmatpush.msrb.mxu3 %v5250_v9 }
 0x581   :  { %2301 = vmatpush.msrb.mxu0 %v5251_v20  ;;  %2341 = vmatpush.msrb.mxu2 %v5253_v29 }
 0x582   :  { %2318 = vmatpush.msrb.mxu1 %v5252_v48  ;;  %2358 = vmatpush.msrb.mxu3 %v5254_v30 }
 0x583   :  { %2302 = vmatpush.msrb.mxu0 %v5255_v24  ;;  %2342 = vmatpush.msrb.mxu2 %v5257_v5 }
 0x584   :  { %2319 = vmatpush.msrb.mxu1 %v5256_v61  ;;  %2359 = vmatpush.msrb.mxu3 %v5258_v6 }
 0x586   :  { %2320 = vmatpush.msrb.mxu1 %v5259_v17  ;;  %2360 = vmatpush.msrb.mxu3 %v5260_v53 }
 0x588   :  { %2321 = vmatpush.msrb.mxu1 %v5261_v45  ;;  %2361 = vmatpush.msrb.mxu3 %v5262_v21 }
 0x58a   :  { %2322 = vmatpush.msrb.mxu1 %v5263_v49  ;;  %2362 = vmatpush.msrb.mxu3 %v5264_v14 }
 0x5b6   :  { %v1848_v27 = vpop.f32.mrf.mxu0 }
 0x5b7   :  { %v1849_v44 = vadd.f32 %v1848_v27, %v1827_v52 }
 0x5bb   :  { %v1868_v18 = vpop.f32.mrf.mxu1 }
 0x5bc   :  { %v1869_v47 = vadd.f32 %v1868_v18, %v1849_v44  ;;  %v1888_v51 = vpop.f32.mrf.mxu2 }
 0x5bd   :  { %v1889_v22 = vadd.f32 %v1888_v51, %v1828_v0 }
 0x5be   :  { %1911 = vst [vmem:[#allocation19] sm:$0xff] %v1869_v47  ;;  %v1935_v11 = vpop.f32.mrf.mxu0 }
 0x5bf   :  { %v1936_v19 = vadd.f32 %v1935_v11, %v1914_v60 }
 0x5c1   :  { %v1908_v32 = vpop.f32.mrf.mxu3 }
 0x5c2   :  { %v1909_v23 = vadd.f32 %v1908_v32, %v1889_v22 }
 0x5c4   :  { %1912 = vst [vmem:[#allocation19 + $0x8] sm:$0xff] %v1909_v23  ;;  %v1975_v33 = vpop.f32.mrf.mxu2 }
 0x5c5   :  { %v1976_v43 = vadd.f32 %v1975_v33, %v1915_v58 }
 0x5c6   :  { %v1955_v39 = vpop.f32.mrf.mxu1 }
 0x5c7   :  { %v1956_v31 = vadd.f32 %v1955_v39, %v1936_v19  ;;  %v2076_v34 = vpop.f32.mrf.mxu0 }
 0x5c8   :  { %2220 = vmatmul.f32.vlgmr.msra.gmra.mxu0 %v2076_v34  ;;  %2260 = vmatmul.f32.vlgmr.msra.gmra.mxu2 %v2076_v34 }
 0x5c9   :  { %1998 = vst [vmem:[#allocation20] sm:$0xff] %v1956_v31 }
 0x5cc   :  { %v1995_v46 = vpop.f32.mrf.mxu3 }
 0x5cd   :  { %v1996_v63 = vadd.f32 %v1995_v46, %v1976_v43  ;;  %v2178_v10 = vpop.f32.mrf.mxu2 }
 0x5ce   :  { %2240 = vmatmul.f32.vlgmr.msra.gmra.mxu1 %v2178_v10  ;;  %2280 = vmatmul.f32.vlgmr.msra.gmra.mxu3 %v2178_v10  ;;  %v2099_v15 = vpop.f32.mrf.mxu1 }
 0x5cf   :  { %1999 = vst [vmem:[#allocation20 + $0x8] sm:$0xff] %v1996_v63 }
 0x5d0   :  { %2303 = vmatmul.f32.vlgmr.msrb.gmra.mxu0 %v2099_v15  ;;  %2343 = vmatmul.f32.vlgmr.msrb.gmra.mxu2 %v2099_v15 }
 0x5d4   :  { %v2201_v57 = vpop.f32.mrf.mxu3 }
 0x5d6   :  { %2323 = vmatmul.f32.vlgmr.msrb.gmra.mxu1 %v2201_v57  ;;  %2363 = vmatmul.f32.vlgmr.msrb.gmra.mxu3 %v2201_v57 }
 0x645   :  { %v2221_v4 = vpop.f32.mrf.mxu0 }
 0x646   :  { %v2222_v8 = vadd.f32 %v2221_v4, %v1827_v52 }
 0x64b   :  { %v2241_v40 = vpop.f32.mrf.mxu1  ;;  %v2261_v13 = vpop.f32.mrf.mxu2 }
 0x64c   :  { %v2242_v36 = vadd.f32 %v2241_v40, %v2222_v8  ;;  %v2262_v41 = vadd.f32 %v2261_v13, %v1828_v0 }
 0x64d   :  { %v2304_v42 = vpop.f32.mrf.mxu0 }
 0x64e   :  { %2285 = vst [vmem:[#allocation19 + $0x10] sm:$0xff] %v2242_v36  ;;  %v2305_v35 = vadd.f32 %v2304_v42, %v1914_v60 }
 0x651   :  { %v2281_v7 = vpop.f32.mrf.mxu3 }
 0x652   :  { %v2282_v37 = vadd.f32 %v2281_v7, %v2262_v41 }
 0x653   :  { %v2324_v50 = vpop.f32.mrf.mxu1  ;;  %v2344_v38 = vpop.f32.mrf.mxu2 }
 0x654   :  { %2286 = vst [vmem:[#allocation19 + $0x18] sm:$0xff] %v2282_v37  ;;  %v2325_v3 = vadd.f32 %v2324_v50, %v2305_v35  ;;  %v2345_v25 = vadd.f32 %v2344_v38, %v1915_v58 }
 0x655   :  { %2382 = dma.vmem_to_hbm [thread:$0]  %s2375_s17, 512, %s2377_s29, [#allocation4], %s2922_s25, %s2922_s25, %s2923_s3  }
 0x656   :  { %2368 = vst [vmem:[#allocation20 + $0x10] sm:$0xff] %v2325_v3 }
 0x659   :  { %v2364_v16 = vpop.f32.mrf.mxu3 }
 0x65a   :  { %v2365_v56 = vadd.f32 %v2364_v16, %v2345_v25 }
 0x65c   :  { %2369 = vst [vmem:[#allocation20 + $0x18] sm:$0xff] %v2365_v56 }
 0x65d   :  { %2395 = dma.vmem_to_hbm [thread:$0]  %s2388_s0, 512, %s2390_s18, [#allocation21], %s2922_s25, %s2922_s25, %s2923_s3  }
 0x65e   :  { %2917 = dma.done.wait [#allocation4], 512  }
 0x65f   :  { %2918 = vsyncadd [#allocation4], 4294966784 }
 0x660   :  { %2919 = dma.done.wait [#allocation21], 512  }
 0x661   :  { %2920 = vsyncadd [#allocation21], 4294966784 }
 0x662   :  { %2404 = vsyncpa [#allocation3], 1 }
 0x663   :  { %2405 = vsyncpa [#allocation6], 1 }
 0x664   :  { %2406 = vsyncpa [#allocation9], 1 }
 0x665   :  { %2407 = vsyncpa [#allocation12], 1 }
 0x666   :  { %2408 = vsyncpa [#allocation15], 1 }
 0x667   :  { %2409 = vsyncpa [#allocation18], 1 }
 0x668   :  { %2410 = vsyncpa [#allocation4], 1 }
 0x669   :  { %2411 = vsyncpa [#allocation21], 1 }

</bundles_post_ra>
